<compile_context>
chip_gen: v7x
topology: tpu7x:2x2x1
jax: 0.10.0
libtpu: 0.0.40
codegen_flags: <defaults>
</compile_context>

<pallas_src>
import functools

import jax
import jax.numpy as jnp
from jax.experimental import pallas as pl
from jax.experimental.pallas import tpu as pltpu

MXU_DTYPE = jnp.bfloat16     # MXU operand dtype (f32 accumulation everywhere)
BN_EPS = 1e-5                # PyTorch BatchNorm2d default
LRELU_SLOPE = 0.1
LANE = 128
SUBLANE = 8
VMEM_LIMIT = 48 * 1024 * 1024  # leave headroom under v7x's 64 MiB physical VMEM


def _round_up(x, m):
    return (x + m - 1) // m * m


def _cdiv(a, b):
    return -(-a // b)


def _pick_toh(n, oh, ow, ocp):
    """Largest divisor of OH such that the (toh*ow, ocp) f32 tile is ~<=2MiB and
    toh*ow is a multiple of 8 (legal / sublane-aligned output blocks)."""
    max_rows = max(SUBLANE, (2 * 1024 * 1024) // (4 * ocp))
    cands = [d for d in range(1, oh + 1)
             if oh % d == 0 and (d * ow) % SUBLANE == 0 and d * ow <= max_rows]
    if cands:
        return max(cands)
    # Tiny-spatial fallback: one row-tile per image (block == full M requires n == 1).
    if n > 1 and (oh * ow) % SUBLANE != 0:
        raise ValueError("tiny spatial output with batch > 1 is not supported")
    return oh


def _conv_geometry(n, h, w, cin, oc, ksize, stride, padding):
    oh = (h + 2 * padding - ksize) // stride + 1
    ow = (w + 2 * padding - ksize) // stride + 1
    hp, wp = h + 2 * padding, w + 2 * padding
    hq, wq = _cdiv(hp, stride), _cdiv(wp, stride)
    cin_p = _round_up(cin, SUBLANE)
    ocp = _round_up(oc, LANE)
    toh = _pick_toh(n, oh, ow, ocp)
    return dict(oh=oh, ow=ow, hq=hq, wq=wq, cin_p=cin_p, ocp=ocp,
                toh=toh, noh=oh // toh, tm=toh * ow)


# ----------------------------------------------------------------------------------
# Kernels
# ----------------------------------------------------------------------------------
def _accum_conv(x_ref, w_ref, y_ref, *, taps, stride, toh, ow, cin_p):
    """Unrolled tap loop: y_ref (TM, OCp) f32 += sum_t  A_t(bf16) @ W_t(bf16)."""
    row0 = pl.program_id(1) * toh
    tm = toh * ow
    for t, (kh, kw) in enumerate(taps):
        a = x_ref[kh % stride, kw % stride,
                  pl.ds(row0 + kh // stride, toh),
                  pl.ds(kw // stride, ow), :]
        a = a.reshape(tm, cin_p)
        contrib = jnp.dot(a, w_ref[t], preferred_element_type=jnp.float32)
        if t == 0:
            y_ref[...] = contrib
        else:
            y_ref[...] = y_ref[...] + contrib


def _conv_bn_stats_kernel(x_ref, w_ref, y_ref, stats_ref, *,
                          taps, stride, toh, ow, cin_p):
    # x_ref:     (s, s, Hq, Wq, Cp)  bf16 polyphase padded image (resident per batch idx)
    # w_ref:     (T, Cp, OCp)        bf16 per-tap weights (resident for whole grid)
    # y_ref:     (TM, OCp)           f32 conv output rows of this tile
    # stats_ref: (8, OCp)            f32 row0 = per-tile sum, row1 = centered sum-of-squares
    _accum_conv(x_ref, w_ref, y_ref, taps=taps, stride=stride,
                toh=toh, ow=ow, cin_p=cin_p)
    y = y_ref[...]
    tm = toh * ow
    s = jnp.sum(y, axis=0, keepdims=True)
    c = y - s * (1.0 / tm)
    m2 = jnp.sum(c * c, axis=0, keepdims=True)
    rows = jax.lax.broadcasted_iota(jnp.int32, stats_ref.shape, 0)
    stats_ref[...] = jnp.where(rows == 0, s, jnp.where(rows == 1, m2, 0.0))


def _conv_bias_kernel(x_ref, w_ref, b_ref, o_ref, *, taps, stride, toh, ow, cin_p):
    _accum_conv(x_ref, w_ref, o_ref, taps=taps, stride=stride,
                toh=toh, ow=ow, cin_p=cin_p)
    o_ref[...] = o_ref[...] + b_ref[...]


def _bn_lrelu_kernel(y_ref, scale_ref, shift_ref, o_ref, *, slope):
    z = y_ref[...] * scale_ref[...] + shift_ref[...]
    o_ref[...] = jnp.where(z >= 0, z, slope * z)


# ----------------------------------------------------------------------------------
# Layer builders (cached per static configuration -> each distinct shape compiles once)
# ----------------------------------------------------------------------------------
def _prep_input(x, g, stride, padding, cin, n):
    """NHWC f32 -> padded, channel-padded, polyphase (N, s, s, Hq, Wq, Cp) bf16."""
    xp = jnp.pad(x.astype(jnp.float32),
                 ((0, 0),
                  (padding, g["hq"] * stride - x.shape[1] - padding),
                  (padding, g["wq"] * stride - x.shape[2] - padding),
                  (0, g["cin_p"] - cin)))
    xph = xp.reshape(n, g["hq"], stride, g["wq"], stride, g["cin_p"])
    xph = jnp.transpose(xph, (0, 2, 4, 1, 3, 5))
    return xph.astype(MXU_DTYPE)


def _prep_weight(weight, g, ksize, cin, oc):
    """(OC, Cin, K, K) -> (K*K, Cin_p, OCp) bf16, matching the in-kernel tap order."""
    w2 = jnp.transpose(weight.astype(jnp.float32), (2, 3, 1, 0))  # (K, K, Cin, OC)
    w2 = jnp.pad(w2, ((0, 0), (0, 0), (0, g["cin_p"] - cin), (0, g["ocp"] - oc)))
    return w2.reshape(ksize * ksize, g["cin_p"], g["ocp"]).astype(MXU_DTYPE)


def _conv_pass1_call(kernel, n, g, ksize, stride, extra_in_specs=(), extra_out=None):
    """pallas_call for the conv pass (grid = (batch, row-tiles), both parallel)."""
    hq, wq, cin_p, ocp = g["hq"], g["wq"], g["cin_p"], g["ocp"]
    noh, tm, oh, ow = g["noh"], g["tm"], g["oh"], g["ow"]
    m = n * oh * ow

    in_specs = [
        pl.BlockSpec((None, stride, stride, hq, wq, cin_p),
                     lambda ni, ti: (ni, 0, 0, 0, 0, 0)),
        pl.BlockSpec((ksize * ksize, cin_p, ocp), lambda ni, ti: (0, 0, 0)),
    ] + list(extra_in_specs)

    out_shape = [jax.ShapeDtypeStruct((m, ocp), jnp.float32)]
    out_specs = [pl.BlockSpec((tm, ocp), lambda ni, ti: (ni * noh + ti, 0))]
    if extra_out is not None:
        out_shape.append(extra_out[0])
        out_specs.append(extra_out[1])

    cost = pl.CostEstimate(
        flops=2 * m * ksize * ksize * cin_p * ocp,
        transcendentals=0,
        bytes_accessed=(n * stride * stride * hq * wq * cin_p * 2
                        + ksize * ksize * cin_p * ocp * 2
                        + m * ocp * 4))

    return pl.pallas_call(
        kernel,
        out_shape=tuple(out_shape) if len(out_shape) > 1 else out_shape[0],
        grid=(n, noh),
        in_specs=in_specs,
        out_specs=tuple(out_specs) if len(out_specs) > 1 else out_specs[0],
        compiler_params=pltpu.CompilerParams(
            dimension_semantics=("parallel", "parallel"),
            vmem_limit_bytes=VMEM_LIMIT),
        cost_estimate=cost,
    )


@functools.lru_cache(maxsize=None)
def _build_conv_bn_lrelu(n, h, w, cin, oc, ksize, stride, padding):
    g = _conv_geometry(n, h, w, cin, oc, ksize, stride, padding)
    oh, ow, ocp, noh, tm = g["oh"], g["ow"], g["ocp"], g["noh"], g["tm"]
    m = n * oh * ow
    taps = tuple((a, b) for a in range(ksize) for b in range(ksize))

    kernel1 = functools.partial(_conv_bn_stats_kernel, taps=taps, stride=stride,
                                toh=g["toh"], ow=ow, cin_p=g["cin_p"])
    stats_out = (jax.ShapeDtypeStruct((n * noh, 8, ocp), jnp.float32),
                 pl.BlockSpec((None, 8, ocp), lambda ni, ti: (ni * noh + ti, 0, 0)))
    conv_call = _conv_pass1_call(kernel1, n, g, ksize, stride, extra_out=stats_out)

    bn_call = pl.pallas_call(
        functools.partial(_bn_lrelu_kernel, slope=LRELU_SLOPE),
        out_shape=jax.ShapeDtypeStruct((m, ocp), jnp.float32),
        grid=(n * noh,),
        in_specs=[
            pl.BlockSpec((tm, ocp), lambda i: (i, 0)),
            pl.BlockSpec((1, ocp), lambda i: (0, 0)),
            pl.BlockSpec((1, ocp), lambda i: (0, 0)),
        ],
        out_specs=pl.BlockSpec((tm, ocp), lambda i: (i, 0)),
        compiler_params=pltpu.CompilerParams(
            dimension_semantics=("parallel",),
            vmem_limit_bytes=VMEM_LIMIT),
        cost_estimate=pl.CostEstimate(flops=3 * m * ocp, transcendentals=0,
                                      bytes_accessed=2 * m * ocp * 4),
    )

    def fwd(x, weight, gamma, beta):
        xph = _prep_input(x, g, stride, padding, cin, n)
        wt = _prep_weight(weight, g, ksize, cin, oc)
        y, stats = conv_call(xph, wt)

        # Combine per-tile (sum, centered M2) partials (Chan's parallel variance) in f32.
        tsum = stats[:, 0, :]                       # (G, OCp)
        tm2 = stats[:, 1, :]
        tmean = tsum / tm
        mean = jnp.sum(tsum, axis=0) / m            # (OCp,)
        m2 = jnp.sum(tm2 + tm * (tmean - mean[None, :]) ** 2, axis=0)
        var = m2 / m                                # biased variance (PyTorch BN fwd)
        gp = jnp.pad(gamma.astype(jnp.float32), (0, ocp - oc))
        bp = jnp.pad(beta.astype(jnp.float32), (0, ocp - oc))
        scale = gp * jax.lax.rsqrt(var + BN_EPS)
        shift = bp - mean * scale

        out = bn_call(y, scale.reshape(1, ocp), shift.reshape(1, ocp))
        return out[:, :oc].reshape(n, oh, ow, oc)

    return jax.jit(fwd)


@functools.lru_cache(maxsize=None)
def _build_conv_bias(n, h, w, cin, oc, ksize, stride, padding):
    g = _conv_geometry(n, h, w, cin, oc, ksize, stride, padding)
    oh, ow, ocp = g["oh"], g["ow"], g["ocp"]
    taps = tuple((a, b) for a in range(ksize) for b in range(ksize))

    kernel = functools.partial(_conv_bias_kernel, taps=taps, stride=stride,
                               toh=g["toh"], ow=ow, cin_p=g["cin_p"])
    bias_spec = pl.BlockSpec((1, ocp), lambda ni, ti: (0, 0))
    conv_call = _conv_pass1_call(kernel, n, g, ksize, stride,
                                 extra_in_specs=(bias_spec,))

    def fwd(x, weight, bias):
        xph = _prep_input(x, g, stride, padding, cin, n)
        wt = _prep_weight(weight, g, ksize, cin, oc)
        bp = jnp.pad(bias.astype(jnp.float32), (0, ocp - oc)).reshape(1, ocp)
        out = conv_call(xph, wt, bp)
        return out[:, :oc].reshape(n, oh, ow, oc)

    return jax.jit(fwd)


def conv_bn_lrelu(x_nhwc, weight, gamma, beta, *, stride=1, padding=0):
    n, h, w, cin = x_nhwc.shape
    oc, wc, kh, kw = weight.shape
    assert wc == cin and kh == kw
    fn = _build_conv_bn_lrelu(int(n), int(h), int(w), int(cin), int(oc),
                              int(kh), int(stride), int(padding))
    return fn(x_nhwc, weight, gamma, beta)


def conv2d_bias(x_nhwc, weight, bias, *, stride=1, padding=0):
    n, h, w, cin = x_nhwc.shape
    oc, wc, kh, kw = weight.shape
    assert wc == cin and kh == kw
    fn = _build_conv_bias(int(n), int(h), int(w), int(cin), int(oc),
                          int(kh), int(stride), int(padding))
    return fn(x_nhwc, weight, bias)


# ----------------------------------------------------------------------------------
# YOLOv3 composition (NHWC throughout; plain JAX only for pure data movement)
# ----------------------------------------------------------------------------------
class _KeyGen:
    def __init__(self, key):
        self.key = key

    def __call__(self):
        self.key, sub = jax.random.split(self.key)
        return sub


def init_cbl(kg, cin, oc, k, stride=1, padding=0):
    w = jax.random.normal(kg(), (oc, cin, k, k), jnp.float32) * ((cin * k * k) ** -0.5)
    return dict(w=w, gamma=jnp.ones((oc,), jnp.float32),
                beta=jnp.zeros((oc,), jnp.float32), stride=stride, padding=padding)


def init_double(kg, cin, mid, cout):
    return dict(c1=init_cbl(kg, cin, mid, 1, 1, 0), c2=init_cbl(kg, mid, cout, 3, 1, 1))


def init_res(kg, cin, mid, cout):
    return dict(dc=init_double(kg, cin, mid, cout))


def init_output(kg, cin, mid, num_classes, aps):
    f = aps * (num_classes + 5)
    return dict(c=init_cbl(kg, cin, mid, 3, 1, 1),
                head_w=jax.random.normal(kg(), (f, mid, 1, 1), jnp.float32) * (mid ** -0.5),
                head_b=0.1 * jax.random.normal(kg(), (f,), jnp.float32))


def init_yolov3(kg, num_classes):
    p = dict()
    p["conv1"] = init_cbl(kg, 3, 32, 3, 1, 1)
    p["convres1"] = dict(down=init_cbl(kg, 32, 64, 3, 2, 1),
                         blocks=[init_res(kg, 64, 32, 64)])
    p["convres2"] = dict(down=init_cbl(kg, 64, 128, 3, 2, 1),
                         blocks=[init_res(kg, 128, 64, 128) for _ in range(2)])
    p["convres3"] = dict(down=init_cbl(kg, 128, 256, 3, 2, 1),
                         blocks=[init_res(kg, 256, 128, 256) for _ in range(8)])
    p["convres4"] = dict(down=init_cbl(kg, 256, 512, 3, 2, 1),
                         blocks=[init_res(kg, 512, 256, 512) for _ in range(8)])
    p["convres5"] = dict(down=init_cbl(kg, 512, 1024, 3, 2, 1),
                         blocks=[init_res(kg, 1024, 512, 1024) for _ in range(4)])
    p["dcc1"] = dict(d1=init_double(kg, 1024, 512, 1024),
                     d2=init_double(kg, 1024, 512, 1024),
                     c=init_cbl(kg, 1024, 512, 1, 1, 0))
    p["output1"] = init_output(kg, 512, 1024, num_classes, 3)
    p["conv7"] = init_cbl(kg, 512, 256, 1, 1, 0)
    p["dcc2"] = dict(d1=init_double(kg, 768, 256, 512),
                     d2=init_double(kg, 512, 256, 512),
                     c=init_cbl(kg, 512, 256, 1, 1, 0))
    p["output2"] = init_output(kg, 256, 512, num_classes, 3)
    p["conv8"] = init_cbl(kg, 256, 128, 1, 1, 0)
    p["dcc3"] = dict(d1=init_double(kg, 384, 128, 256),
                     d2=init_double(kg, 256, 128, 256),
                     c=init_cbl(kg, 256, 128, 1, 1, 0))
    p["output3"] = init_output(kg, 128, 256, num_classes, 3)
    return p


def apply_cbl(p, x):
    return conv_bn_lrelu(x, p["w"], p["gamma"], p["beta"],
                         stride=p["stride"], padding=p["padding"])


def apply_double(p, x):
    return apply_cbl(p["c2"], apply_cbl(p["c1"], x))


def apply_res(p, x):
    return apply_double(p["dc"], x) + x


def apply_convres(p, x):
    x = apply_cbl(p["down"], x)
    for b in p["blocks"]:
        x = apply_res(b, x)
    return x


def apply_dcc(p, x):
    return apply_cbl(p["c"], apply_double(p["d2"], apply_double(p["d1"], x)))


def apply_output(p, x, num_classes, aps=3):
    h = apply_cbl(p["c"], x)
    y = conv2d_bias(h, p["head_w"], p["head_b"], stride=1, padding=0)
    n, hh, ww, _ = y.shape
    c5 = num_classes + 5
    # NHWC channel a*c5+c  ->  (N, A, H, W, c5), identical to the PyTorch reshape/permute.
    return y.reshape(n, hh, ww, aps, c5).transpose(0, 3, 1, 2, 4)


def _upsample2(x):
    # TODO(synk): nearest-neighbor upsample / concat stay in XLA; they could be fused
    # into the next conv's input DMA but are pure data movement here.
    return jnp.repeat(jnp.repeat(x, 2, axis=1), 2, axis=2)


def yolov3_forward(params, x_nchw, num_classes):
    x = jnp.transpose(x_nchw, (0, 2, 3, 1))      # NCHW -> NHWC once at network entry
    x = apply_cbl(params["conv1"], x)
    x = apply_convres(params["convres1"], x)
    x = apply_convres(params["convres2"], x)
    x1 = apply_convres(params["convres3"], x)
    x2 = apply_convres(params["convres4"], x1)
    x = apply_convres(params["convres5"], x2)
    x3 = apply_dcc(params["dcc1"], x)
    out1 = apply_output(params["output1"], x3, num_classes)
    x = apply_cbl(params["conv7"], x3)
    x = _upsample2(x)
    x = jnp.concatenate([x, x2], axis=-1)
    x4 = apply_dcc(params["dcc2"], x)
    out2 = apply_output(params["output2"], x4, num_classes)
    x = apply_cbl(params["conv8"], x4)
    x = _upsample2(x)
    x = jnp.concatenate([x, x1], axis=-1)
    x = apply_dcc(params["dcc3"], x)
    out3 = apply_output(params["output3"], x, num_classes)
    return out1, out2, out3


# ----------------------------------------------------------------------------------
# Pure-JAX references for correctness checks
# ----------------------------------------------------------------------------------
def _reference_cbl_nhwc(x_nhwc, weight, gamma, beta, *, stride, padding):
    x = jnp.transpose(x_nhwc, (0, 3, 1, 2)).astype(jnp.float32)
    y = jax.lax.conv_general_dilated(
        x, weight.astype(jnp.float32), (stride, stride),
        [(padding, padding), (padding, padding)],
        dimension_numbers=("NCHW", "OIHW", "NCHW"))
    mean = jnp.mean(y, axis=(0, 2, 3), keepdims=True)
    var = jnp.mean((y - mean) ** 2, axis=(0, 2, 3), keepdims=True)
    z = (y - mean) * jax.lax.rsqrt(var + BN_EPS)
    z = z * gamma.reshape(1, -1, 1, 1) + beta.reshape(1, -1, 1, 1)
    z = jnp.where(z >= 0, z, LRELU_SLOPE * z)
    return jnp.transpose(z, (0, 2, 3, 1))


def _reference_conv_bias_nhwc(x_nhwc, weight, bias, *, stride, padding):
    x = jnp.transpose(x_nhwc, (0, 3, 1, 2)).astype(jnp.float32)
    y = jax.lax.conv_general_dilated(
        x, weight.astype(jnp.float32), (stride, stride),
        [(padding, padding), (padding, padding)],
        dimension_numbers=("NCHW", "OIHW", "NCHW"))
    y = y + bias.reshape(1, -1, 1, 1)
    return jnp.transpose(y, (0, 2, 3, 1))


if __name__ == "__main__":
    kg = _KeyGen(jax.random.PRNGKey(0))
    TOL = 5e-2  # bf16 MXU operands vs f32 reference; post-BN activations are O(1)

    # --- ConvBatchLeakyReLU, 3x3 stride 1 (the workhorse layer) ---
    x_a = jax.random.normal(kg(), (2, 16, 16, 8), jnp.float32)
    w_a = jax.random.normal(kg(), (32, 8, 3, 3), jnp.float32) * (72 ** -0.5)
    g_a = 1.0 + 0.1 * jax.random.normal(kg(), (32,), jnp.float32)
    b_a = 0.1 * jax.random.normal(kg(), (32,), jnp.float32)
    out_a = jax.block_until_ready(conv_bn_lrelu(x_a, w_a, g_a, b_a, stride=1, padding=1))
    ref_a = _reference_cbl_nhwc(x_a, w_a, g_a, b_a, stride=1, padding=1)
    err_a = float(jnp.max(jnp.abs(out_a - ref_a)))
    assert out_a.shape == (2, 16, 16, 32) and err_a < TOL, (out_a.shape, err_a)

    # --- ConvBatchLeakyReLU, 3x3 stride 2 (downsampling layer, exercises polyphase path) ---
    x_b = jax.random.normal(kg(), (2, 16, 16, 3), jnp.float32)
    w_b = jax.random.normal(kg(), (16, 3, 3, 3), jnp.float32) * (27 ** -0.5)
    g_b = 1.0 + 0.1 * jax.random.normal(kg(), (16,), jnp.float32)
    b_b = 0.1 * jax.random.normal(kg(), (16,), jnp.float32)
    out_b = jax.block_until_ready(conv_bn_lrelu(x_b, w_b, g_b, b_b, stride=2, padding=1))
    ref_b = _reference_cbl_nhwc(x_b, w_b, g_b, b_b, stride=2, padding=1)
    err_b = float(jnp.max(jnp.abs(out_b - ref_b)))
    assert out_b.shape == (2, 8, 8, 16) and err_b < TOL, (out_b.shape, err_b)

    # --- plain Conv2d + bias (detection-head conv) ---
    x_c = jax.random.normal(kg(), (2, 8, 8, 16), jnp.float32)
    w_c = jax.random.normal(kg(), (24, 16, 1, 1), jnp.float32) * (16 ** -0.5)
    b_c = 0.1 * jax.random.normal(kg(), (24,), jnp.float32)
    out_c = jax.block_until_ready(conv2d_bias(x_c, w_c, b_c, stride=1, padding=0))
    ref_c = _reference_conv_bias_nhwc(x_c, w_c, b_c, stride=1, padding=0)
    err_c = float(jnp.max(jnp.abs(out_c - ref_c)))
    assert out_c.shape == (2, 8, 8, 24) and err_c < TOL, (out_c.shape, err_c)

    # --- full YOLOv3 forward at a small image size (all convs run through Pallas) ---
    NUM_CLASSES = 2
    params = init_yolov3(kg, NUM_CLASSES)
    x = jax.random.normal(kg(), (1, 3, 64, 64), jnp.float32)
    o1, o2, o3 = jax.block_until_ready(yolov3_forward(params, x, NUM_CLASSES))
    assert o1.shape == (1, 3, 2, 2, NUM_CLASSES + 5), o1.shape
    assert o2.shape == (1, 3, 4, 4, NUM_CLASSES + 5), o2.shape
    assert o3.shape == (1, 3, 8, 8, NUM_CLASSES + 5), o3.shape
    for o in (o1, o2, o3):
        assert bool(jnp.all(jnp.isfinite(o)))

    print("KERNEL_OK")
</pallas_src>

<mosaic_0001>
module attributes {stable_mosaic.version = 11 : i64} {
  func.func @_conv_bn_stats_kernel(%arg0: i32, %arg1: i32, %arg2: memref<1x1x1x18x18x8xbf16, #tpu.memory_space<vmem>>, %arg3: memref<9x8x128xbf16, #tpu.memory_space<vmem>>, %arg4: memref<256x128xf32, #tpu.memory_space<vmem>>, %arg5: memref<1x8x128xf32, #tpu.memory_space<vmem>>) attributes {dimension_semantics = [#tpu.dimension_semantics<parallel>, #tpu.dimension_semantics<parallel>], iteration_bounds = array<i64: 2, 1>, scalar_prefetch = 0 : i64, scratch_operands = 0 : i64, tpu.core_type = #tpu.core_type<tc>, window_params = [{transform_indices = @transform_0, window_bounds = array<i64: 1, 1, 1, 18, 18, 8>}, {pipeline_mode = #tpu.pipeline_mode<synchronous>, transform_indices = @transform_1, window_bounds = array<i64: 9, 8, 128>}, {transform_indices = @transform_2, window_bounds = array<i64: 256, 128>}, {transform_indices = @transform_3, window_bounds = array<i64: 1, 8, 128>}]} {
    %c16_i32 = arith.constant 16 : i32
    %0 = arith.muli %arg1, %c16_i32 : i32
    %c0_i32 = arith.constant 0 : i32
    %1 = arith.addi %0, %c0_i32 : i32
    %c0 = arith.constant 0 : index
    %c0_0 = arith.constant 0 : index
    %c0_1 = arith.constant 0 : index
    %2 = arith.index_cast %1 : i32 to index
    %c0_2 = arith.constant 0 : index
    %c0_3 = arith.constant 0 : index
    %3 = vector.load %arg2[%c0, %c0_0, %c0_1, %2, %c0_2, %c0_3] : memref<1x1x1x18x18x8xbf16, #tpu.memory_space<vmem>>, vector<1x1x1x16x16x8xbf16>
    %4 = vector.shape_cast %3 : vector<1x1x1x16x16x8xbf16> to vector<16x16x8xbf16>
    %5 = vector.shape_cast %4 : vector<16x16x8xbf16> to vector<256x8xbf16>
    %c0_4 = arith.constant 0 : index
    %c0_5 = arith.constant 0 : index
    %c0_6 = arith.constant 0 : index
    %6 = vector.load %arg3[%c0_4, %c0_5, %c0_6] : memref<9x8x128xbf16, #tpu.memory_space<vmem>>, vector<1x8x128xbf16>
    %7 = vector.shape_cast %6 : vector<1x8x128xbf16> to vector<8x128xbf16>
    %cst = arith.constant dense<0.000000e+00> : vector<256x128xf32>
    %8 = tpu.matmul %5, %7, %cst {dimension_numbers = #tpu.dot_dimension_numbers<[1], [0], [0], [1], [0, 0, 1, 1], [], []>} : vector<256x8xbf16>, vector<8x128xbf16>, vector<256x128xf32> -> vector<256x128xf32>
    %c0_7 = arith.constant 0 : index
    %c0_8 = arith.constant 0 : index
    %9 = vector.load %arg4[%c0_7, %c0_8] : memref<256x128xf32, #tpu.memory_space<vmem>>, vector<256x128xf32>
    tpu.vector_store %arg4[%c0_7, %c0_8], %8 {strides = array<i32>} : memref<256x128xf32, #tpu.memory_space<vmem>>, vector<256x128xf32>,
    %c0_i32_9 = arith.constant 0 : i32
    %10 = arith.addi %0, %c0_i32_9 : i32
    %c0_10 = arith.constant 0 : index
    %c0_11 = arith.constant 0 : index
    %c0_12 = arith.constant 0 : index
    %11 = arith.index_cast %10 : i32 to index
    %c1 = arith.constant 1 : index
    %c0_13 = arith.constant 0 : index
    %12 = vector.load %arg2[%c0_10, %c0_11, %c0_12, %11, %c1, %c0_13] : memref<1x1x1x18x18x8xbf16, #tpu.memory_space<vmem>>, vector<1x1x1x16x16x8xbf16>
    %13 = vector.shape_cast %12 : vector<1x1x1x16x16x8xbf16> to vector<16x16x8xbf16>
    %14 = vector.shape_cast %13 : vector<16x16x8xbf16> to vector<256x8xbf16>
    %c1_14 = arith.constant 1 : index
    %c0_15 = arith.constant 0 : index
    %c0_16 = arith.constant 0 : index
    %15 = vector.load %arg3[%c1_14, %c0_15, %c0_16] : memref<9x8x128xbf16, #tpu.memory_space<vmem>>, vector<1x8x128xbf16>
    %16 = vector.shape_cast %15 : vector<1x8x128xbf16> to vector<8x128xbf16>
    %cst_17 = arith.constant dense<0.000000e+00> : vector<256x128xf32>
    %17 = tpu.matmul %14, %16, %cst_17 {dimension_numbers = #tpu.dot_dimension_numbers<[1], [0], [0], [1], [0, 0, 1, 1], [], []>} : vector<256x8xbf16>, vector<8x128xbf16>, vector<256x128xf32> -> vector<256x128xf32>
    %c0_18 = arith.constant 0 : index
    %c0_19 = arith.constant 0 : index
    %18 = vector.load %arg4[%c0_18, %c0_19] : memref<256x128xf32, #tpu.memory_space<vmem>>, vector<256x128xf32>
    %19 = arith.addf %18, %17 : vector<256x128xf32>
    %c0_20 = arith.constant 0 : index
    %c0_21 = arith.constant 0 : index
    %20 = vector.load %arg4[%c0_20, %c0_21] : memref<256x128xf32, #tpu.memory_space<vmem>>, vector<256x128xf32>
    tpu.vector_store %arg4[%c0_20, %c0_21], %19 {strides = array<i32>} : memref<256x128xf32, #tpu.memory_space<vmem>>, vector<256x128xf32>,
    %c0_i32_22 = arith.constant 0 : i32
    %21 = arith.addi %0, %c0_i32_22 : i32
    %c0_23 = arith.constant 0 : index
    %c0_24 = arith.constant 0 : index
    %c0_25 = arith.constant 0 : index
    %22 = arith.index_cast %21 : i32 to index
    %c2 = arith.constant 2 : index
    %c0_26 = arith.constant 0 : index
    %23 = vector.load %arg2[%c0_23, %c0_24, %c0_25, %22, %c2, %c0_26] : memref<1x1x1x18x18x8xbf16, #tpu.memory_space<vmem>>, vector<1x1x1x16x16x8xbf16>
    %24 = vector.shape_cast %23 : vector<1x1x1x16x16x8xbf16> to vector<16x16x8xbf16>
    %25 = vector.shape_cast %24 : vector<16x16x8xbf16> to vector<256x8xbf16>
    %c2_27 = arith.constant 2 : index
    %c0_28 = arith.constant 0 : index
    %c0_29 = arith.constant 0 : index
    %26 = vector.load %arg3[%c2_27, %c0_28, %c0_29] : memref<9x8x128xbf16, #tpu.memory_space<vmem>>, vector<1x8x128xbf16>
    %27 = vector.shape_cast %26 : vector<1x8x128xbf16> to vector<8x128xbf16>
    %cst_30 = arith.constant dense<0.000000e+00> : vector<256x128xf32>
    %28 = tpu.matmul %25, %27, %cst_30 {dimension_numbers = #tpu.dot_dimension_numbers<[1], [0], [0], [1], [0, 0, 1, 1], [], []>} : vector<256x8xbf16>, vector<8x128xbf16>, vector<256x128xf32> -> vector<256x128xf32>
    %c0_31 = arith.constant 0 : index
    %c0_32 = arith.constant 0 : index
    %29 = vector.load %arg4[%c0_31, %c0_32] : memref<256x128xf32, #tpu.memory_space<vmem>>, vector<256x128xf32>
    %30 = arith.addf %29, %28 : vector<256x128xf32>
    %c0_33 = arith.constant 0 : index
    %c0_34 = arith.constant 0 : index
    %31 = vector.load %arg4[%c0_33, %c0_34] : memref<256x128xf32, #tpu.memory_space<vmem>>, vector<256x128xf32>
    tpu.vector_store %arg4[%c0_33, %c0_34], %30 {strides = array<i32>} : memref<256x128xf32, #tpu.memory_space<vmem>>, vector<256x128xf32>,
    %c1_i32 = arith.constant 1 : i32
    %32 = arith.addi %0, %c1_i32 : i32
    %c0_35 = arith.constant 0 : index
    %c0_36 = arith.constant 0 : index
    %c0_37 = arith.constant 0 : index
    %33 = arith.index_cast %32 : i32 to index
    %c0_38 = arith.constant 0 : index
    %c0_39 = arith.constant 0 : index
    %34 = vector.load %arg2[%c0_35, %c0_36, %c0_37, %33, %c0_38, %c0_39] : memref<1x1x1x18x18x8xbf16, #tpu.memory_space<vmem>>, vector<1x1x1x16x16x8xbf16>
    %35 = vector.shape_cast %34 : vector<1x1x1x16x16x8xbf16> to vector<16x16x8xbf16>
    %36 = vector.shape_cast %35 : vector<16x16x8xbf16> to vector<256x8xbf16>
    %c3 = arith.constant 3 : index
    %c0_40 = arith.constant 0 : index
    %c0_41 = arith.constant 0 : index
    %37 = vector.load %arg3[%c3, %c0_40, %c0_41] : memref<9x8x128xbf16, #tpu.memory_space<vmem>>, vector<1x8x128xbf16>
    %38 = vector.shape_cast %37 : vector<1x8x128xbf16> to vector<8x128xbf16>
    %cst_42 = arith.constant dense<0.000000e+00> : vector<256x128xf32>
    %39 = tpu.matmul %36, %38, %cst_42 {dimension_numbers = #tpu.dot_dimension_numbers<[1], [0], [0], [1], [0, 0, 1, 1], [], []>} : vector<256x8xbf16>, vector<8x128xbf16>, vector<256x128xf32> -> vector<256x128xf32>
    %c0_43 = arith.constant 0 : index
    %c0_44 = arith.constant 0 : index
    %40 = vector.load %arg4[%c0_43, %c0_44] : memref<256x128xf32, #tpu.memory_space<vmem>>, vector<256x128xf32>
    %41 = arith.addf %40, %39 : vector<256x128xf32>
    %c0_45 = arith.constant 0 : index
    %c0_46 = arith.constant 0 : index
    %42 = vector.load %arg4[%c0_45, %c0_46] : memref<256x128xf32, #tpu.memory_space<vmem>>, vector<256x128xf32>
    tpu.vector_store %arg4[%c0_45, %c0_46], %41 {strides = array<i32>} : memref<256x128xf32, #tpu.memory_space<vmem>>, vector<256x128xf32>,
    %c1_i32_47 = arith.constant 1 : i32
    %43 = arith.addi %0, %c1_i32_47 : i32
    %c0_48 = arith.constant 0 : index
    %c0_49 = arith.constant 0 : index
    %c0_50 = arith.constant 0 : index
    %44 = arith.index_cast %43 : i32 to index
    %c1_51 = arith.constant 1 : index
    %c0_52 = arith.constant 0 : index
    %45 = vector.load %arg2[%c0_48, %c0_49, %c0_50, %44, %c1_51, %c0_52] : memref<1x1x1x18x18x8xbf16, #tpu.memory_space<vmem>>, vector<1x1x1x16x16x8xbf16>
    %46 = vector.shape_cast %45 : vector<1x1x1x16x16x8xbf16> to vector<16x16x8xbf16>
    %47 = vector.shape_cast %46 : vector<16x16x8xbf16> to vector<256x8xbf16>
    %c4 = arith.constant 4 : index
    %c0_53 = arith.constant 0 : index
    %c0_54 = arith.constant 0 : index
    %48 = vector.load %arg3[%c4, %c0_53, %c0_54] : memref<9x8x128xbf16, #tpu.memory_space<vmem>>, vector<1x8x128xbf16>
    %49 = vector.shape_cast %48 : vector<1x8x128xbf16> to vector<8x128xbf16>
    %cst_55 = arith.constant dense<0.000000e+00> : vector<256x128xf32>
    %50 = tpu.matmul %47, %49, %cst_55 {dimension_numbers = #tpu.dot_dimension_numbers<[1], [0], [0], [1], [0, 0, 1, 1], [], []>} : vector<256x8xbf16>, vector<8x128xbf16>, vector<256x128xf32> -> vector<256x128xf32>
    %c0_56 = arith.constant 0 : index
    %c0_57 = arith.constant 0 : index
    %51 = vector.load %arg4[%c0_56, %c0_57] : memref<256x128xf32, #tpu.memory_space<vmem>>, vector<256x128xf32>
    %52 = arith.addf %51, %50 : vector<256x128xf32>
    %c0_58 = arith.constant 0 : index
    %c0_59 = arith.constant 0 : index
    %53 = vector.load %arg4[%c0_58, %c0_59] : memref<256x128xf32, #tpu.memory_space<vmem>>, vector<256x128xf32>
    tpu.vector_store %arg4[%c0_58, %c0_59], %52 {strides = array<i32>} : memref<256x128xf32, #tpu.memory_space<vmem>>, vector<256x128xf32>,
    %c1_i32_60 = arith.constant 1 : i32
    %54 = arith.addi %0, %c1_i32_60 : i32
    %c0_61 = arith.constant 0 : index
    %c0_62 = arith.constant 0 : index
    %c0_63 = arith.constant 0 : index
    %55 = arith.index_cast %54 : i32 to index
    %c2_64 = arith.constant 2 : index
    %c0_65 = arith.constant 0 : index
    %56 = vector.load %arg2[%c0_61, %c0_62, %c0_63, %55, %c2_64, %c0_65] : memref<1x1x1x18x18x8xbf16, #tpu.memory_space<vmem>>, vector<1x1x1x16x16x8xbf16>
    %57 = vector.shape_cast %56 : vector<1x1x1x16x16x8xbf16> to vector<16x16x8xbf16>
    %58 = vector.shape_cast %57 : vector<16x16x8xbf16> to vector<256x8xbf16>
    %c5 = arith.constant 5 : index
    %c0_66 = arith.constant 0 : index
    %c0_67 = arith.constant 0 : index
    %59 = vector.load %arg3[%c5, %c0_66, %c0_67] : memref<9x8x128xbf16, #tpu.memory_space<vmem>>, vector<1x8x128xbf16>
    %60 = vector.shape_cast %59 : vector<1x8x128xbf16> to vector<8x128xbf16>
    %cst_68 = arith.constant dense<0.000000e+00> : vector<256x128xf32>
    %61 = tpu.matmul %58, %60, %cst_68 {dimension_numbers = #tpu.dot_dimension_numbers<[1], [0], [0], [1], [0, 0, 1, 1], [], []>} : vector<256x8xbf16>, vector<8x128xbf16>, vector<256x128xf32> -> vector<256x128xf32>
    %c0_69 = arith.constant 0 : index
    %c0_70 = arith.constant 0 : index
    %62 = vector.load %arg4[%c0_69, %c0_70] : memref<256x128xf32, #tpu.memory_space<vmem>>, vector<256x128xf32>
    %63 = arith.addf %62, %61 : vector<256x128xf32>
    %c0_71 = arith.constant 0 : index
    %c0_72 = arith.constant 0 : index
    %64 = vector.load %arg4[%c0_71, %c0_72] : memref<256x128xf32, #tpu.memory_space<vmem>>, vector<256x128xf32>
    tpu.vector_store %arg4[%c0_71, %c0_72], %63 {strides = array<i32>} : memref<256x128xf32, #tpu.memory_space<vmem>>, vector<256x128xf32>,
    %c2_i32 = arith.constant 2 : i32
    %65 = arith.addi %0, %c2_i32 : i32
    %c0_73 = arith.constant 0 : index
    %c0_74 = arith.constant 0 : index
    %c0_75 = arith.constant 0 : index
    %66 = arith.index_cast %65 : i32 to index
    %c0_76 = arith.constant 0 : index
    %c0_77 = arith.constant 0 : index
    %67 = vector.load %arg2[%c0_73, %c0_74, %c0_75, %66, %c0_76, %c0_77] : memref<1x1x1x18x18x8xbf16, #tpu.memory_space<vmem>>, vector<1x1x1x16x16x8xbf16>
    %68 = vector.shape_cast %67 : vector<1x1x1x16x16x8xbf16> to vector<16x16x8xbf16>
    %69 = vector.shape_cast %68 : vector<16x16x8xbf16> to vector<256x8xbf16>
    %c6 = arith.constant 6 : index
    %c0_78 = arith.constant 0 : index
    %c0_79 = arith.constant 0 : index
    %70 = vector.load %arg3[%c6, %c0_78, %c0_79] : memref<9x8x128xbf16, #tpu.memory_space<vmem>>, vector<1x8x128xbf16>
    %71 = vector.shape_cast %70 : vector<1x8x128xbf16> to vector<8x128xbf16>
    %cst_80 = arith.constant dense<0.000000e+00> : vector<256x128xf32>
    %72 = tpu.matmul %69, %71, %cst_80 {dimension_numbers = #tpu.dot_dimension_numbers<[1], [0], [0], [1], [0, 0, 1, 1], [], []>} : vector<256x8xbf16>, vector<8x128xbf16>, vector<256x128xf32> -> vector<256x128xf32>
    %c0_81 = arith.constant 0 : index
    %c0_82 = arith.constant 0 : index
    %73 = vector.load %arg4[%c0_81, %c0_82] : memref<256x128xf32, #tpu.memory_space<vmem>>, vector<256x128xf32>
    %74 = arith.addf %73, %72 : vector<256x128xf32>
    %c0_83 = arith.constant 0 : index
    %c0_84 = arith.constant 0 : index
    %75 = vector.load %arg4[%c0_83, %c0_84] : memref<256x128xf32, #tpu.memory_space<vmem>>, vector<256x128xf32>
    tpu.vector_store %arg4[%c0_83, %c0_84], %74 {strides = array<i32>} : memref<256x128xf32, #tpu.memory_space<vmem>>, vector<256x128xf32>,
    %c2_i32_85 = arith.constant 2 : i32
    %76 = arith.addi %0, %c2_i32_85 : i32
    %c0_86 = arith.constant 0 : index
    %c0_87 = arith.constant 0 : index
    %c0_88 = arith.constant 0 : index
    %77 = arith.index_cast %76 : i32 to index
    %c1_89 = arith.constant 1 : index
    %c0_90 = arith.constant 0 : index
    %78 = vector.load %arg2[%c0_86, %c0_87, %c0_88, %77, %c1_89, %c0_90] : memref<1x1x1x18x18x8xbf16, #tpu.memory_space<vmem>>, vector<1x1x1x16x16x8xbf16>
    %79 = vector.shape_cast %78 : vector<1x1x1x16x16x8xbf16> to vector<16x16x8xbf16>
    %80 = vector.shape_cast %79 : vector<16x16x8xbf16> to vector<256x8xbf16>
    %c7 = arith.constant 7 : index
    %c0_91 = arith.constant 0 : index
    %c0_92 = arith.constant 0 : index
    %81 = vector.load %arg3[%c7, %c0_91, %c0_92] : memref<9x8x128xbf16, #tpu.memory_space<vmem>>, vector<1x8x128xbf16>
    %82 = vector.shape_cast %81 : vector<1x8x128xbf16> to vector<8x128xbf16>
    %cst_93 = arith.constant dense<0.000000e+00> : vector<256x128xf32>
    %83 = tpu.matmul %80, %82, %cst_93 {dimension_numbers = #tpu.dot_dimension_numbers<[1], [0], [0], [1], [0, 0, 1, 1], [], []>} : vector<256x8xbf16>, vector<8x128xbf16>, vector<256x128xf32> -> vector<256x128xf32>
    %c0_94 = arith.constant 0 : index
    %c0_95 = arith.constant 0 : index
    %84 = vector.load %arg4[%c0_94, %c0_95] : memref<256x128xf32, #tpu.memory_space<vmem>>, vector<256x128xf32>
    %85 = arith.addf %84, %83 : vector<256x128xf32>
    %c0_96 = arith.constant 0 : index
    %c0_97 = arith.constant 0 : index
    %86 = vector.load %arg4[%c0_96, %c0_97] : memref<256x128xf32, #tpu.memory_space<vmem>>, vector<256x128xf32>
    tpu.vector_store %arg4[%c0_96, %c0_97], %85 {strides = array<i32>} : memref<256x128xf32, #tpu.memory_space<vmem>>, vector<256x128xf32>,
    %c2_i32_98 = arith.constant 2 : i32
    %87 = arith.addi %0, %c2_i32_98 : i32
    %c0_99 = arith.constant 0 : index
    %c0_100 = arith.constant 0 : index
    %c0_101 = arith.constant 0 : index
    %88 = arith.index_cast %87 : i32 to index
    %c2_102 = arith.constant 2 : index
    %c0_103 = arith.constant 0 : index
    %89 = vector.load %arg2[%c0_99, %c0_100, %c0_101, %88, %c2_102, %c0_103] : memref<1x1x1x18x18x8xbf16, #tpu.memory_space<vmem>>, vector<1x1x1x16x16x8xbf16>
    %90 = vector.shape_cast %89 : vector<1x1x1x16x16x8xbf16> to vector<16x16x8xbf16>
    %91 = vector.shape_cast %90 : vector<16x16x8xbf16> to vector<256x8xbf16>
    %c8 = arith.constant 8 : index
    %c0_104 = arith.constant 0 : index
    %c0_105 = arith.constant 0 : index
    %92 = vector.load %arg3[%c8, %c0_104, %c0_105] : memref<9x8x128xbf16, #tpu.memory_space<vmem>>, vector<1x8x128xbf16>
    %93 = vector.shape_cast %92 : vector<1x8x128xbf16> to vector<8x128xbf16>
    %cst_106 = arith.constant dense<0.000000e+00> : vector<256x128xf32>
    %94 = tpu.matmul %91, %93, %cst_106 {dimension_numbers = #tpu.dot_dimension_numbers<[1], [0], [0], [1], [0, 0, 1, 1], [], []>} : vector<256x8xbf16>, vector<8x128xbf16>, vector<256x128xf32> -> vector<256x128xf32>
    %c0_107 = arith.constant 0 : index
    %c0_108 = arith.constant 0 : index
    %95 = vector.load %arg4[%c0_107, %c0_108] : memref<256x128xf32, #tpu.memory_space<vmem>>, vector<256x128xf32>
    %96 = arith.addf %95, %94 : vector<256x128xf32>
    %c0_109 = arith.constant 0 : index
    %c0_110 = arith.constant 0 : index
    %97 = vector.load %arg4[%c0_109, %c0_110] : memref<256x128xf32, #tpu.memory_space<vmem>>, vector<256x128xf32>
    tpu.vector_store %arg4[%c0_109, %c0_110], %96 {strides = array<i32>} : memref<256x128xf32, #tpu.memory_space<vmem>>, vector<256x128xf32>,
    %c0_111 = arith.constant 0 : index
    %c0_112 = arith.constant 0 : index
    %98 = vector.load %arg4[%c0_111, %c0_112] : memref<256x128xf32, #tpu.memory_space<vmem>>, vector<256x128xf32>
    %cst_113 = arith.constant dense<0.000000e+00> : vector<128xf32>
    %99 = vector.multi_reduction <add>, %98, %cst_113 [0] : vector<256x128xf32> to vector<128xf32>
    %100 = vector.shape_cast %99 : vector<128xf32> to vector<1x128xf32>
    %cst_114 = arith.constant 3.906250e-03 : f32
    %101 = vector.broadcast %cst_114 : f32 to vector<1x128xf32>
    %102 = arith.mulf %100, %101 : vector<1x128xf32>
    %103 = vector.broadcast %102 : vector<1x128xf32> to vector<256x128xf32>
    %104 = arith.subf %98, %103 : vector<256x128xf32>
    %105 = arith.mulf %104, %104 : vector<256x128xf32>
    %cst_115 = arith.constant dense<0.000000e+00> : vector<128xf32>
    %106 = vector.multi_reduction <add>, %105, %cst_115 [0] : vector<256x128xf32> to vector<128xf32>
    %107 = vector.shape_cast %106 : vector<128xf32> to vector<1x128xf32>
    %108 = tpu.iota {dimensions = array<i32: 0>} : vector<8x128xi32>
    %c0_i32_116 = arith.constant 0 : i32
    %109 = vector.broadcast %c0_i32_116 : i32 to vector<8x128xi32>
    %110 = arith.cmpi eq, %108, %109 : vector<8x128xi32>
    %c1_i32_117 = arith.constant 1 : i32
    %111 = vector.broadcast %c1_i32_117 : i32 to vector<8x128xi32>
    %112 = arith.cmpi eq, %108, %111 : vector<8x128xi32>
    %cst_118 = arith.constant 0.000000e+00 : f32
    %113 = vector.shape_cast %107 : vector<1x128xf32> to vector<1x128xf32>
    %114 = vector.broadcast %113 : vector<1x128xf32> to vector<8x128xf32>
    %115 = vector.broadcast %cst_118 : f32 to vector<8x128xf32>
    %116 = arith.select %112, %114, %115 : vector<8x128xi1>, vector<8x128xf32>
    %117 = vector.shape_cast %100 : vector<1x128xf32> to vector<1x128xf32>
    %118 = vector.broadcast %117 : vector<1x128xf32> to vector<8x128xf32>
    %119 = arith.select %110, %118, %116 : vector<8x128xi1>, vector<8x128xf32>
    %c0_119 = arith.constant 0 : index
    %c0_120 = arith.constant 0 : index
    %c0_121 = arith.constant 0 : index
    %120 = vector.load %arg5[%c0_119, %c0_120, %c0_121] : memref<1x8x128xf32, #tpu.memory_space<vmem>>, vector<1x8x128xf32>
    %121 = vector.shape_cast %120 : vector<1x8x128xf32> to vector<8x128xf32>
    %122 = vector.shape_cast %119 : vector<8x128xf32> to vector<1x8x128xf32>
    tpu.vector_store %arg5[%c0_119, %c0_120, %c0_121], %122 {strides = array<i32>} : memref<1x8x128xf32, #tpu.memory_space<vmem>>, vector<1x8x128xf32>,
    return
  }
  func.func @transform_0(%arg0: i32, %arg1: i32) -> (i32, i32, i32, i32, i32, i32) {
    %c0_i32 = arith.constant 0 : i32
    %c0_i32_0 = arith.constant 0 : i32
    %c0_i32_1 = arith.constant 0 : i32
    %c0_i32_2 = arith.constant 0 : i32
    %c0_i32_3 = arith.constant 0 : i32
    %c0_i32_4 = arith.constant 0 : i32
    return %arg0, %c0_i32, %c0_i32_0, %c0_i32_1, %c0_i32_2, %c0_i32_3 : i32, i32, i32, i32, i32, i32
  }
  func.func @transform_1(%arg0: i32, %arg1: i32) -> (i32, i32, i32) {
    %c0_i32 = arith.constant 0 : i32
    %c0_i32_0 = arith.constant 0 : i32
    %c0_i32_1 = arith.constant 0 : i32
    %c0_i32_2 = arith.constant 0 : i32
    return %c0_i32, %c0_i32_0, %c0_i32_1 : i32, i32, i32
  }
  func.func @transform_2(%arg0: i32, %arg1: i32) -> (i32, i32) {
    %c1_i32 = arith.constant 1 : i32
    %0 = arith.muli %arg0, %c1_i32 : i32
    %1 = arith.addi %0, %arg1 : i32
    %c0_i32 = arith.constant 0 : i32
    %c0_i32_0 = arith.constant 0 : i32
    return %1, %c0_i32 : i32, i32
  }
  func.func @transform_3(%arg0: i32, %arg1: i32) -> (i32, i32, i32) {
    %c1_i32 = arith.constant 1 : i32
    %0 = arith.muli %arg0, %c1_i32 : i32
    %1 = arith.addi %0, %arg1 : i32
    %c0_i32 = arith.constant 0 : i32
    %c0_i32_0 = arith.constant 0 : i32
    %c0_i32_1 = arith.constant 0 : i32
    return %1, %c0_i32, %c0_i32_0 : i32, i32, i32
  }
}

module attributes {stable_mosaic.version = 11 : i64} {
  func.func @_bn_lrelu_kernel(%arg0: i32, %arg1: memref<256x128xf32, #tpu.memory_space<vmem>>, %arg2: memref<1x128xf32, #tpu.memory_space<vmem>>, %arg3: memref<1x128xf32, #tpu.memory_space<vmem>>, %arg4: memref<256x128xf32, #tpu.memory_space<vmem>>) attributes {dimension_semantics = [#tpu.dimension_semantics<parallel>], iteration_bounds = array<i64: 2>, scalar_prefetch = 0 : i64, scratch_operands = 0 : i64, tpu.core_type = #tpu.core_type<tc>, window_params = [{transform_indices = @transform_0, window_bounds = array<i64: 256, 128>}, {pipeline_mode = #tpu.pipeline_mode<synchronous>, transform_indices = @transform_1, window_bounds = array<i64: 1, 128>}, {pipeline_mode = #tpu.pipeline_mode<synchronous>, transform_indices = @transform_2, window_bounds = array<i64: 1, 128>}, {transform_indices = @transform_3, window_bounds = array<i64: 256, 128>}]} {
    %c0 = arith.constant 0 : index
    %c0_0 = arith.constant 0 : index
    %0 = vector.load %arg1[%c0, %c0_0] : memref<256x128xf32, #tpu.memory_space<vmem>>, vector<256x128xf32>
    %c0_1 = arith.constant 0 : index
    %c0_2 = arith.constant 0 : index
    %1 = vector.load %arg2[%c0_1, %c0_2] : memref<1x128xf32, #tpu.memory_space<vmem>>, vector<1x128xf32>
    %2 = vector.broadcast %1 : vector<1x128xf32> to vector<256x128xf32>
    %3 = arith.mulf %0, %2 : vector<256x128xf32>
    %c0_3 = arith.constant 0 : index
    %c0_4 = arith.constant 0 : index
    %4 = vector.load %arg3[%c0_3, %c0_4] : memref<1x128xf32, #tpu.memory_space<vmem>>, vector<1x128xf32>
    %5 = vector.broadcast %4 : vector<1x128xf32> to vector<256x128xf32>
    %6 = arith.addf %3, %5 : vector<256x128xf32>
    %cst = arith.constant 0.000000e+00 : f32
    %7 = vector.broadcast %cst : f32 to vector<256x128xf32>
    %8 = arith.cmpf oge, %6, %7 : vector<256x128xf32>
    %cst_5 = arith.constant 1.000000e-01 : f32
    %9 = vector.broadcast %cst_5 : f32 to vector<256x128xf32>
    %10 = arith.mulf %9, %6 : vector<256x128xf32>
    %11 = arith.select %8, %6, %10 : vector<256x128xi1>, vector<256x128xf32>
    %c0_6 = arith.constant 0 : index
    %c0_7 = arith.constant 0 : index
    %12 = vector.load %arg4[%c0_6, %c0_7] : memref<256x128xf32, #tpu.memory_space<vmem>>, vector<256x128xf32>
    tpu.vector_store %arg4[%c0_6, %c0_7], %11 {strides = array<i32>} : memref<256x128xf32, #tpu.memory_space<vmem>>, vector<256x128xf32>,
    return
  }
  func.func @transform_0(%arg0: i32) -> (i32, i32) {
    %c0_i32 = arith.constant 0 : i32
    %c0_i32_0 = arith.constant 0 : i32
    return %arg0, %c0_i32 : i32, i32
  }
  func.func @transform_1(%arg0: i32) -> (i32, i32) {
    %c0_i32 = arith.constant 0 : i32
    %c0_i32_0 = arith.constant 0 : i32
    %c0_i32_1 = arith.constant 0 : i32
    return %c0_i32, %c0_i32_0 : i32, i32
  }
  func.func @transform_2(%arg0: i32) -> (i32, i32) {
    %c0_i32 = arith.constant 0 : i32
    %c0_i32_0 = arith.constant 0 : i32
    %c0_i32_1 = arith.constant 0 : i32
    return %c0_i32, %c0_i32_0 : i32, i32
  }
  func.func @transform_3(%arg0: i32) -> (i32, i32) {
    %c0_i32 = arith.constant 0 : i32
    %c0_i32_0 = arith.constant 0 : i32
    return %arg0, %c0_i32 : i32, i32
  }
}

</mosaic_0001>

<bundles_post_ra>
// kernel: fwd.3
= control target key start
LH: loop header
LB: loop body
LE: loop exit
PB: predicated region body
PF: predicated region fallthrough
CT: control target
= control target key end

     0   :  { %8 = vsyncpa [#allocation3], 0  ;;  %s881_s0 = inlined_call_operand.vmem [shape: f32[512,128], index: 0, kind: input, shape index: {}]   ;;  %s882_s1 = inlined_call_operand.vmem [shape: f32[1,128], index: 1, kind: input, shape index: {}]   ;;  %s883_s2 = inlined_call_operand.vmem [shape: f32[1,128], index: 2, kind: input, shape index: {}]   ;;  %s884_s3 = inlined_call_operand.hbm [shape: f32[512,128], index: 3, kind: output, shape index: {}]  }
   0x1   :  { %10 = vsyncpa [#allocation3 + $0x1], 0  ;;  %s629_s12 = smov 0   ;;  %s631_s13 = smov 0  }
   0x2   :  { %s633_s14 = smov 0   ;;  %s635_s15 = smov 0  }
   0x3 LB: > { %s650_s16 = sadd.s32 4294967295, %s604_s15   ;;  %s486_s17 = sadd.s32 4294967294, %s604_s15   ;;  %s604_s15 = sphi %s635_s15, %s890_s15   ;;  %s600_s14 = sphi %s633_s14, %s889_s14   ;;  %s596_s13 = sphi %s631_s13, %s888_s13   ;;  %s592_s12 = sphi %s629_s12, %s887_s12  }
   0x4   : > { %s654_s18 = sadd.s32 1, %s604_s15   ;;  %s91_s19 = sadd.s32 1, %s600_s14 }
   0x5   : > { %s88_s20 = ssub.s32 %s604_s15, %s654_s18  ;;  %p101_p0 = scmp.ne.s32.totalorder %s600_s14, %s596_s13 }
   0x6   : > { %p89_p1 = scmp.eq.s32.totalorder %s88_s20, 0  ;;  %p102_p2 = scmp.eq.s32.totalorder %s650_s16, 1 }
   0x7   : > { %p107_p3 = scmp.ne.s32.totalorder %s596_s13, %s592_s12  ;;  %p108_p4 = scmp.eq.s32.totalorder %s486_s17, 1 }
   0x8   : > { %s665_s21 = scalar_select %p89_p1, %s600_s14, %s91_s19  }
   0x9   : > { %p667_p5 = por %p102_p2, %p101_p0  ;;  %p671_p6 = por %p108_p4, %p107_p3 }
   0xa   : > { %p489_p7 = scmp.ge.s32.totalorder %s604_s15, 1  ;;  %p141_p8 = scmp.lt.s32.totalorder %s604_s15, 3 }
   0xc   : > { %p142_p9 = pnand %p489_p7, %p141_p8 }
   0xd   : > { %s491_s24 = sshll.u32 (!%p142_p9), %s650_s16, 5  ;;  %s162_s25 = sand.u32 (!%p142_p9), 1, %s596_s13   ;;  %v682_v0 = vld [vmem:[%s882_s1] ss:$0 sm:$0xff] (!%p142_p9) }
   0xe   : > { %145 = sbr.rel (%p142_p9) target bundleno = 84 (0x54), region = 32  ;;  %p166_p10 = scmp.lt.s32.totalorder (!%p142_p9), %s491_s24, 63  ;;  %v692_v1 = vld [vmem:[%s883_s2] ss:$0 sm:$0xff] (!%p142_p9) }
   0xf   : > { %s699_s7 = sshll.u32 (!%p142_p9), %s162_s25, 8  ;;  %s500_s9 = sshll.u32 (!%p142_p9), %s650_s16, 12 }
  0x10   : > { %s725_s8 = scalar_lea.vmem (!%p142_p9), [#allocation2], %s699_s7  ;;  %s832_s17 = scalar_lea.hbm (!%p142_p9), %s884_s3, %s500_s9 }
  0x11   : > { %s424_s10 = sshll.u32 (!%p142_p9), %s725_s8, 4  ;;  %s840_s19 = scalar_lea.sflag (!%p142_p9), [#allocation3], %s162_s25  ;;  %s834_s10 = int_to_ptr.vmem [resolvable:$true] %s424_s10 }
  0x12   : > { %s542_s20 = scalar_lea.vmem (!%p142_p9), %s834_s10, 4096 }
  0x13   : > { %p543_p11 = scmp.ne.s32.totalorder (!%p142_p9), %s834_s10, %s542_s20 }
  0x15   : > { %s892_s24 = smov (!%p166_p10, %s491_s24), 63  ;;  %p544_p12 = pnand %p543_p11, %p667_p5 }
  0x16   : > { %s492_s26 = sshll.u32 %s892_s24, 3  ;;  %s606_s24 = smov [#allocation2]  }
  0x17   : > { %s687_s4 = scalar_lea.vmem %s881_s0, %s492_s26  ;;  %p545_p13 = pneg %p544_p12 }
  0x18   : > { %v172_v2 = vld [vmem:[%s687_s4] sm:$0xff]  ;;  %v173_v3 = vld [vmem:[%s687_s4 + $0x8] sm:$0xff]  ;;  %v174_v4 = vld [vmem:[%s687_s4 + $0x10] sm:$0xff]  ;;  %s546_s26 = sshll.u32 %s606_s24, 4  ;;  %s547_s26 = int_to_ptr.vmem [resolvable:$false] %s546_s26 }
  0x19   : > { %v211_v5 = vmul.f32 %v682_v0, %v172_v2  ;;  %v212_v6 = vmul.f32 %v682_v0, %v173_v3  ;;  %v213_v7 = vmul.f32 %v682_v0, %v174_v4  ;;  %v175_v8 = vld [vmem:[%s687_s4 + $0x18] sm:$0xff]  ;;  %v176_v9 = vld [vmem:[%s687_s4 + $0x20] sm:$0xff]  ;;  %v177_v10 = vld [vmem:[%s687_s4 + $0x28] sm:$0xff]  ;;  %s548_s27 = scalar_lea.vmem %s547_s26, 8192  ;;  %p549_p0 = scmp.lt.s32.totalorder %s834_s10, %s547_s26 }
  0x1a   : > { %v214_v11 = vmul.f32 %v682_v0, %v175_v8  ;;  %v215_v12 = vmul.f32 %v682_v0, %v176_v9  ;;  %v216_v13 = vmul.f32 %v682_v0, %v177_v10  ;;  %v178_v14 = vld [vmem:[%s687_s4 + $0x30] sm:$0xff]  ;;  %v179_v15 = vld [vmem:[%s687_s4 + $0x38] sm:$0xff]  ;;  %v180_v24 = vld [vmem:[%s687_s4 + $0x40] sm:$0xff]  ;;  %p550_p1 = scmp.lt.s32.totalorder %s548_s27, %s542_s20 }
  0x1b   : > { %v250_v16 = vadd.f32 %v692_v1, %v211_v5  ;;  %v251_v17 = vadd.f32 %v692_v1, %v212_v6  ;;  %v252_v18 = vadd.f32 %v692_v1, %v213_v7  ;;  %v217_v19 = vmul.f32 %v682_v0, %v178_v14  ;;  %v181_v32 = vld [vmem:[%s687_s4 + $0x48] sm:$0xff]  ;;  %v182_v33 = vld [vmem:[%s687_s4 + $0x50] sm:$0xff]  ;;  %v183_v34 = vld [vmem:[%s687_s4 + $0x58] sm:$0xff] }
  0x1c   : > { %v253_v20 = vadd.f32 %v692_v1, %v214_v11  ;;  %v254_v21 = vadd.f32 %v692_v1, %v215_v12  ;;  %v255_v22 = vadd.f32 %v692_v1, %v216_v13  ;;  %v218_v23 = vmul.f32 %v682_v0, %v179_v15  ;;  %v184_v46 = vld [vmem:[%s687_s4 + $0x60] sm:$0xff]  ;;  %v185_v47 = vld [vmem:[%s687_s4 + $0x68] sm:$0xff]  ;;  %v186_v58 = vld [vmem:[%s687_s4 + $0x70] sm:$0xff]  ;;  %p551_p2 = por %p550_p1, %p549_p0 }
  0x1d   : > { %vm282_vm0 = vcmp.ge.f32.partialorder %v250_v16, 0.0  ;;  %v314_v25 = vmul.f32 0.1, %v250_v16  ;;  %vm283_vm1 = vcmp.ge.f32.partialorder %v251_v17, 0.0  ;;  %v315_v26 = vmul.f32 0.1, %v251_v17 }
  0x1e   : > { %vm284_vm2 = vcmp.ge.f32.partialorder %v252_v18, 0.0  ;;  %v316_v27 = vmul.f32 0.1, %v252_v18  ;;  %vm285_vm3 = vcmp.ge.f32.partialorder %v253_v20, 0.0  ;;  %v317_v28 = vmul.f32 0.1, %v253_v20  ;;  %p552_p3 = pnand %p551_p2, %p545_p13 }
  0x1f   : > { %v346_v29 = vsel %vm282_vm0, %v250_v16, %v314_v25  ;;  %v347_v30 = vsel %vm283_vm1, %v251_v17, %v315_v26  ;;  %vm286_vm4 = vcmp.ge.f32.partialorder %v254_v21, 0.0  ;;  %v318_v31 = vmul.f32 0.1, %v254_v21  ;;  %v187_v59 = vld [vmem:[%s687_s4 + $0x78] sm:$0xff]  ;;  %v188_v6 = vld [vmem:[%s687_s4 + $0x80] sm:$0xff]  ;;  %v189_v7 = vld [vmem:[%s687_s4 + $0x88] sm:$0xff] }
  0x20   : > { %378 = vst [vmem:[%s725_s8] sm:$0xff] %v346_v29  ;;  %379 = vst [vmem:[%s725_s8 + $0x8] sm:$0xff] %v347_v30  ;;  %v348_v35 = vsel %vm284_vm2, %v252_v18, %v316_v27  ;;  %v349_v36 = vsel %vm285_vm3, %v253_v20, %v317_v28  ;;  %vm287_vm5 = vcmp.ge.f32.partialorder %v255_v22, 0.0  ;;  %v319_v37 = vmul.f32 0.1, %v255_v22  ;;  %v190_v12 = vld [vmem:[%s687_s4 + $0x90] sm:$0xff]  ;;  %v191_v13 = vld [vmem:[%s687_s4 + $0x98] sm:$0xff] }
  0x21   : > { %380 = vst [vmem:[%s725_s8 + $0x10] sm:$0xff] %v348_v35  ;;  %381 = vst [vmem:[%s725_s8 + $0x18] sm:$0xff] %v349_v36  ;;  %v350_v38 = vsel %vm286_vm4, %v254_v21, %v318_v31  ;;  %v256_v39 = vadd.f32 %v692_v1, %v217_v19  ;;  %v257_v40 = vadd.f32 %v692_v1, %v218_v23  ;;  %v193_v25 = vld [vmem:[%s687_s4 + $0xa8] sm:$0xff]  ;;  %v194_v36 = vld [vmem:[%s687_s4 + $0xb0] sm:$0xff] }
  0x22   : > { %v219_v41 = vmul.f32 %v682_v0, %v180_v24  ;;  %382 = vst [vmem:[%s725_s8 + $0x20] sm:$0xff] %v350_v38  ;;  %v351_v42 = vsel %vm287_vm5, %v255_v22, %v319_v37  ;;  %v220_v43 = vmul.f32 %v682_v0, %v181_v32  ;;  %v221_v44 = vmul.f32 %v682_v0, %v182_v33  ;;  %v192_v24 = vld [vmem:[%s687_s4 + $0xa0] sm:$0xff]  ;;  %v195_v37 = vld [vmem:[%s687_s4 + $0xb8] sm:$0xff] }
  0x23   : > { %v222_v45 = vmul.f32 %v682_v0, %v183_v34  ;;  %383 = vst [vmem:[%s725_s8 + $0x28] sm:$0xff] %v351_v42  ;;  %vm288_vm6 = vcmp.ge.f32.partialorder %v256_v39, 0.0  ;;  %v320_v48 = vmul.f32 0.1, %v256_v39  ;;  %vm289_vm7 = vcmp.ge.f32.partialorder %v257_v40, 0.0 }
  0x24   : > { %v321_v49 = vmul.f32 0.1, %v257_v40  ;;  %v258_v50 = vadd.f32 %v692_v1, %v219_v41  ;;  %v259_v51 = vadd.f32 %v692_v1, %v220_v43  ;;  %v260_v52 = vadd.f32 %v692_v1, %v221_v44 }
  0x25   : > { %v261_v53 = vadd.f32 %v692_v1, %v222_v45  ;;  %v352_v54 = vsel %vm288_vm6, %v256_v39, %v320_v48  ;;  %v223_v56 = vmul.f32 %v682_v0, %v184_v46  ;;  %v224_v57 = vmul.f32 %v682_v0, %v185_v47  ;;  %v196_v46 = vld [vmem:[%s687_s4 + $0xc0] sm:$0xff]  ;;  %v197_v47 = vld [vmem:[%s687_s4 + $0xc8] sm:$0xff] }
  0x26   : > { %v353_v55 = vsel %vm289_vm7, %v257_v40, %v321_v49  ;;  %384 = vst [vmem:[%s725_s8 + $0x30] sm:$0xff] %v352_v54  ;;  %vm290_vm8 = vcmp.ge.f32.partialorder %v258_v50, 0.0  ;;  %v322_v60 = vmul.f32 0.1, %v258_v50  ;;  %vm291_vm9 = vcmp.ge.f32.partialorder %v259_v51, 0.0 }
  0x27   : > { %385 = vst [vmem:[%s725_s8 + $0x38] sm:$0xff] %v353_v55  ;;  %v323_v61 = vmul.f32 0.1, %v259_v51  ;;  %vm292_vm10 = vcmp.ge.f32.partialorder %v260_v52, 0.0  ;;  %v324_v62 = vmul.f32 0.1, %v260_v52  ;;  %v262_v4 = vadd.f32 %v692_v1, %v223_v56 }
  0x28   : > { %vm293_vm11 = vcmp.ge.f32.partialorder %v261_v53, 0.0  ;;  %v325_v63 = vmul.f32 0.1, %v261_v53  ;;  %v354_v2 = vsel %vm290_vm8, %v258_v50, %v322_v60  ;;  %v263_v5 = vadd.f32 %v692_v1, %v224_v57 }
  0x29   : > { %v355_v3 = vsel %vm291_vm9, %v259_v51, %v323_v61  ;;  %386 = vst [vmem:[%s725_s8 + $0x40] sm:$0xff] %v354_v2  ;;  %v356_v8 = vsel %vm292_vm10, %v260_v52, %v324_v62  ;;  %v225_v10 = vmul.f32 %v682_v0, %v186_v58  ;;  %v226_v11 = vmul.f32 %v682_v0, %v187_v59  ;;  %v198_v52 = vld [vmem:[%s687_s4 + $0xd0] sm:$0xff]  ;;  %v200_v2 = vld [vmem:[%s687_s4 + $0xe0] sm:$0xff] }
  0x2a   : > { %387 = vst [vmem:[%s725_s8 + $0x48] sm:$0xff] %v355_v3  ;;  %v357_v9 = vsel %vm293_vm11, %v261_v53, %v325_v63  ;;  %388 = vst [vmem:[%s725_s8 + $0x50] sm:$0xff] %v356_v8  ;;  %vm294_vm12 = vcmp.ge.f32.partialorder %v262_v4, 0.0  ;;  %v326_v14 = vmul.f32 0.1, %v262_v4  ;;  %vm295_vm13 = vcmp.ge.f32.partialorder %v263_v5, 0.0 }
  0x2b   : > { %389 = vst [vmem:[%s725_s8 + $0x58] sm:$0xff] %v357_v9  ;;  %v327_v15 = vmul.f32 0.1, %v263_v5  ;;  %v264_v16 = vadd.f32 %v692_v1, %v225_v10  ;;  %v265_v17 = vadd.f32 %v692_v1, %v226_v11  ;;  %v227_v18 = vmul.f32 %v682_v0, %v188_v6  ;;  %v199_v53 = vld [vmem:[%s687_s4 + $0xd8] sm:$0xff]  ;;  %v201_v3 = vld [vmem:[%s687_s4 + $0xe8] sm:$0xff] }
  0x2c   : > { %v228_v19 = vmul.f32 %v682_v0, %v189_v7  ;;  %v358_v20 = vsel %vm294_vm12, %v262_v4, %v326_v14  ;;  %v229_v22 = vmul.f32 %v682_v0, %v190_v12  ;;  %v230_v23 = vmul.f32 %v682_v0, %v191_v13  ;;  %v202_v14 = vld [vmem:[%s687_s4 + $0xf0] sm:$0xff] }
  0x2d   : > { %v359_v21 = vsel %vm295_vm13, %v263_v5, %v327_v15  ;;  %390 = vst [vmem:[%s725_s8 + $0x60] sm:$0xff] %v358_v20  ;;  %vm296_vm14 = vcmp.ge.f32.partialorder %v264_v16, 0.0  ;;  %v328_v26 = vmul.f32 0.1, %v264_v16  ;;  %vm297_vm15 = vcmp.ge.f32.partialorder %v265_v17, 0.0  ;;  %v203_v15 = vld [vmem:[%s687_s4 + $0xf8] sm:$0xff] }
  0x2e   : > { %391 = vst [vmem:[%s725_s8 + $0x68] sm:$0xff] %v359_v21  ;;  %v329_v27 = vmul.f32 0.1, %v265_v17  ;;  %v266_v28 = vadd.f32 %v692_v1, %v227_v18  ;;  %v267_v29 = vadd.f32 %v692_v1, %v228_v19  ;;  %v268_v30 = vadd.f32 %v692_v1, %v229_v22 }
  0x2f   : > { %v269_v31 = vadd.f32 %v692_v1, %v230_v23  ;;  %v360_v32 = vsel %vm296_vm14, %v264_v16, %v328_v26  ;;  %v231_v34 = vmul.f32 %v682_v0, %v192_v24  ;;  %v232_v35 = vmul.f32 %v682_v0, %v193_v25 }
  0x30   : > { %v361_v33 = vsel %vm297_vm15, %v265_v17, %v329_v27  ;;  %392 = vst [vmem:[%s725_s8 + $0x70] sm:$0xff] %v360_v32  ;;  %vm298_vm0 = vcmp.ge.f32.partialorder %v266_v28, 0.0  ;;  %v330_v38 = vmul.f32 0.1, %v266_v28  ;;  %vm299_vm1 = vcmp.ge.f32.partialorder %v267_v29, 0.0 }
  0x31   : > { %393 = vst [vmem:[%s725_s8 + $0x78] sm:$0xff] %v361_v33  ;;  %v331_v39 = vmul.f32 0.1, %v267_v29  ;;  %vm300_vm2 = vcmp.ge.f32.partialorder %v268_v30, 0.0  ;;  %v332_v40 = vmul.f32 0.1, %v268_v30  ;;  %v270_v44 = vadd.f32 %v692_v1, %v231_v34 }
  0x32   : > { %vm301_vm3 = vcmp.ge.f32.partialorder %v269_v31, 0.0  ;;  %v333_v41 = vmul.f32 0.1, %v269_v31  ;;  %v362_v42 = vsel %vm298_vm0, %v266_v28, %v330_v38  ;;  %v271_v45 = vadd.f32 %v692_v1, %v232_v35 }
  0x33   : > { %v363_v43 = vsel %vm299_vm1, %v267_v29, %v331_v39  ;;  %394 = vst [vmem:[%s725_s8 + $0x80] sm:$0xff] %v362_v42  ;;  %v364_v48 = vsel %vm300_vm2, %v268_v30, %v332_v40  ;;  %v233_v50 = vmul.f32 %v682_v0, %v194_v36  ;;  %v234_v51 = vmul.f32 %v682_v0, %v195_v37 }
  0x34   : > { %395 = vst [vmem:[%s725_s8 + $0x88] sm:$0xff] %v363_v43  ;;  %v365_v49 = vsel %vm301_vm3, %v269_v31, %v333_v41  ;;  %396 = vst [vmem:[%s725_s8 + $0x90] sm:$0xff] %v364_v48  ;;  %vm302_vm4 = vcmp.ge.f32.partialorder %v270_v44, 0.0  ;;  %v334_v54 = vmul.f32 0.1, %v270_v44  ;;  %vm303_vm5 = vcmp.ge.f32.partialorder %v271_v45, 0.0 }
  0x35   : > { %397 = vst [vmem:[%s725_s8 + $0x98] sm:$0xff] %v365_v49  ;;  %v335_v55 = vmul.f32 0.1, %v271_v45  ;;  %v272_v56 = vadd.f32 %v692_v1, %v233_v50  ;;  %v273_v57 = vadd.f32 %v692_v1, %v234_v51  ;;  %v235_v58 = vmul.f32 %v682_v0, %v196_v46 }
  0x36   : > { %v236_v59 = vmul.f32 %v682_v0, %v197_v47  ;;  %v366_v60 = vsel %vm302_vm4, %v270_v44, %v334_v54  ;;  %v237_v62 = vmul.f32 %v682_v0, %v198_v52  ;;  %v238_v63 = vmul.f32 %v682_v0, %v199_v53 }
  0x37   : > { %v367_v61 = vsel %vm303_vm5, %v271_v45, %v335_v55  ;;  %398 = vst [vmem:[%s725_s8 + $0xa0] sm:$0xff] %v366_v60  ;;  %vm304_vm6 = vcmp.ge.f32.partialorder %v272_v56, 0.0  ;;  %v336_v4 = vmul.f32 0.1, %v272_v56  ;;  %vm305_vm7 = vcmp.ge.f32.partialorder %v273_v57, 0.0 }
  0x38   : > { %399 = vst [vmem:[%s725_s8 + $0xa8] sm:$0xff] %v367_v61  ;;  %v337_v5 = vmul.f32 0.1, %v273_v57  ;;  %v274_v6 = vadd.f32 %v692_v1, %v235_v58  ;;  %v275_v7 = vadd.f32 %v692_v1, %v236_v59  ;;  %v276_v8 = vadd.f32 %v692_v1, %v237_v62 }
  0x39   : > { %v277_v9 = vadd.f32 %v692_v1, %v238_v63  ;;  %v368_v10 = vsel %vm304_vm6, %v272_v56, %v336_v4  ;;  %v239_v12 = vmul.f32 %v682_v0, %v200_v2  ;;  %v240_v13 = vmul.f32 %v682_v0, %v201_v3 }
  0x3a   : > { %v369_v11 = vsel %vm305_vm7, %v273_v57, %v337_v5  ;;  %400 = vst [vmem:[%s725_s8 + $0xb0] sm:$0xff] %v368_v10  ;;  %vm306_vm8 = vcmp.ge.f32.partialorder %v274_v6, 0.0  ;;  %v338_v16 = vmul.f32 0.1, %v274_v6  ;;  %vm307_vm9 = vcmp.ge.f32.partialorder %v275_v7, 0.0 }
  0x3b   : > { %401 = vst [vmem:[%s725_s8 + $0xb8] sm:$0xff] %v369_v11  ;;  %v339_v17 = vmul.f32 0.1, %v275_v7  ;;  %vm308_vm10 = vcmp.ge.f32.partialorder %v276_v8, 0.0  ;;  %v340_v18 = vmul.f32 0.1, %v276_v8  ;;  %v278_v22 = vadd.f32 %v692_v1, %v239_v12 }
  0x3c   : > { %vm309_vm11 = vcmp.ge.f32.partialorder %v277_v9, 0.0  ;;  %v341_v19 = vmul.f32 0.1, %v277_v9  ;;  %v370_v20 = vsel %vm306_vm8, %v274_v6, %v338_v16  ;;  %v279_v23 = vadd.f32 %v692_v1, %v240_v13 }
  0x3d   : > { %v371_v21 = vsel %vm307_vm9, %v275_v7, %v339_v17  ;;  %402 = vst [vmem:[%s725_s8 + $0xc0] sm:$0xff] %v370_v20  ;;  %v372_v24 = vsel %vm308_vm10, %v276_v8, %v340_v18  ;;  %v241_v26 = vmul.f32 %v682_v0, %v202_v14  ;;  %v242_v27 = vmul.f32 %v682_v0, %v203_v15 }
  0x3e   : > { %403 = vst [vmem:[%s725_s8 + $0xc8] sm:$0xff] %v371_v21  ;;  %v373_v25 = vsel %vm309_vm11, %v277_v9, %v341_v19  ;;  %404 = vst [vmem:[%s725_s8 + $0xd0] sm:$0xff] %v372_v24  ;;  %vm310_vm12 = vcmp.ge.f32.partialorder %v278_v22, 0.0  ;;  %v342_v28 = vmul.f32 0.1, %v278_v22  ;;  %vm311_vm13 = vcmp.ge.f32.partialorder %v279_v23, 0.0 }
  0x3f   : > { %405 = vst [vmem:[%s725_s8 + $0xd8] sm:$0xff] %v373_v25  ;;  %v343_v29 = vmul.f32 0.1, %v279_v23  ;;  %v280_v30 = vadd.f32 %v692_v1, %v241_v26  ;;  %v281_v31 = vadd.f32 %v692_v1, %v242_v27 }
  0x40   : > { %v374_v32 = vsel %vm310_vm12, %v278_v22, %v342_v28 }
  0x41   : > { %v375_v33 = vsel %vm311_vm13, %v279_v23, %v343_v29  ;;  %406 = vst [vmem:[%s725_s8 + $0xe0] sm:$0xff] %v374_v32  ;;  %vm312_vm14 = vcmp.ge.f32.partialorder %v280_v30, 0.0  ;;  %v344_v0 = vmul.f32 0.1, %v280_v30  ;;  %vm313_vm15 = vcmp.ge.f32.partialorder %v281_v31, 0.0 }
  0x42   : > { %407 = vst [vmem:[%s725_s8 + $0xe8] sm:$0xff] %v375_v33  ;;  %v345_v34 = vmul.f32 0.1, %v281_v31 }
  0x43   : > { %v376_v1 = vsel %vm312_vm14, %v280_v30, %v344_v0 }
  0x44   : > { %v377_v35 = vsel %vm313_vm15, %v281_v31, %v345_v34  ;;  %408 = vst [vmem:[%s725_s8 + $0xf0] sm:$0xff] %v376_v1 }
  0x45   : > { %409 = vst [vmem:[%s725_s8 + $0xf8] sm:$0xff] %v377_v35 }
  0x46   : > { %555 = shalt.err (!%p552_p3)
}
  0x47   : > { %s556_s25 = scalar_lea.hbm %s832_s17, 4096  ;;  %s560_s30 = scalar_lea.hbm %s884_s3, 8192 }
  0x48   : > { %p557_p4 = scmp.ne.s32.totalorder %s832_s17, %s556_s25  ;;  %p561_p9 = scmp.lt.u32.totalorder %s832_s17, %s884_s3 }
  0x49   : > { %p562_p10 = scmp.lt.u32.totalorder %s560_s30, %s556_s25  ;;  %p564_p12 = scmp.lt.u32.totalorder %s556_s25, %s832_s17 }
  0x4a   : > { %p558_p7 = pnand %p557_p4, %p667_p5 }
  0x4b   : > { %p563_p11 = por %p562_p10, %p561_p9 }
  0x4c   : > { %p559_p8 = pneg %p558_p7 }
  0x4d   : > { %p565_p13 = por %p564_p12, %p563_p11 }
  0x4f   : > { %p566_p0 = pnand %p565_p13, %p559_p8 }
  0x51   : > { %569 = shalt.err (!%p566_p0)
}
  0x52   : > { %s607_s6 = smov 128   ;;  %s608_s7 = smov 8  }
  0x53   : > { %501 = dma.vmem_to_hbm [thread:$0]  (%p667_p5), %s834_s10, 4096, %s832_s17, %s840_s19, %s607_s6, %s607_s6, %s608_s7  }
  0x54 PF: > { %p507_p1 = scmp.ge.s32.totalorder %s604_s15, 2  ;;  %s439_s8 = sand.u32 1, %s592_s12  }
  0x55   : > { %s440_s9 = scalar_lea.sflag [#allocation3], %s439_s8 }
  0x56   : > { %p504_p2 = pnand %p507_p1, %p671_p6 }
  0x58   : > { %587 = dma.done.wait (!%p504_p2), %s440_s9, 4096  }
  0x59   : > { %589 = vsyncadd (!%p504_p2), %s440_s9, 4294963200  ;;  %p13_p3 = scmp.ge.s32.totalorder %s654_s18, 4   ;;  %s887_s12 = smov %s596_s13 }
  0x5a   : > { %s888_s13 = smov %s600_s14  ;;  %s889_s14 = smov %s665_s21 }
  0x5b   : > { %s890_s15 = smov %s654_s18  ;;  %15 = sbr.rel (!%p13_p3) target bundleno = 3 (0x3), region = 67 }
  0x62   :  { %445 = vsyncpa [#allocation3], 1 }
  0x63   :  { %447 = vsyncpa [#allocation3 + $0x1], 1 }

// kernel: fwd.2
= control target key start
LH: loop header
LB: loop body
LE: loop exit
PB: predicated region body
PF: predicated region fallthrough
CT: control target
= control target key end

     0   :  { %s7305_s12 = smov 0   ;;  %s7307_s13 = smov 0   ;;  %s8833_s0 = inlined_call_operand.vmem [shape: bf16[2,1,1,18,18,8], index: 0, kind: input, shape index: {}]   ;;  %s8834_s1 = inlined_call_operand.vmem [shape: bf16[9,8,128], index: 1, kind: input, shape index: {}]   ;;  %s8835_s2 = inlined_call_operand.vmem [shape: f32[512,128], index: 2, kind: output, shape index: {0}]   ;;  %s8836_s3 = inlined_call_operand.vmem [shape: f32[2,8,128], index: 3, kind: output, shape index: {1}]  }
   0x1   :  { %s7309_s14 = smov 0  }
   0x2 LB: > { %s26_s15 = sadd.s32 1, %s7279_s13  ;;  %p5789_p0 = scmp.ge.s32.totalorder %s7283_s14, 1  ;;  %s7283_s14 = sphi %s7309_s14, %s14_s14   ;;  %s7279_s13 = sphi %s7307_s13, %s8842_s13   ;;  %s7275_s12 = sphi %s7305_s12, %s8841_s12  }
   0x3   : > { %p28_p1 = scmp.ge.s32.totalorder %s26_s15, 2  ;;  %p156_p2 = scmp.lt.s32.totalorder %s7283_s14, 3 }
   0x5   : > { %s8844_s15 = smov (%p28_p1, %s26_s15), 0  ;;  %p157_p3 = pnand %p5789_p0, %p156_p2 }
   0x6   : > { %v242_v0 = vld [vmem:[%s8834_s1] sm:$0xf] (!%p157_p3)  ;;  %vm372_vm0 = vcmask (!%p157_p3), 1043456   ;;  %p186_p4 = scmp.lt.s32.totalorder (!%p157_p3), %s7275_s12, 1  ;;  %v5826_v2 = vld [vmem:[%s8834_s1 + $0x4] sm:$0xf] (!%p157_p3) }
   0x7   : > { %160 = sbr.rel (%p157_p3) target bundleno = 640 (0x280), region = 28  ;;  %7177 = vmatprep.subr.msk.bf16.mxu1 (!%p157_p3), %vm372_vm0, %v242_v0  ;;  %v374_v1 = vsel (!%p157_p3), %vm372_vm0, %v242_v0, 0  ;;  %v6021_v3 = vld [vmem:[%s8834_s1 + $0x10] sm:$0xf] (!%p157_p3)  ;;  %v6118_v5 = vld [vmem:[%s8834_s1 + $0x14] sm:$0xf] (!%p157_p3) }
   0x8   : > { %6550 = vmatpush3.bf16.msra.mxu1 (!%p157_p3), %v374_v1  ;;  %7181 = vmatprep.subr.msk.bf16.mxu0 (!%p157_p3), %vm372_vm0, %v6021_v3  ;;  %v7342_v4 = vsel (!%p157_p3), %vm372_vm0, %v6021_v3, 0  ;;  %vm323_vm1 = vcmask (!%p157_p3), 64512   ;;  %vm617_vm2 = vsmask.f32 (!%p157_p3), 3328  ;;  %vm618_vm3 = vsmask.f32 (!%p157_p3), 7440 }
   0x9   : > { %7178 = vmatprep.subr.msk.bf16.mxu1 (!%p157_p3), %vm372_vm0, %v5826_v2  ;;  %6686 = vmatpush3.bf16.msra.mxu0 (!%p157_p3), %v7342_v4  ;;  %v7359_v6 = vld [vmem:[%s8834_s1 + $0x18] sm:$0xf] (!%p157_p3)  ;;  %v5875_v7 = vld [vmem:[%s8834_s1 + $0x8] sm:$0xf] (!%p157_p3)  ;;  %v7367_v8 = vld [vmem:[%s8834_s1 + $0x1c] sm:$0xf] (!%p157_p3) }
   0xa   : > { %7183 = vmatprep.subr.msk.bf16.mxu0 (!%p157_p3), %vm372_vm0, %v6118_v5  ;;  %v1103_v10 = vsel (!%p157_p3), %vm372_vm0, %v5826_v2, 0  ;;  %v7373_v12 = vsel (!%p157_p3), %vm372_vm0, %v6118_v5, 0  ;;  %v7379_v14 = vsel (!%p157_p3), %vm372_vm0, %v7359_v6, 0  ;;  %v7383_v15 = vsel (!%p157_p3), %vm372_vm0, %v5875_v7, 0  ;;  %vm7401_vm4 = vmor (!%p157_p3), %vm617_vm2, %vm618_vm3  ;;  %s5791_s18 = sshll.u32 (!%p157_p3), %s7275_s12, 5 }
   0xb   : > { %v7387_v16 = vsel (!%p157_p3), %vm372_vm0, %v7367_v8, 0  ;;  %vm1458_vm5 = vcmask (!%p157_p3), 1042432   ;;  %vm1459_vm6 = vcmask (!%p157_p3), 1046532   ;;  %p193_p5 = scmp.lt.s32.totalorder (!%p157_p3), %s5791_s18, 63 }
   0xc   : > { %vm7476_vm7 = vmor (!%p157_p3), %vm1458_vm5, %vm1459_vm6 }
   0xe   : > { %s7338_s22 = scalar_select %p186_p4, %s7275_s12, 1 }
   0xf   : > { %s8846_s18 = smov (!%p193_p5, %s5791_s18), 63 }
  0x10   : > { %s7187_s25 = smul.u32 216, %s7338_s22  ;;  %s5792_s19 = sshll.u32 %s8846_s18, 3 }
  0x11   : > { %s8588_s23 = scalar_lea.vmem %s8835_s2, %s5792_s19  ;;  %s5793_s12 = sshll.u32 %s7338_s22, 3 }
  0x12   : > { %s7354_s28 = scalar_lea.vmem %s8833_s0, %s7187_s25  ;;  %s203_s26 = scalar_lea.vmem %s8836_s3, %s5793_s12 }
  0x13   : > { %v7212_v9 = vld [vmem:[%s7354_s28] sm:$0xff]   ;;  %v7213_v11 = vld [vmem:[%s7354_s28 + $0xc] sm:$0xff]   ;;  %v7214_v13 = vld [vmem:[%s7354_s28 + $0x18] sm:$0xff]  }
  0x14   : > { %6551 = vmatprep.mubr.msk.bf16.mxu1 %vm323_vm1, %v7212_v9  ;;  %v5973_v17 = vld [vmem:[%s7354_s28 + $0xc] sm:$0xf]  ;;  %v5974_v18 = vld [vmem:[%s7354_s28 + $0x10] sm:$0xf]  ;;  %v5975_v19 = vld [vmem:[%s7354_s28 + $0x14] sm:$0x1] }
  0x15   : > { %6552 = vmatmul.mubr.msk.bf16.vlgmr.msra.gmra.mrb[0].mxu1 %vm323_vm1, %v7213_v11  ;;  %v7215_v20 = vld [vmem:[%s7354_s28 + $0x24] sm:$0xff]   ;;  %v2406_v21 = vshrl.u32 %v5973_v17, 16  ;;  %v2409_v22 = vshll.u32 %v5973_v17, 16  ;;  %v2415_v23 = vshll.u32 %v5974_v18, 16  ;;  %v2419_v24 = vshrl.u32 %v5974_v18, 16  ;;  %v7216_v42 = vld [vmem:[%s7354_s28 + $0x30] sm:$0xff]  }
  0x16   : > { %6584 = vmatpush3.bf16.msra.mxu1 %v1103_v10  ;;  %6555 = vmatprep.mubr.msk.bf16.mxu1 %vm323_vm1, %v7214_v13  ;;  %v5976_v25 = vld [vmem:[%s7354_s28 + $0x18] sm:$0xf]  ;;  %v2425_v26 = vshll.u32 %v5975_v19, 16  ;;  %v5977_v27 = vld [vmem:[%s7354_s28 + $0x1c] sm:$0xf] }
  0x17   : > { %7179 = vmatprep.subr.msk.bf16.mxu1 %vm372_vm0, %v5875_v7  ;;  %v5978_v28 = vld [vmem:[%s7354_s28 + $0x20] sm:$0x1]  ;;  %v2430_v29 = vshrl.u32 %v5976_v25, 16  ;;  %v2408_v30 = vrot.slane %v2406_v21, 4  ;;  %v2411_v31 = vrot.slane %v2409_v22, 5  ;;  %v2417_v32 = vrot.slane %v2415_v23, 5 }
  0x18   : > { %v2421_v33 = vrot.slane %v2419_v24, 4  ;;  %v2427_v34 = vrot.slane %v2425_v26, 5  ;;  %v2433_v36 = vshll.u32 %v5976_v25, 16  ;;  %v2439_v37 = vshll.u32 %v5977_v27, 16  ;;  %v5979_v46 = vld [vmem:[%s7354_s28 + $0x24] sm:$0xf] }
  0x19   : > { %v2432_v35 = vrot.slane %v2430_v29, 4  ;;  %v2412_v38 = vor.u32 %v2411_v31, %v2408_v30  ;;  %v2443_v40 = vshrl.u32 %v5977_v27, 16  ;;  %v2449_v41 = vshll.u32 %v5978_v28, 16  ;;  %v5980_v51 = vld [vmem:[%s7354_s28 + $0x28] sm:$0xf]  ;;  %v7217_v60 = vld [vmem:[%s7354_s28 + $0x3c] sm:$0xff]  }
  0x1a   : > { %v2422_v39 = vor.u32 %v2421_v33, %v2417_v32  ;;  %v2435_v44 = vrot.slane %v2433_v36, 5  ;;  %v2441_v45 = vrot.slane %v2439_v37, 5  ;;  %v5981_v53 = vld [vmem:[%s7354_s28 + $0x2c] sm:$0x1]  ;;  %v2454_v54 = vshrl.u32 %v5979_v46, 16 }
  0x1b   : > { %v2413_v47 = vrot.slane %v2412_v38, 4  ;;  %v2445_v49 = vrot.slane %v2443_v40, 4  ;;  %v2451_v50 = vrot.slane %v2449_v41, 5  ;;  %v2457_v55 = vshll.u32 %v5979_v46, 16  ;;  %v5982_v62 = vld [vmem:[%s7354_s28 + $0x30] sm:$0xf] }
  0x1c   : > { %v2423_v48 = vrot.slane %v2422_v39, 4  ;;  %v2436_v52 = vor.u32 %v2435_v44, %v2432_v35  ;;  %v2463_v56 = vshll.u32 %v5980_v51, 16  ;;  %v2467_v61 = vshrl.u32 %v5980_v51, 16  ;;  %v5983_v63 = vld [vmem:[%s7354_s28 + $0x34] sm:$0xf]  ;;  %v7218_v7 = vld [vmem:[%s7354_s28 + $0x48] sm:$0xff]  }
  0x1d   : > { %6556 = vmatmul.mubr.msk.bf16.gmra.mrb[4].mxu1 %vm323_vm1, %v7215_v20  ;;  %v2418_v57 = vsel %vm7401_vm4, %v2413_v47, %v2417_v32  ;;  %v2446_v59 = vor.u32 %v2445_v49, %v2441_v45  ;;  %v2456_v2 = vrot.slane %v2454_v54, 4  ;;  %v2459_v3 = vrot.slane %v2457_v55, 5  ;;  %v5984_v5 = vld [vmem:[%s7354_s28 + $0x38] sm:$0x1]  ;;  %v5985_v25 = vld [vmem:[%s7354_s28 + $0x3c] sm:$0xf] }
  0x1e   : > { %6559 = vmatprep.mubr.msk.bf16.mxu1 %vm323_vm1, %v7216_v42  ;;  %v2428_v58 = vsel %vm7401_vm4, %v2423_v48, %v2427_v34  ;;  %v2437_v1 = vrot.slane %v2436_v52, 4  ;;  %v2465_v10 = vrot.slane %v2463_v56, 5  ;;  %v2469_v11 = vrot.slane %v2467_v61, 4  ;;  %v5986_v30 = vld [vmem:[%s7354_s28 + $0x40] sm:$0xf]  ;;  %v7219_v49 = vld [vmem:[%s7354_s28 + $0x54] sm:$0xff]  }
  0x1f   : > { %v6022_v0 = vcombine.low %v2418_v57, %v2428_v58  ;;  %v2447_v9 = vrot.slane %v2446_v59, 4  ;;  %v2473_v13 = vshll.u32 %v5981_v53, 16  ;;  %v2460_v18 = vor.u32 %v2459_v3, %v2456_v2  ;;  %v5987_v37 = vld [vmem:[%s7354_s28 + $0x44] sm:$0x1]  ;;  %v5988_v40 = vld [vmem:[%s7354_s28 + $0x48] sm:$0xf] }
  0x20   : > { %v2442_v17 = vsel %vm7401_vm4, %v2437_v1, %v2441_v45  ;;  %v2478_v19 = vshrl.u32 %v5982_v62, 16  ;;  %v2481_v20 = vshll.u32 %v5982_v62, 16  ;;  %v2470_v22 = vor.u32 %v2469_v11, %v2465_v10  ;;  %v5989_v46 = vld [vmem:[%s7354_s28 + $0x4c] sm:$0xf]  ;;  %v5990_v52 = vld [vmem:[%s7354_s28 + $0x50] sm:$0x1] }
  0x21   : > { %6687 = vmatprep.mubr.msk.bf16.mxu0 %vm323_vm1, %v6022_v0  ;;  %v2452_v21 = vsel %vm7401_vm4, %v2447_v9, %v2451_v50  ;;  %v2475_v23 = vrot.slane %v2473_v13, 5  ;;  %v2487_v24 = vshll.u32 %v5983_v63, 16  ;;  %v2461_v27 = vrot.slane %v2460_v18, 4  ;;  %v7220_v56 = vld [vmem:[%s7354_s28 + $0x60] sm:$0xff]   ;;  %v5992_v13 = vld [vmem:[%s7354_s28 + $0x58] sm:$0xf] }
  0x22   : > { %v6023_v26 = vcombine.low %v2442_v17, %v2452_v21  ;;  %v2480_v28 = vrot.slane %v2478_v19, 4  ;;  %v2483_v29 = vrot.slane %v2481_v20, 5  ;;  %v2471_v31 = vrot.slane %v2470_v22, 4  ;;  %v5993_v21 = vld [vmem:[%s7354_s28 + $0x5c] sm:$0x1] }
  0x23   : > { %v2489_v32 = vrot.slane %v2487_v24, 5  ;;  %v2491_v33 = vshrl.u32 %v5983_v63, 16  ;;  %v2497_v34 = vshll.u32 %v5984_v5, 16  ;;  %v2466_v35 = vsel %vm7401_vm4, %v2461_v27, %v2465_v10  ;;  %v5991_v5 = vld [vmem:[%s7354_s28 + $0x54] sm:$0xf] }
  0x24   : > { %6688 = vmatmul.mubr.msk.bf16.vlgmr.msra.gmra.mrb[0].mxu0 %vm323_vm1, %v6023_v26  ;;  %v2484_v36 = vor.u32 %v2483_v29, %v2480_v28  ;;  %v2502_v38 = vshrl.u32 %v5985_v25, 16  ;;  %v2505_v39 = vshll.u32 %v5985_v25, 16  ;;  %v2476_v41 = vsel %vm7401_vm4, %v2471_v31, %v2475_v23  ;;  %v5994_v22 = vld [vmem:[%s7354_s28 + $0x60] sm:$0xf]  ;;  %v5995_v27 = vld [vmem:[%s7354_s28 + $0x64] sm:$0xf] }
  0x25   : > { %6560 = vmatmul.mubr.msk.bf16.gmra.mrb[8].mxu1 %vm323_vm1, %v7217_v60  ;;  %6720 = vmatpush3.bf16.msra.mxu0 %v7373_v12  ;;  %v2493_v42 = vrot.slane %v2491_v33, 4  ;;  %v2499_v44 = vrot.slane %v2497_v34, 5  ;;  %v2511_v45 = vshll.u32 %v5986_v30, 16  ;;  %v6024_v47 = vcombine.low %v2466_v35, %v2476_v41 }
  0x26   : > { %6563 = vmatprep.mubr.msk.bf16.mxu1 %vm323_vm1, %v7218_v7  ;;  %v2485_v48 = vrot.slane %v2484_v36, 4  ;;  %v2504_v50 = vrot.slane %v2502_v38, 4  ;;  %v2507_v51 = vrot.slane %v2505_v39, 5  ;;  %7184 = vmatprep.subr.msk.bf16.mxu0 %vm372_vm0, %v7359_v6  ;;  %v2515_v12 = vshrl.u32 %v5986_v30, 16  ;;  %v7221_v30 = vld [vmem:[%s7354_s28 + $0x6c] sm:$0xff]   ;;  %v7222_v38 = vld [vmem:[%s7354_s28 + $0x78] sm:$0xff]  }
  0x27   : > { %v2494_v53 = vor.u32 %v2493_v42, %v2489_v32  ;;  %v2513_v54 = vrot.slane %v2511_v45, 5  ;;  %v2521_v55 = vshll.u32 %v5987_v37, 16  ;;  %6691 = vmatprep.mubr.msk.bf16.mxu0 %vm323_vm1, %v6024_v47  ;;  %v2526_v59 = vshrl.u32 %v5988_v40, 16  ;;  %v5996_v37 = vld [vmem:[%s7354_s28 + $0x68] sm:$0x1] }
  0x28   : > { %v2490_v57 = vsel %vm7401_vm4, %v2485_v48, %v2489_v32  ;;  %v2508_v58 = vor.u32 %v2507_v51, %v2504_v50  ;;  %v2529_v60 = vshll.u32 %v5988_v40, 16  ;;  %v2517_v62 = vrot.slane %v2515_v12, 4 }
  0x29   : > { %v2495_v61 = vrot.slane %v2494_v53, 4  ;;  %v2523_v63 = vrot.slane %v2521_v55, 5  ;;  %v2535_v0 = vshll.u32 %v5989_v46, 16  ;;  %v2528_v1 = vrot.slane %v2526_v59, 4  ;;  %v6058_v59 = vld [vmem:[%s7354_s28 + $0x1c] sm:$0xf] }
  0x2a   : > { %v2509_v6 = vrot.slane %v2508_v58, 4  ;;  %v2531_v2 = vrot.slane %v2529_v60, 5  ;;  %v2539_v3 = vshrl.u32 %v5989_v46, 16  ;;  %v2518_v9 = vor.u32 %v2517_v62, %v2513_v54  ;;  %v6057_v58 = vld [vmem:[%s7354_s28 + $0x18] sm:$0xe] }
  0x2b   : > { %v2500_v7 = vsel %vm7401_vm4, %v2495_v61, %v2499_v44  ;;  %v2537_v10 = vrot.slane %v2535_v0, 5  ;;  %v2545_v11 = vshll.u32 %v5990_v52, 16  ;;  %v2550_v25 = vshrl.u32 %v5991_v5, 16  ;;  %v6054_v44 = vld [vmem:[%s7354_s28 + $0xc] sm:$0xe] }
  0x2c   : > { %v6025_v17 = vcombine.low %v2490_v57, %v2500_v7  ;;  %v2514_v18 = vsel %vm7401_vm4, %v2509_v6, %v2513_v54  ;;  %v2532_v19 = vor.u32 %v2531_v2, %v2528_v1  ;;  %v2541_v20 = vrot.slane %v2539_v3, 4  ;;  %v6056_v54 = vld [vmem:[%s7354_s28 + $0x14] sm:$0x1]  ;;  %v6059_v6 = vld [vmem:[%s7354_s28 + $0x20] sm:$0x1]  ;;  %v7223_v3 = vld [vmem:[%s7354_s28 + $0x84] sm:$0xff]  }
  0x2d   : > { %6564 = vmatmul.mubr.msk.bf16.gmra.mrb[12].mxu1 %vm323_vm1, %v7219_v49  ;;  %v2519_v23 = vrot.slane %v2518_v9, 4  ;;  %v2547_v24 = vrot.slane %v2545_v11, 5  ;;  %v2553_v26 = vshll.u32 %v5991_v5, 16  ;;  %v2559_v31 = vshll.u32 %v5992_v13, 16  ;;  %v6055_v49 = vld [vmem:[%s7354_s28 + $0x10] sm:$0xf] }
  0x2e   : > { %6567 = vmatprep.mubr.msk.bf16.mxu1 %vm323_vm1, %v7220_v56  ;;  %6692 = vmatmul.mubr.msk.bf16.gmra.mrb[4].mxu0 %vm323_vm1, %v6025_v17  ;;  %v2533_v28 = vrot.slane %v2532_v19, 4  ;;  %v2542_v29 = vor.u32 %v2541_v20, %v2537_v10  ;;  %v2563_v32 = vshrl.u32 %v5992_v13, 16  ;;  %v2552_v34 = vrot.slane %v2550_v25, 4 }
  0x2f   : > { %v2524_v33 = vsel %vm7401_vm4, %v2519_v23, %v2523_v63  ;;  %v2555_v35 = vrot.slane %v2553_v26, 5  ;;  %v2569_v36 = vshll.u32 %v5993_v21, 16  ;;  %v2561_v42 = vrot.slane %v2559_v31, 5  ;;  %v6060_v21 = vld [vmem:[%s7354_s28 + $0x24] sm:$0xe]  ;;  %v7224_v26 = vld [vmem:[%s7354_s28 + $0x90] sm:$0xff]  }
  0x30   : > { %v6026_v39 = vcombine.low %v2514_v18, %v2524_v33  ;;  %v2538_v40 = vsel %vm7401_vm4, %v2533_v28, %v2537_v10  ;;  %v2543_v41 = vrot.slane %v2542_v29, 4  ;;  %v2565_v46 = vrot.slane %v2563_v32, 4 }
  0x31   : > { %v2556_v45 = vor.u32 %v2555_v35, %v2552_v34  ;;  %v2571_v47 = vrot.slane %v2569_v36, 5  ;;  %v2574_v48 = vshrl.u32 %v5994_v22, 16  ;;  %v2577_v51 = vshll.u32 %v5994_v22, 16  ;;  %v6063_v36 = vld [vmem:[%s7354_s28 + $0x30] sm:$0xe] }
  0x32   : > { %6695 = vmatprep.mubr.msk.bf16.mxu0 %vm323_vm1, %v6026_v39  ;;  %v2548_v50 = vsel %vm7401_vm4, %v2543_v41, %v2547_v24  ;;  %v2583_v52 = vshll.u32 %v5995_v27, 16  ;;  %v2587_v53 = vshrl.u32 %v5995_v27, 16  ;;  %v2566_v56 = vor.u32 %v2565_v46, %v2561_v42  ;;  %v6061_v27 = vld [vmem:[%s7354_s28 + $0x28] sm:$0xf] }
  0x33   : > { %v6027_v12 = vcombine.low %v2538_v40, %v2548_v50  ;;  %v2557_v55 = vrot.slane %v2556_v45, 4  ;;  %v2576_v57 = vrot.slane %v2574_v48, 4  ;;  %v2579_v60 = vrot.slane %v2577_v51, 5  ;;  %v6066_v50 = vld [vmem:[%s7354_s28 + $0x3c] sm:$0xe] }
  0x34   : > { %v2585_v61 = vrot.slane %v2583_v52, 5  ;;  %v2589_v62 = vrot.slane %v2587_v53, 4  ;;  %v2593_v63 = vshll.u32 %v5996_v37, 16  ;;  %v2567_v2 = vrot.slane %v2566_v56, 4  ;;  %v6064_v37 = vld [vmem:[%s7354_s28 + $0x34] sm:$0xf] }
  0x35   : > { %6568 = vmatmul.mubr.msk.bf16.gmra.mrb[16].mxu1 %vm323_vm1, %v7221_v30  ;;  %v2562_v1 = vsel %vm7401_vm4, %v2557_v55, %v2561_v42  ;;  %v6102_v5 = vrot.slane %v6054_v44, 9  ;;  %v3245_v7 = vrot.slane %v6055_v49, 5  ;;  %v2580_v9 = vor.u32 %v2579_v60, %v2576_v57  ;;  %v6062_v30 = vld [vmem:[%s7354_s28 + $0x2c] sm:$0x1]  ;;  %v6067_v51 = vld [vmem:[%s7354_s28 + $0x40] sm:$0xf] }
  0x36   : > { %6571 = vmatprep.mubr.msk.bf16.mxu1 %vm323_vm1, %v7222_v38  ;;  %6696 = vmatmul.mubr.msk.bf16.gmra.mrb[8].mxu0 %vm323_vm1, %v6027_v12  ;;  %v2590_v10 = vor.u32 %v2589_v62, %v2585_v61  ;;  %v2595_v11 = vrot.slane %v2593_v63, 5  ;;  %v3248_v13 = vrot.slane %v6056_v54, 5  ;;  %v2572_v17 = vsel %vm7401_vm4, %v2567_v2, %v2571_v47  ;;  %v6065_v38 = vld [vmem:[%s7354_s28 + $0x38] sm:$0x1]  ;;  %v7225_v52 = vld [vmem:[%s7354_s28 + $0x9c] sm:$0xff]  }
  0x37   : > { %v3246_v18 = vsel %vm7476_vm7, %v6102_v5, %v3245_v7  ;;  %v3247_v19 = vrot.slane %v3245_v7, 4  ;;  %v6103_v20 = vrot.slane %v6057_v58, 9  ;;  %v6028_v22 = vcombine.low %v2562_v1, %v2572_v17  ;;  %v6068_v55 = vld [vmem:[%s7354_s28 + $0x44] sm:$0x1]  ;;  %v6069_v56 = vld [vmem:[%s7354_s28 + $0x48] sm:$0xe] }
  0x38   : > { %v2581_v23 = vrot.slane %v2580_v9, 4  ;;  %v2591_v24 = vrot.slane %v2590_v10, 4  ;;  %v3252_v25 = vrot.slane %v6058_v59, 5  ;;  %v3255_v29 = vrot.slane %v6059_v6, 5  ;;  %v7226_v58 = vld [vmem:[%s7354_s28 + $0xa8] sm:$0xff]  }
  0x39   : > { %v3249_v28 = vsel %vm7476_vm7, %v3247_v19, %v3248_v13  ;;  %v6104_v31 = vrot.slane %v6060_v21, 9  ;;  %v3259_v32 = vrot.slane %v6061_v27, 5  ;;  %6699 = vmatprep.mubr.msk.bf16.mxu0 %vm323_vm1, %v6028_v22  ;;  %v3262_v44 = vrot.slane %v6062_v30, 5  ;;  %v6070_v62 = vld [vmem:[%s7354_s28 + $0x4c] sm:$0xf] }
  0x3a   : > { %v2586_v33 = vsel %vm7401_vm4, %v2581_v23, %v2585_v61  ;;  %v2596_v34 = vsel %vm7401_vm4, %v2591_v24, %v2595_v11  ;;  %v6119_v35 = vcombine.low %v3246_v18, %v3249_v28  ;;  %v3253_v40 = vsel %vm7476_vm7, %v6103_v20, %v3252_v25  ;;  %v6071_v1 = vld [vmem:[%s7354_s28 + $0x50] sm:$0x1]  ;;  %v569_v5 = vld [vmem:[%s7354_s28] sm:$0xf]  ;;  %v570_v13 = vld [vmem:[%s7354_s28 + $0x4] sm:$0xf] }
  0x3b   : > { %v6029_v39 = vcombine.low %v2586_v33, %v2596_v34  ;;  %v3254_v41 = vrot.slane %v3252_v25, 4  ;;  %v3261_v42 = vrot.slane %v3259_v32, 4  ;;  %v6105_v45 = vrot.slane %v6063_v36, 9  ;;  %v571_v17 = vld [vmem:[%s7354_s28 + $0x8] sm:$0x1] }
  0x3c   : > { %v3266_v46 = vrot.slane %v6064_v37, 5  ;;  %v3269_v47 = vrot.slane %v6065_v38, 5  ;;  %v3260_v49 = vsel %vm7476_vm7, %v6104_v31, %v3259_v32  ;;  %v6106_v59 = vrot.slane %v6066_v50, 9  ;;  %v572_v22 = vld [vmem:[%s7354_s28 + $0xc] sm:$0xf] }
  0x3d   : > { %6572 = vmatmul.mubr.msk.bf16.gmra.mrb[20].mxu1 %vm323_vm1, %v7223_v3  ;;  %v3256_v48 = vsel %vm7476_vm7, %v3254_v41, %v3255_v29  ;;  %v3263_v53 = vsel %vm7476_vm7, %v3261_v42, %v3262_v44  ;;  %v3273_v60 = vrot.slane %v6067_v51, 5  ;;  %v3276_v61 = vrot.slane %v6068_v55, 5  ;;  %v573_v27 = vld [vmem:[%s7354_s28 + $0x10] sm:$0xf]  ;;  %v574_v32 = vld [vmem:[%s7354_s28 + $0x14] sm:$0x1] }
  0x3e   : > { %6575 = vmatprep.mubr.msk.bf16.mxu1 %vm323_vm1, %v7224_v26  ;;  %6700 = vmatmul.mubr.msk.bf16.gmra.mrb[12].mxu0 %vm323_vm1, %v6029_v39  ;;  %v7519_v54 = vsel %vm7476_vm7, %v6105_v45, %v3266_v46  ;;  %v3268_v12 = vrot.slane %v3266_v46, 4  ;;  %v6120_v57 = vcombine.low %v3253_v40, %v3256_v48  ;;  %v6121_v63 = vcombine.low %v3260_v49, %v3263_v53  ;;  %v6072_v33 = vld [vmem:[%s7354_s28 + $0x54] sm:$0xe]  ;;  %v6073_v38 = vld [vmem:[%s7354_s28 + $0x58] sm:$0xf] }
  0x3f   : > { %6721 = vmatprep.mubr.msk.bf16.mxu0 %vm323_vm1, %v6119_v35  ;;  %v6107_v2 = vrot.slane %v6069_v56, 9  ;;  %v3280_v3 = vrot.slane %v6070_v62, 5  ;;  %v7536_v9 = vsel %vm7476_vm7, %v6106_v59, %v3273_v60  ;;  %v3275_v10 = vrot.slane %v3273_v60, 4  ;;  %v6074_v44 = vld [vmem:[%s7354_s28 + $0x5c] sm:$0x1]  ;;  %v7227_v45 = vld [vmem:[%s7354_s28 + $0xb4] sm:$0xff]  }
  0x40   : > { %v7528_v6 = vsel %vm7476_vm7, %v3268_v12, %v3269_v47  ;;  %v3283_v11 = vrot.slane %v6071_v1, 5  ;;  %v621_v20 = vshrl.u32 %v569_v5, 16  ;;  %v624_v21 = vshll.u32 %v569_v5, 16  ;;  %v6075_v50 = vld [vmem:[%s7354_s28 + $0x60] sm:$0xe] }
  0x41   : > { %v6122_v7 = vcombine.low %v7519_v54, %v7528_v6  ;;  %v7542_v18 = vsel %vm7476_vm7, %v6107_v2, %v3280_v3  ;;  %v3282_v19 = vrot.slane %v3280_v3, 4  ;;  %v7548_v23 = vsel %vm7476_vm7, %v3275_v10, %v3276_v61  ;;  %v6076_v55 = vld [vmem:[%s7354_s28 + $0x64] sm:$0xf]  ;;  %v6077_v59 = vld [vmem:[%s7354_s28 + $0x68] sm:$0x1] }
  0x42   : > { %v630_v24 = vshll.u32 %v570_v13, 16  ;;  %v634_v25 = vshrl.u32 %v570_v13, 16  ;;  %v640_v26 = vshll.u32 %v571_v17, 16  ;;  %v6123_v28 = vcombine.low %v7536_v9, %v7548_v23  ;;  %v575_v1 = vld [vmem:[%s7354_s28 + $0x18] sm:$0xf] }
  0x43   : > { %v7556_v29 = vsel %vm7476_vm7, %v3282_v19, %v3283_v11  ;;  %v623_v30 = vrot.slane %v621_v20, 4  ;;  %v626_v31 = vrot.slane %v624_v21, 5  ;;  %v645_v40 = vshrl.u32 %v572_v22, 16  ;;  %v576_v19 = vld [vmem:[%s7354_s28 + $0x1c] sm:$0xf] }
  0x44   : > { %v6124_v34 = vcombine.low %v7542_v18, %v7556_v29  ;;  %v632_v35 = vrot.slane %v630_v24, 5  ;;  %v636_v36 = vrot.slane %v634_v25, 4  ;;  %v642_v37 = vrot.slane %v640_v26, 5  ;;  %v580_v9 = vld [vmem:[%s7354_s28 + $0x2c] sm:$0x1] }
  0x45   : > { %6576 = vmatmul.mubr.msk.bf16.gmra.mrb[24].mxu1 %vm323_vm1, %v7225_v52  ;;  %v627_v39 = vor.u32 %v626_v31, %v623_v30  ;;  %v648_v41 = vshll.u32 %v572_v22, 16  ;;  %v654_v42 = vshll.u32 %v573_v27, 16  ;;  %v658_v47 = vshrl.u32 %v573_v27, 16  ;;  %v577_v22 = vld [vmem:[%s7354_s28 + $0x20] sm:$0x1] }
  0x46   : > { %6579 = vmatprep.mubr.msk.bf16.mxu1 %vm323_vm1, %v7226_v58  ;;  %6722 = vmatmul.mubr.msk.bf16.vlgmr.msra.gmra.mrb[0].mxu0 %vm323_vm1, %v6120_v57  ;;  %v637_v46 = vor.u32 %v636_v36, %v632_v35  ;;  %v664_v48 = vshll.u32 %v574_v32, 16  ;;  %v6108_v49 = vrot.slane %v6072_v33, 9  ;;  %v647_v52 = vrot.slane %v645_v40, 4  ;;  %v578_v32 = vld [vmem:[%s7354_s28 + $0x24] sm:$0xf] }
  0x47   : > { %6754 = vmatpush3.bf16.msra.mxu0 %v7379_v14  ;;  %6725 = vmatprep.mubr.msk.bf16.mxu0 %vm323_vm1, %v6121_v63  ;;  %v628_v51 = vrot.slane %v627_v39, 4  ;;  %v650_v53 = vrot.slane %v648_v41, 5  ;;  %v656_v12 = vrot.slane %v654_v42, 5  ;;  %v660_v14 = vrot.slane %v658_v47, 4  ;;  %v6078_v23 = vld [vmem:[%s7354_s28 + $0x6c] sm:$0xe] }
  0x48   : > { %7185 = vmatprep.subr.msk.bf16.mxu0 %vm372_vm0, %v7367_v8  ;;  %v638_v56 = vrot.slane %v637_v46, 4  ;;  %v666_v57 = vrot.slane %v664_v48, 5  ;;  %v3287_v58 = vrot.slane %v6073_v38, 5  ;;  %v3290_v62 = vrot.slane %v6074_v44, 5  ;;  %v6079_v44 = vld [vmem:[%s7354_s28 + $0x70] sm:$0xf] }
  0x49   : > { %v633_v60 = vsel %vm7401_vm4, %v628_v51, %v632_v35  ;;  %v651_v61 = vor.u32 %v650_v53, %v647_v52  ;;  %v6109_v63 = vrot.slane %v6075_v50, 9  ;;  %v661_v8 = vor.u32 %v660_v14, %v656_v12  ;;  %v579_v35 = vld [vmem:[%s7354_s28 + $0x28] sm:$0xf]  ;;  %v6081_v50 = vld [vmem:[%s7354_s28 + $0x78] sm:$0xe] }
  0x4a   : > { %v643_v2 = vsel %vm7401_vm4, %v638_v56, %v642_v37  ;;  %v7581_v3 = vsel %vm7476_vm7, %v6108_v49, %v3287_v58  ;;  %v3289_v5 = vrot.slane %v3287_v58, 4  ;;  %v3294_v13 = vrot.slane %v6076_v55, 5  ;;  %v6082_v55 = vld [vmem:[%s7354_s28 + $0x7c] sm:$0xf] }
  0x4b   : > { %v5827_v10 = vcombine.low %v633_v60, %v643_v2  ;;  %v652_v11 = vrot.slane %v651_v61, 4  ;;  %v3297_v17 = vrot.slane %v6077_v59, 5  ;;  %v662_v20 = vrot.slane %v661_v8, 4  ;;  %v6083_v59 = vld [vmem:[%s7354_s28 + $0x80] sm:$0x1] }
  0x4c   : > { %v3291_v21 = vsel %vm7476_vm7, %v3289_v5, %v3290_v62  ;;  %v669_v24 = vshrl.u32 %v575_v1, 16  ;;  %v672_v25 = vshll.u32 %v575_v1, 16  ;;  %v7597_v30 = vsel %vm7476_vm7, %v6109_v63, %v3294_v13  ;;  %v581_v1 = vld [vmem:[%s7354_s28 + $0x30] sm:$0xf] }
  0x4d   : > { %6580 = vmatmul.mubr.msk.bf16.gmra.mrb[28].mxu1 %vm323_vm1, %v7227_v45  ;;  %v657_v26 = vsel %vm7401_vm4, %v652_v11, %v656_v12  ;;  %v6125_v27 = vcombine.low %v7581_v3, %v3291_v21  ;;  %v3296_v31 = vrot.slane %v3294_v13, 4  ;;  %v667_v54 = vsel %vm7401_vm4, %v662_v20, %v666_v57  ;;  %v6080_v45 = vld [vmem:[%s7354_s28 + $0x74] sm:$0x1] }
  0x4e   : > { %6726 = vmatmul.mubr.msk.bf16.gmra.mrb[4].mxu0 %vm323_vm1, %v6122_v7  ;;  %6585 = vmatprep.mubr.msk.bf16.mxu1 %vm323_vm1, %v5827_v10  ;;  %v671_v6 = vrot.slane %v669_v24, 4  ;;  %v674_v7 = vrot.slane %v672_v25, 5  ;;  %v678_v33 = vshll.u32 %v576_v19, 16  ;;  %v5828_v36 = vcombine.low %v657_v26, %v667_v54  ;;  %v583_v25 = vld [vmem:[%s7354_s28 + $0x38] sm:$0x1] }
  0x4f   : > { %6729 = vmatprep.mubr.msk.bf16.mxu0 %vm323_vm1, %v6123_v28  ;;  %v7609_v37 = vsel %vm7476_vm7, %v3296_v31, %v3297_v17  ;;  %v682_v38 = vshrl.u32 %v576_v19, 16  ;;  %v688_v39 = vshll.u32 %v577_v22, 16  ;;  %v693_v42 = vshrl.u32 %v578_v32, 16  ;;  %v584_v26 = vld [vmem:[%s7354_s28 + $0x3c] sm:$0xf] }
  0x50   : > { %v6126_v28 = vcombine.low %v7597_v30, %v7609_v37  ;;  %v675_v40 = vor.u32 %v674_v7, %v671_v6  ;;  %v680_v41 = vrot.slane %v678_v33, 5  ;;  %v696_v48 = vshll.u32 %v578_v32, 16 }
  0x51   : > { %v684_v46 = vrot.slane %v682_v38, 4  ;;  %v690_v47 = vrot.slane %v688_v39, 5  ;;  %v702_v49 = vshll.u32 %v579_v35, 16  ;;  %v695_v52 = vrot.slane %v693_v42, 4 }
  0x52   : > { %v676_v51 = vrot.slane %v675_v40, 4  ;;  %v706_v53 = vshrl.u32 %v579_v35, 16  ;;  %v712_v12 = vshll.u32 %v580_v9, 16  ;;  %v698_v14 = vrot.slane %v696_v48, 5 }
  0x53   : > { %v685_v56 = vor.u32 %v684_v46, %v680_v41  ;;  %v704_v57 = vrot.slane %v702_v49, 5  ;;  %v6110_v58 = vrot.slane %v6078_v23, 9  ;;  %v3301_v63 = vrot.slane %v6079_v44, 5  ;;  %v586_v23 = vld [vmem:[%s7354_s28 + $0x44] sm:$0x1] }
  0x54   : > { %v681_v60 = vsel %vm7401_vm4, %v676_v51, %v680_v41  ;;  %v708_v61 = vrot.slane %v706_v53, 4  ;;  %v714_v62 = vrot.slane %v712_v12, 5  ;;  %v3304_v8 = vrot.slane %v6080_v45, 5  ;;  %v6084_v41 = vld [vmem:[%s7354_s28 + $0x84] sm:$0xe] }
  0x55   : > { %6586 = vmatmul.mubr.msk.bf16.vlgmr.msra.gmra.mrb[0].mxu1 %vm323_vm1, %v5828_v36  ;;  %v686_v2 = vrot.slane %v685_v56, 4  ;;  %v6111_v3 = vrot.slane %v6081_v50, 9  ;;  %v3302_v10 = vsel %vm7476_vm7, %v6110_v58, %v3301_v63  ;;  %v3303_v11 = vrot.slane %v3301_v63, 4  ;;  %v585_v36 = vld [vmem:[%s7354_s28 + $0x40] sm:$0xf] }
  0x56   : > { %6618 = vmatpush3.bf16.msra.mxu1 %v7383_v15  ;;  %6730 = vmatmul.mubr.msk.bf16.gmra.mrb[8].mxu0 %vm323_vm1, %v6124_v34  ;;  %v699_v15 = vor.u32 %v698_v14, %v695_v52  ;;  %v709_v5 = vor.u32 %v708_v61, %v704_v57  ;;  %v3308_v13 = vrot.slane %v6082_v55, 5  ;;  %v3311_v29 = vrot.slane %v6083_v59, 5  ;;  %v582_v34 = vld [vmem:[%s7354_s28 + $0x34] sm:$0xf]  ;;  %v6086_v56 = vld [vmem:[%s7354_s28 + $0x8c] sm:$0x1] }
  0x57   : > { %6733 = vmatprep.mubr.msk.bf16.mxu0 %vm323_vm1, %v6125_v27  ;;  %v691_v17 = vsel %vm7401_vm4, %v686_v2, %v690_v47  ;;  %v717_v19 = vshrl.u32 %v581_v1, 16  ;;  %v3305_v22 = vsel %vm7476_vm7, %v3303_v11, %v3304_v8  ;;  %v720_v7 = vshll.u32 %v581_v1, 16  ;;  %v6085_v47 = vld [vmem:[%s7354_s28 + $0x88] sm:$0xf]  ;;  %v6089_v8 = vld [vmem:[%s7354_s28 + $0x98] sm:$0x1] }
  0x58   : > { %v700_v18 = vrot.slane %v699_v15, 4  ;;  %v5829_v20 = vcombine.low %v681_v60, %v691_v17  ;;  %v710_v21 = vrot.slane %v709_v5, 4  ;;  %v7639_v24 = vsel %vm7476_vm7, %v6111_v3, %v3308_v13  ;;  %v587_v3 = vld [vmem:[%s7354_s28 + $0x48] sm:$0xf] }
  0x59   : > { %v6127_v31 = vcombine.low %v3302_v10, %v3305_v22  ;;  %v3310_v32 = vrot.slane %v3308_v13, 4  ;;  %v719_v54 = vrot.slane %v717_v19, 4  ;;  %v726_v33 = vshll.u32 %v582_v34, 16  ;;  %v588_v19 = vld [vmem:[%s7354_s28 + $0x4c] sm:$0xf] }
  0x5a   : > { %v705_v27 = vsel %vm7401_vm4, %v700_v18, %v704_v57  ;;  %6589 = vmatprep.mubr.msk.bf16.mxu1 %vm323_vm1, %v5829_v20  ;;  %v715_v6 = vsel %vm7401_vm4, %v710_v21, %v714_v62  ;;  %v730_v35 = vshrl.u32 %v582_v34, 16  ;;  %v736_v9 = vshll.u32 %v583_v25, 16  ;;  %v6087_v57 = vld [vmem:[%s7354_s28 + $0x90] sm:$0xe]  ;;  %v6088_v62 = vld [vmem:[%s7354_s28 + $0x94] sm:$0xf] }
  0x5b   : > { %v5830_v38 = vcombine.low %v705_v27, %v715_v6  ;;  %v3312_v39 = vsel %vm7476_vm7, %v3310_v32, %v3311_v29  ;;  %v741_v40 = vshrl.u32 %v584_v26, 16  ;;  %v722_v44 = vrot.slane %v720_v7, 5 }
  0x5c   : > { %v6128_v42 = vcombine.low %v7639_v24, %v3312_v39  ;;  %v728_v45 = vrot.slane %v726_v33, 5  ;;  %v732_v46 = vrot.slane %v730_v35, 4  ;;  %v738_v48 = vrot.slane %v736_v9, 5  ;;  %v589_v24 = vld [vmem:[%s7354_s28 + $0x50] sm:$0x1] }
  0x5d   : > { %6590 = vmatmul.mubr.msk.bf16.gmra.mrb[4].mxu1 %vm323_vm1, %v5830_v38  ;;  %v743_v49 = vrot.slane %v741_v40, 4  ;;  %v744_v50 = vshll.u32 %v584_v26, 16  ;;  %v750_v51 = vshll.u32 %v585_v36, 16  ;;  %v723_v52 = vor.u32 %v722_v44, %v719_v54  ;;  %v590_v54 = vld [vmem:[%s7354_s28 + $0x54] sm:$0xf] }
  0x5e   : > { %6734 = vmatmul.mubr.msk.bf16.gmra.mrb[12].mxu0 %vm323_vm1, %v6126_v28  ;;  %v733_v53 = vor.u32 %v732_v46, %v728_v45  ;;  %v754_v12 = vshrl.u32 %v585_v36, 16  ;;  %v760_v55 = vshll.u32 %v586_v23, 16  ;;  %v6112_v28 = vrot.slane %v6084_v41, 9  ;;  %v591_v36 = vld [vmem:[%s7354_s28 + $0x58] sm:$0xf] }
  0x5f   : > { %6737 = vmatprep.mubr.msk.bf16.mxu0 %vm323_vm1, %v6127_v31  ;;  %v746_v30 = vrot.slane %v744_v50, 5  ;;  %v752_v37 = vrot.slane %v750_v51, 5  ;;  %v3315_v14 = vrot.slane %v6085_v47, 5  ;;  %v724_v58 = vrot.slane %v723_v52, 4  ;;  %v592_v40 = vld [vmem:[%s7354_s28 + $0x5c] sm:$0x1] }
  0x60   : > { %v734_v59 = vrot.slane %v733_v53, 4  ;;  %v756_v60 = vrot.slane %v754_v12, 4  ;;  %v762_v61 = vrot.slane %v760_v55, 5  ;;  %v3318_v15 = vrot.slane %v6086_v56, 5  ;;  %v6090_v41 = vld [vmem:[%s7354_s28 + $0x9c] sm:$0xe] }
  0x61   : > { %v747_v63 = vor.u32 %v746_v30, %v743_v49  ;;  %v3316_v1 = vsel %vm7476_vm7, %v6112_v28, %v3315_v14  ;;  %v3317_v2 = vrot.slane %v3315_v14, 4  ;;  %v729_v5 = vsel %vm7401_vm4, %v724_v58, %v728_v45  ;;  %v6091_v47 = vld [vmem:[%s7354_s28 + $0xa0] sm:$0xf]  ;;  %v6092_v52 = vld [vmem:[%s7354_s28 + $0xa4] sm:$0x1] }
  0x62   : > { %v739_v10 = vsel %vm7401_vm4, %v734_v59, %v738_v48  ;;  %v757_v11 = vor.u32 %v756_v60, %v752_v37  ;;  %v6113_v13 = vrot.slane %v6087_v57, 9  ;;  %v3322_v34 = vrot.slane %v6088_v62, 5  ;;  %v6093_v30 = vld [vmem:[%s7354_s28 + $0xa8] sm:$0xe]  ;;  %v6094_v58 = vld [vmem:[%s7354_s28 + $0xac] sm:$0xf] }
  0x63   : > { %v5831_v17 = vcombine.low %v729_v5, %v739_v10  ;;  %v748_v18 = vrot.slane %v747_v63, 4  ;;  %v3319_v29 = vsel %vm7476_vm7, %v3317_v2, %v3318_v15  ;;  %v3325_v22 = vrot.slane %v6089_v8, 5  ;;  %v6095_v63 = vld [vmem:[%s7354_s28 + $0xb0] sm:$0x1]  ;;  %v594_v5 = vld [vmem:[%s7354_s28 + $0x64] sm:$0xf] }
  0x64   : > { %v758_v20 = vrot.slane %v757_v11, 4  ;;  %v6129_v21 = vcombine.low %v3316_v1, %v3319_v29  ;;  %v765_v25 = vshrl.u32 %v587_v3, 16  ;;  %v3323_v27 = vsel %vm7476_vm7, %v6113_v13, %v3322_v34 }
  0x65   : > { %6593 = vmatprep.mubr.msk.bf16.mxu1 %vm323_vm1, %v5831_v17  ;;  %v753_v26 = vsel %vm7401_vm4, %v748_v18, %v752_v37  ;;  %v3324_v31 = vrot.slane %v3322_v34, 4  ;;  %v768_v32 = vshll.u32 %v587_v3, 16  ;;  %v774_v33 = vshll.u32 %v588_v19, 16  ;;  %v593_v3 = vld [vmem:[%s7354_s28 + $0x60] sm:$0xf] }
  0x66   : > { %6738 = vmatmul.mubr.msk.bf16.gmra.mrb[16].mxu0 %vm323_vm1, %v6128_v42  ;;  %v763_v6 = vsel %vm7401_vm4, %v758_v20, %v762_v61  ;;  %v767_v7 = vrot.slane %v765_v25, 4  ;;  %v778_v35 = vshrl.u32 %v588_v19, 16  ;;  %v784_v23 = vshll.u32 %v589_v24, 16  ;;  %v595_v18 = vld [vmem:[%s7354_s28 + $0x68] sm:$0x1] }
  0x67   : > { %6741 = vmatprep.mubr.msk.bf16.mxu0 %vm323_vm1, %v6129_v21  ;;  %v5832_v38 = vcombine.low %v753_v26, %v763_v6  ;;  %v3326_v39 = vsel %vm7476_vm7, %v3324_v31, %v3325_v22  ;;  %v770_v9 = vrot.slane %v768_v32, 5  ;;  %v776_v44 = vrot.slane %v774_v33, 5  ;;  %v596_v21 = vld [vmem:[%s7354_s28 + $0x6c] sm:$0xf]  ;;  %v597_v6 = vld [vmem:[%s7354_s28 + $0x70] sm:$0xf] }
  0x68   : > { %v6130_v42 = vcombine.low %v3323_v27, %v3326_v39  ;;  %v780_v45 = vrot.slane %v778_v35, 4  ;;  %v789_v46 = vshrl.u32 %v590_v54, 16  ;;  %v786_v49 = vrot.slane %v784_v23, 5 }
  0x69   : > { %6594 = vmatmul.mubr.msk.bf16.gmra.mrb[8].mxu1 %vm323_vm1, %v5832_v38  ;;  %v771_v48 = vor.u32 %v770_v9, %v767_v7  ;;  %v792_v50 = vshll.u32 %v590_v54, 16  ;;  %v798_v51 = vshll.u32 %v591_v36, 16  ;;  %v802_v55 = vshrl.u32 %v591_v36, 16  ;;  %v598_v38 = vld [vmem:[%s7354_s28 + $0x74] sm:$0x1] }
  0x6a   : > { %v781_v53 = vor.u32 %v780_v45, %v776_v44  ;;  %v791_v12 = vrot.slane %v789_v46, 4  ;;  %v808_v56 = vshll.u32 %v592_v40, 16  ;;  %v6114_v57 = vrot.slane %v6090_v41, 9  ;;  %v6096_v41 = vld [vmem:[%s7354_s28 + $0xb4] sm:$0xe] }
  0x6b   : > { %v772_v37 = vrot.slane %v771_v48, 4  ;;  %v794_v28 = vrot.slane %v792_v50, 5  ;;  %v800_v14 = vrot.slane %v798_v51, 5  ;;  %v804_v60 = vrot.slane %v802_v55, 4  ;;  %v6098_v48 = vld [vmem:[%s7354_s28 + $0xbc] sm:$0x1] }
  0x6c   : > { %v782_v59 = vrot.slane %v781_v53, 4  ;;  %v810_v61 = vrot.slane %v808_v56, 5  ;;  %v3329_v62 = vrot.slane %v6091_v47, 5  ;;  %v3332_v15 = vrot.slane %v6092_v52, 5 }
  0x6d   : > { %v777_v1 = vsel %vm7401_vm4, %v772_v37, %v776_v44  ;;  %v795_v2 = vor.u32 %v794_v28, %v791_v12  ;;  %v6115_v8 = vrot.slane %v6093_v30, 9  ;;  %v805_v11 = vor.u32 %v804_v60, %v800_v14  ;;  %v6100_v12 = vld [vmem:[%s7354_s28 + $0xc4] sm:$0xf]  ;;  %v6101_v28 = vld [vmem:[%s7354_s28 + $0xc8] sm:$0x1] }
  0x6e   : > { %6742 = vmatmul.mubr.msk.bf16.gmra.mrb[20].mxu0 %vm323_vm1, %v6130_v42  ;;  %v787_v10 = vsel %vm7401_vm4, %v782_v59, %v786_v49  ;;  %v3330_v13 = vsel %vm7476_vm7, %v6114_v57, %v3329_v62  ;;  %v3331_v17 = vrot.slane %v3329_v62, 4  ;;  %v3336_v19 = vrot.slane %v6094_v58, 5  ;;  %v6097_v42 = vld [vmem:[%s7354_s28 + $0xb8] sm:$0xf]  ;;  %v6099_v49 = vld [vmem:[%s7354_s28 + $0xc0] sm:$0xe] }
  0x6f   : > { %v5833_v29 = vcombine.low %v777_v1, %v787_v10  ;;  %v796_v34 = vrot.slane %v795_v2, 4  ;;  %v3339_v20 = vrot.slane %v6095_v63, 5  ;;  %v806_v22 = vrot.slane %v805_v11, 4 }
  0x70   : > { %v3333_v24 = vsel %vm7476_vm7, %v3331_v17, %v3332_v15  ;;  %v813_v25 = vshrl.u32 %v593_v3, 16  ;;  %v816_v26 = vshll.u32 %v593_v3, 16  ;;  %v3337_v32 = vsel %vm7476_vm7, %v6115_v8, %v3336_v19  ;;  %v600_v17 = vld [vmem:[%s7354_s28 + $0x7c] sm:$0xf] }
  0x71   : > { %6597 = vmatprep.mubr.msk.bf16.mxu1 %vm323_vm1, %v5833_v29  ;;  %v801_v27 = vsel %vm7401_vm4, %v796_v34, %v800_v14  ;;  %v6131_v31 = vcombine.low %v3330_v13, %v3333_v24  ;;  %v3338_v54 = vrot.slane %v3336_v19, 4  ;;  %v811_v7 = vsel %vm7401_vm4, %v806_v22, %v810_v61  ;;  %v599_v14 = vld [vmem:[%s7354_s28 + $0x78] sm:$0xf]  ;;  %v601_v19 = vld [vmem:[%s7354_s28 + $0x80] sm:$0x1] }
  0x72   : > { %v815_v33 = vrot.slane %v813_v25, 4  ;;  %v818_v35 = vrot.slane %v816_v26, 5  ;;  %v822_v36 = vshll.u32 %v594_v5, 16  ;;  %v5834_v39 = vcombine.low %v801_v27, %v811_v7  ;;  %v602_v26 = vld [vmem:[%s7354_s28 + $0x84] sm:$0xf] }
  0x73   : > { %6745 = vmatprep.mubr.msk.bf16.mxu0 %vm323_vm1, %v6131_v31  ;;  %v3340_v9 = vsel %vm7476_vm7, %v3338_v54, %v3339_v20  ;;  %v826_v23 = vshrl.u32 %v594_v5, 16  ;;  %v832_v40 = vshll.u32 %v595_v18, 16  ;;  %v837_v47 = vshrl.u32 %v596_v21, 16  ;;  %v603_v27 = vld [vmem:[%s7354_s28 + $0x88] sm:$0xf] }
  0x74   : > { %v6132_v44 = vcombine.low %v3337_v32, %v3340_v9  ;;  %v819_v45 = vor.u32 %v818_v35, %v815_v33  ;;  %v824_v46 = vrot.slane %v822_v36, 5  ;;  %6598 = vmatmul.mubr.msk.bf16.gmra.mrb[12].mxu1 %vm323_vm1, %v5834_v39  ;;  %v840_v52 = vshll.u32 %v596_v21, 16 }
  0x75   : > { %v828_v50 = vrot.slane %v826_v23, 4  ;;  %v834_v51 = vrot.slane %v832_v40, 5  ;;  %v846_v53 = vshll.u32 %v597_v6, 16  ;;  %v839_v56 = vrot.slane %v837_v47, 4  ;;  %v604_v40 = vld [vmem:[%s7354_s28 + $0x8c] sm:$0x1] }
  0x76   : > { %6746 = vmatmul.mubr.msk.bf16.gmra.mrb[24].mxu0 %vm323_vm1, %v6132_v44  ;;  %v820_v55 = vrot.slane %v819_v45, 4  ;;  %v850_v30 = vshrl.u32 %v597_v6, 16  ;;  %v856_v37 = vshll.u32 %v598_v38, 16  ;;  %v842_v58 = vrot.slane %v840_v52, 5  ;;  %v7228_v38 = vld [vmem:[%s7354_s28 + $0x18] sm:$0xff]  }
  0x77   : > { %v829_v57 = vor.u32 %v828_v50, %v824_v46  ;;  %v848_v59 = vrot.slane %v846_v53, 5  ;;  %v6116_v60 = vrot.slane %v6096_v41, 9  ;;  %v3343_v1 = vrot.slane %v6097_v42, 5  ;;  %v605_v47 = vld [vmem:[%s7354_s28 + $0x90] sm:$0xf] }
  0x78   : > { %v825_v61 = vsel %vm7401_vm4, %v820_v55, %v824_v46  ;;  %v852_v62 = vrot.slane %v850_v30, 4  ;;  %v858_v63 = vrot.slane %v856_v37, 5  ;;  %v843_v15 = vor.u32 %v842_v58, %v839_v56  ;;  %v606_v56 = vld [vmem:[%s7354_s28 + $0x94] sm:$0xf]  ;;  %v608_v58 = vld [vmem:[%s7354_s28 + $0x9c] sm:$0xf] }
  0x79   : > { %v830_v2 = vrot.slane %v829_v57, 4  ;;  %v3346_v8 = vrot.slane %v6098_v48, 5  ;;  %v6117_v3 = vrot.slane %v6099_v49, 9  ;;  %v3344_v10 = vsel %vm7476_vm7, %v6116_v60, %v3343_v1 }
  0x7a   : > { %v853_v5 = vor.u32 %v852_v62, %v848_v59  ;;  %v3345_v11 = vrot.slane %v3343_v1, 4  ;;  %v3350_v13 = vrot.slane %v6100_v12, 5  ;;  %v844_v29 = vrot.slane %v843_v15, 4  ;;  %v7766_v1 = vld [vmem:[%s8834_s1 + $0xc] sm:$0xf] }
  0x7b   : > { %v835_v18 = vsel %vm7401_vm4, %v830_v2, %v834_v51  ;;  %v3353_v34 = vrot.slane %v6101_v28, 5  ;;  %v861_v20 = vshrl.u32 %v599_v14, 16  ;;  %v864_v33 = vshll.u32 %v599_v14, 16  ;;  %v607_v28 = vld [vmem:[%s7354_s28 + $0x98] sm:$0x1]  ;;  %7180 = vmatprep.subr.msk.bf16.mxu1 %vm372_vm0, %v7766_v1 }
  0x7c   : > { %v5835_v21 = vcombine.low %v825_v61, %v835_v18  ;;  %v854_v22 = vrot.slane %v853_v5, 4  ;;  %v3347_v24 = vsel %vm7476_vm7, %v3345_v11, %v3346_v8  ;;  %v3351_v25 = vsel %vm7476_vm7, %v6117_v3, %v3350_v13 }
  0x7d   : > { %v849_v31 = vsel %vm7401_vm4, %v844_v29, %v848_v59  ;;  %v6133_v32 = vcombine.low %v3344_v10, %v3347_v24  ;;  %v3352_v54 = vrot.slane %v3350_v13, 4  ;;  %v863_v6 = vrot.slane %v861_v20, 4  ;;  %v7229_v13 = vld [vmem:[%s7354_s28 + $0x24] sm:$0xff]   ;;  %v7230_v20 = vld [vmem:[%s7354_s28 + $0x30] sm:$0xff]  }
  0x7e   : > { %6601 = vmatprep.mubr.msk.bf16.mxu1 %vm323_vm1, %v5835_v21  ;;  %v859_v7 = vsel %vm7401_vm4, %v854_v22, %v858_v63  ;;  %v870_v35 = vshll.u32 %v600_v17, 16  ;;  %v874_v36 = vshrl.u32 %v600_v17, 16  ;;  %v880_v23 = vshll.u32 %v601_v19, 16  ;;  %v609_v63 = vld [vmem:[%s7354_s28 + $0xa0] sm:$0xf] }
  0x7f   : > { %v5836_v39 = vcombine.low %v849_v31, %v859_v7  ;;  %6749 = vmatprep.mubr.msk.bf16.mxu0 %vm323_vm1, %v6133_v32  ;;  %v3354_v9 = vsel %vm7476_vm7, %v3352_v54, %v3353_v34  ;;  %v885_v41 = vshrl.u32 %v602_v26, 16  ;;  %v866_v44 = vrot.slane %v864_v33, 5 }
  0x80   : > { %v6134_v42 = vcombine.low %v3351_v25, %v3354_v9  ;;  %v872_v45 = vrot.slane %v870_v35, 5  ;;  %v876_v46 = vrot.slane %v874_v36, 4  ;;  %v882_v48 = vrot.slane %v880_v23, 5  ;;  %v610_v25 = vld [vmem:[%s7354_s28 + $0xa4] sm:$0x1] }
  0x81   : > { %6602 = vmatmul.mubr.msk.bf16.gmra.mrb[16].mxu1 %vm323_vm1, %v5836_v39  ;;  %v887_v49 = vrot.slane %v885_v41, 4  ;;  %v888_v50 = vshll.u32 %v602_v26, 16  ;;  %v894_v51 = vshll.u32 %v603_v27, 16  ;;  %v867_v52 = vor.u32 %v866_v44, %v863_v6  ;;  %v611_v6 = vld [vmem:[%s7354_s28 + $0xa8] sm:$0xf] }
  0x82   : > { %6750 = vmatmul.mubr.msk.bf16.gmra.mrb[28].mxu0 %vm323_vm1, %v6134_v42  ;;  %v877_v53 = vor.u32 %v876_v46, %v872_v45  ;;  %v898_v12 = vshrl.u32 %v603_v27, 16  ;;  %v904_v55 = vshll.u32 %v604_v40, 16  ;;  %v909_v14 = vshrl.u32 %v605_v47, 16  ;;  %v613_v41 = vld [vmem:[%s7354_s28 + $0xb0] sm:$0x1] }
  0x83   : > { %v890_v30 = vrot.slane %v888_v50, 5  ;;  %v896_v37 = vrot.slane %v894_v51, 5  ;;  %6755 = vmatprep.mubr.msk.bf16.mxu0 %vm323_vm1, %v7228_v38  ;;  %v912_v57 = vshll.u32 %v605_v47, 16  ;;  %v868_v59 = vrot.slane %v867_v52, 4  ;;  %v612_v38 = vld [vmem:[%s7354_s28 + $0xac] sm:$0xf] }
  0x84   : > { %v878_v60 = vrot.slane %v877_v53, 4  ;;  %v900_v61 = vrot.slane %v898_v12, 4  ;;  %v906_v62 = vrot.slane %v904_v55, 5  ;;  %v911_v15 = vrot.slane %v909_v14, 4  ;;  %v614_v42 = vld [vmem:[%s7354_s28 + $0xb4] sm:$0xf] }
  0x85   : > { %v891_v2 = vor.u32 %v890_v30, %v887_v49  ;;  %v914_v8 = vrot.slane %v912_v57, 5  ;;  %v918_v3 = vshll.u32 %v606_v56, 16  ;;  %v873_v5 = vsel %vm7401_vm4, %v868_v59, %v872_v45  ;;  %v7231_v55 = vld [vmem:[%s7354_s28 + $0x3c] sm:$0xff]  }
  0x86   : > { %v883_v10 = vsel %vm7401_vm4, %v878_v60, %v882_v48  ;;  %v901_v11 = vor.u32 %v900_v61, %v896_v37  ;;  %v922_v17 = vshrl.u32 %v606_v56, 16  ;;  %v928_v24 = vshll.u32 %v607_v28, 16  ;;  %v615_v48 = vld [vmem:[%s7354_s28 + $0xb8] sm:$0xf]  ;;  %v616_v57 = vld [vmem:[%s7354_s28 + $0xbc] sm:$0x1] }
  0x87   : > { %v5837_v18 = vcombine.low %v873_v5, %v883_v10  ;;  %v892_v29 = vrot.slane %v891_v2, 4  ;;  %v915_v34 = vor.u32 %v914_v8, %v911_v15  ;;  %v920_v19 = vrot.slane %v918_v3, 5  ;;  %v1363_v5 = vld [vmem:[%s7354_s28 + $0x4] sm:$0xf]  ;;  %v1364_v10 = vld [vmem:[%s7354_s28 + $0x8] sm:$0x1] }
  0x88   : > { %v902_v21 = vrot.slane %v901_v11, 4  ;;  %v924_v22 = vrot.slane %v922_v17, 4  ;;  %v933_v26 = vshrl.u32 %v608_v58, 16  ;;  %v936_v32 = vshll.u32 %v608_v58, 16  ;;  %v7232_v58 = vld [vmem:[%s7354_s28 + $0x48] sm:$0xff]  }
  0x89   : > { %6605 = vmatprep.mubr.msk.bf16.mxu1 %vm323_vm1, %v5837_v18  ;;  %v897_v27 = vsel %vm7401_vm4, %v892_v29, %v896_v37  ;;  %v916_v31 = vrot.slane %v915_v34, 4  ;;  %v942_v54 = vshll.u32 %v609_v63, 16  ;;  %v930_v35 = vrot.slane %v928_v24, 5  ;;  %v1365_v29 = vld [vmem:[%s7354_s28 + $0xc] sm:$0xe] }
  0x8a   : > { %v907_v7 = vsel %vm7401_vm4, %v902_v21, %v906_v62  ;;  %6756 = vmatmul.mubr.msk.bf16.vlgmr.msra.gmra.mrb[0].mxu0 %vm323_vm1, %v7229_v13  ;;  %v925_v33 = vor.u32 %v924_v22, %v920_v19  ;;  %v935_v36 = vrot.slane %v933_v26, 4  ;;  %v938_v23 = vrot.slane %v936_v32, 5  ;;  %v1366_v22 = vld [vmem:[%s7354_s28 + $0x10] sm:$0xf]  ;;  %v1367_v24 = vld [vmem:[%s7354_s28 + $0x14] sm:$0x1] }
  0x8b   : > { %v5838_v39 = vcombine.low %v897_v27, %v907_v7  ;;  %6788 = vmatpush3.bf16.msra.mxu0 %v7387_v16  ;;  %v921_v9 = vsel %vm7401_vm4, %v916_v31, %v920_v19  ;;  %v944_v40 = vrot.slane %v942_v54, 5  ;;  %6759 = vmatprep.mubr.msk.bf16.mxu0 %vm323_vm1, %v7230_v20  ;;  %v946_v45 = vshrl.u32 %v609_v63, 16  ;;  %v1362_v63 = vld [vmem:[%s7354_s28] sm:$0xe]  ;;  %v1368_v32 = vld [vmem:[%s7354_s28 + $0x18] sm:$0xe] }
  0x8c   : > { %v926_v44 = vrot.slane %v925_v33, 4  ;;  %v952_v46 = vshll.u32 %v610_v25, 16  ;;  %v957_v47 = vshrl.u32 %v611_v6, 16  ;;  %v939_v16 = vor.u32 %v938_v23, %v935_v36  ;;  %v1369_v36 = vld [vmem:[%s7354_s28 + $0x1c] sm:$0xf] }
  0x8d   : > { %6606 = vmatmul.mubr.msk.bf16.gmra.mrb[20].mxu1 %vm323_vm1, %v5838_v39  ;;  %v960_v49 = vshll.u32 %v611_v6, 16  ;;  %v966_v50 = vshll.u32 %v612_v38, 16  ;;  %v970_v51 = vshrl.u32 %v612_v38, 16  ;;  %v948_v53 = vrot.slane %v946_v45, 4 }
  0x8e   : > { %v931_v52 = vsel %vm7401_vm4, %v926_v44, %v930_v35  ;;  %v954_v12 = vrot.slane %v952_v46, 5  ;;  %v959_v56 = vrot.slane %v957_v47, 4  ;;  %v940_v37 = vrot.slane %v939_v16, 4  ;;  %v7233_v35 = vld [vmem:[%s7354_s28 + $0x54] sm:$0xff]   ;;  %v1370_v46 = vld [vmem:[%s7354_s28 + $0x20] sm:$0x1] }
  0x8f   : > { %v5839_v30 = vcombine.low %v921_v9, %v931_v52  ;;  %v962_v28 = vrot.slane %v960_v49, 5  ;;  %v968_v14 = vrot.slane %v966_v50, 5  ;;  %v949_v59 = vor.u32 %v948_v53, %v944_v40  ;;  %v1371_v47 = vld [vmem:[%s7354_s28 + $0x24] sm:$0xe]  ;;  %v1373_v52 = vld [vmem:[%s7354_s28 + $0x2c] sm:$0x1] }
  0x90   : > { %v972_v60 = vrot.slane %v970_v51, 4  ;;  %v976_v61 = vshll.u32 %v613_v41, 16  ;;  %v981_v62 = vshrl.u32 %v614_v42, 16  ;;  %v945_v2 = vsel %vm7401_vm4, %v940_v37, %v944_v40  ;;  %v7234_v40 = vld [vmem:[%s7354_s28 + $0x60] sm:$0xff]   ;;  %v1372_v51 = vld [vmem:[%s7354_s28 + $0x28] sm:$0xf] }
  0x91   : > { %6609 = vmatprep.mubr.msk.bf16.mxu1 %vm323_vm1, %v5839_v30  ;;  %v963_v15 = vor.u32 %v962_v28, %v959_v56  ;;  %v984_v8 = vshll.u32 %v614_v42, 16  ;;  %v990_v3 = vshll.u32 %v615_v48, 16  ;;  %v950_v11 = vrot.slane %v949_v59, 4  ;;  %v1374_v53 = vld [vmem:[%s7354_s28 + $0x30] sm:$0xe] }
  0x92   : > { %6760 = vmatmul.mubr.msk.bf16.gmra.mrb[4].mxu0 %vm323_vm1, %v7231_v55  ;;  %v973_v13 = vor.u32 %v972_v60, %v968_v14  ;;  %v978_v17 = vrot.slane %v976_v61, 5  ;;  %v983_v18 = vrot.slane %v981_v62, 4  ;;  %v994_v21 = vshrl.u32 %v615_v48, 16  ;;  %v1375_v37 = vld [vmem:[%s7354_s28 + $0x34] sm:$0xf] }
  0x93   : > { %v964_v34 = vrot.slane %v963_v15, 4  ;;  %v986_v19 = vrot.slane %v984_v8, 5  ;;  %v992_v20 = vrot.slane %v990_v3, 5  ;;  %6763 = vmatprep.mubr.msk.bf16.mxu0 %vm323_vm1, %v7232_v58  ;;  %v955_v25 = vsel %vm7401_vm4, %v950_v11, %v954_v12  ;;  %v1376_v28 = vld [vmem:[%s7354_s28 + $0x38] sm:$0x1] }
  0x94   : > { %v974_v26 = vrot.slane %v973_v13, 4  ;;  %v1000_v27 = vshll.u32 %v616_v57, 16  ;;  %v5859_v31 = vrot.slane %v1362_v63, 9  ;;  %v5840_v54 = vcombine.low %v945_v2, %v955_v25  ;;  %v1378_v60 = vld [vmem:[%s7354_s28 + $0x40] sm:$0xf] }
  0x95   : > { %v969_v6 = vsel %vm7401_vm4, %v964_v34, %v968_v14  ;;  %v987_v7 = vor.u32 %v986_v19, %v983_v18  ;;  %v996_v33 = vrot.slane %v994_v21, 4  ;;  %v1463_v9 = vrot.slane %v1363_v5, 5  ;;  %v1379_v15 = vld [vmem:[%s7354_s28 + $0x44] sm:$0x1]  ;;  %v1380_v8 = vld [vmem:[%s7354_s28 + $0x48] sm:$0xe] }
  0x96   : > { %v979_v38 = vsel %vm7401_vm4, %v974_v26, %v978_v17  ;;  %v1002_v39 = vrot.slane %v1000_v27, 5  ;;  %v1466_v23 = vrot.slane %v1364_v10, 5  ;;  %6610 = vmatmul.mubr.msk.bf16.gmra.mrb[24].mxu1 %vm323_vm1, %v5840_v54  ;;  %v5860_v45 = vrot.slane %v1365_v29, 9  ;;  %v1381_v13 = vld [vmem:[%s7354_s28 + $0x4c] sm:$0xf] }
  0x97   : > { %v5841_v41 = vcombine.low %v969_v6, %v979_v38  ;;  %v988_v42 = vrot.slane %v987_v7, 4  ;;  %v997_v44 = vor.u32 %v996_v33, %v992_v20  ;;  %v1464_v48 = vsel %vm7476_vm7, %v5859_v31, %v1463_v9  ;;  %v7235_v18 = vld [vmem:[%s7354_s28 + $0x6c] sm:$0xff]   ;;  %v1383_v27 = vld [vmem:[%s7354_s28 + $0x54] sm:$0xe]  ;;  %v1384_v7 = vld [vmem:[%s7354_s28 + $0x58] sm:$0xf] }
  0x98   : > { %v1465_v16 = vrot.slane %v1463_v9, 4  ;;  %v1470_v49 = vrot.slane %v1366_v22, 5  ;;  %v1473_v50 = vrot.slane %v1367_v24, 5  ;;  %v7832_v56 = vsel %vm372_vm0, %v7766_v1, 0  ;;  %v1377_v1 = vld [vmem:[%s7354_s28 + $0x3c] sm:$0xe] }
  0x99   : > { %6613 = vmatprep.mubr.msk.bf16.mxu1 %vm323_vm1, %v5841_v41  ;;  %v993_v12 = vsel %vm7401_vm4, %v988_v42, %v992_v20  ;;  %v998_v55 = vrot.slane %v997_v44, 4  ;;  %v5861_v30 = vrot.slane %v1368_v32, 9  ;;  %v1477_v59 = vrot.slane %v1369_v36, 5  ;;  %v1382_v20 = vld [vmem:[%s7354_s28 + $0x50] sm:$0x1]  ;;  %v7236_v22 = vld [vmem:[%s7354_s28 + $0x78] sm:$0xff]  }
  0x9a   : > { %6764 = vmatmul.mubr.msk.bf16.gmra.mrb[8].mxu0 %vm323_vm1, %v7233_v35  ;;  %v1467_v14 = vsel %vm7476_vm7, %v1465_v16, %v1466_v23  ;;  %v7841_v57 = vsel %vm7476_vm7, %v5860_v45, %v1470_v49  ;;  %v1472_v58 = vrot.slane %v1470_v49, 4  ;;  %v1480_v63 = vrot.slane %v1370_v46, 5  ;;  %v1385_v33 = vld [vmem:[%s7354_s28 + $0x5c] sm:$0x1]  ;;  %v1386_v35 = vld [vmem:[%s7354_s28 + $0x60] sm:$0xe] }
  0x9b   : > { %v1003_v61 = vsel %vm7401_vm4, %v998_v55, %v1002_v39  ;;  %v5876_v62 = vcombine.low %v1464_v48, %v1467_v14  ;;  %6767 = vmatprep.mubr.msk.bf16.mxu0 %vm323_vm1, %v7234_v40  ;;  %v5862_v2 = vrot.slane %v1371_v47, 9  ;;  %v7856_v10 = vsel %vm7476_vm7, %v5861_v30, %v1477_v59  ;;  %v1387_v23 = vld [vmem:[%s7354_s28 + $0x64] sm:$0xf]  ;;  %v1388_v40 = vld [vmem:[%s7354_s28 + $0x68] sm:$0x1] }
  0x9c   : > { %v5842_v3 = vcombine.low %v993_v12, %v1003_v61  ;;  %v7852_v5 = vsel %vm7476_vm7, %v1472_v58, %v1473_v50  ;;  %v1479_v11 = vrot.slane %v1477_v59, 4  ;;  %v1484_v29 = vrot.slane %v1372_v51, 5  ;;  %v1389_v41 = vld [vmem:[%s7354_s28 + $0x6c] sm:$0xe]  ;;  %v1390_v47 = vld [vmem:[%s7354_s28 + $0x70] sm:$0xf] }
  0x9d   : > { %v5877_v17 = vcombine.low %v7841_v57, %v7852_v5  ;;  %v1487_v34 = vrot.slane %v1373_v52, 5  ;;  %v5863_v19 = vrot.slane %v1374_v53, 9  ;;  %v1491_v24 = vrot.slane %v1375_v37, 5  ;;  %v1391_v55 = vld [vmem:[%s7354_s28 + $0x74] sm:$0x1]  ;;  %v7237_v58 = vld [vmem:[%s7354_s28 + $0x84] sm:$0xff]  }
  0x9e   : > { %v7865_v21 = vsel %vm7476_vm7, %v1479_v11, %v1480_v63  ;;  %v1494_v25 = vrot.slane %v1376_v28, 5  ;;  %v5864_v26 = vrot.slane %v1377_v1, 9  ;;  %6614 = vmatmul.mubr.msk.bf16.gmra.mrb[28].mxu1 %vm323_vm1, %v5842_v3  ;;  %v7874_v32 = vsel %vm7476_vm7, %v5862_v2, %v1484_v29  ;;  %v1392_v57 = vld [vmem:[%s7354_s28 + $0x78] sm:$0xe]  ;;  %v1394_v3 = vld [vmem:[%s7354_s28 + $0x80] sm:$0x1] }
  0x9f   : > { %v5878_v31 = vcombine.low %v7856_v10, %v7865_v21  ;;  %v1486_v54 = vrot.slane %v1484_v29, 4  ;;  %v1498_v6 = vrot.slane %v1378_v60, 5  ;;  %6619 = vmatprep.mubr.msk.bf16.mxu1 %vm323_vm1, %v5876_v62  ;;  %v7882_v36 = vsel %vm7476_vm7, %v5863_v19, %v1491_v24  ;;  %v1393_v62 = vld [vmem:[%s7354_s28 + $0x7c] sm:$0xf]  ;;  %v1395_v5 = vld [vmem:[%s7354_s28 + $0x84] sm:$0xe] }
  0xa0   : > { %v1493_v38 = vrot.slane %v1491_v24, 4  ;;  %v1501_v39 = vrot.slane %v1379_v15, 5  ;;  %v5865_v9 = vrot.slane %v1380_v8, 9  ;;  %v1505_v46 = vrot.slane %v1381_v13, 5  ;;  %v7238_v10 = vld [vmem:[%s7354_s28 + $0x90] sm:$0xff]  }
  0xa1   : > { %v7889_v42 = vsel %vm7476_vm7, %v1486_v54, %v1487_v34  ;;  %v7893_v44 = vsel %vm7476_vm7, %v5864_v26, %v1498_v6  ;;  %v1500_v45 = vrot.slane %v1498_v6, 4  ;;  %v1508_v49 = vrot.slane %v1382_v20, 5  ;;  %v1396_v34 = vld [vmem:[%s7354_s28 + $0x88] sm:$0xf]  ;;  %v6216_v24 = vld [vmem:[%s7354_s28 + $0x18] sm:$0xf] }
  0xa2   : > { %6768 = vmatmul.mubr.msk.bf16.gmra.mrb[12].mxu0 %vm323_vm1, %v7235_v18  ;;  %v5879_v48 = vcombine.low %v7874_v32, %v7889_v42  ;;  %v7901_v16 = vsel %vm7476_vm7, %v1493_v38, %v1494_v25  ;;  %v5866_v50 = vrot.slane %v1383_v27, 9  ;;  %v7912_v53 = vsel %vm7476_vm7, %v5865_v9, %v1505_v46  ;;  %v6361_v54 = vld [vmem:[%s8834_s1 + $0x20] sm:$0xf]  ;;  %v7260_v6 = vld [vmem:[%s8834_s1 + $0x10] sm:$0xf] }
  0xa3   : > { %6771 = vmatprep.mubr.msk.bf16.mxu0 %vm323_vm1, %v7236_v22  ;;  %v5880_v51 = vcombine.low %v7882_v36, %v7901_v16  ;;  %v7908_v52 = vsel %vm7476_vm7, %v1500_v45, %v1501_v39  ;;  %v1507_v12 = vrot.slane %v1505_v46, 4  ;;  %v1512_v37 = vrot.slane %v1384_v7, 5  ;;  %v1397_v22 = vld [vmem:[%s7354_s28 + $0x8c] sm:$0x1]  ;;  %v6218_v39 = vld [vmem:[%s7354_s28 + $0x20] sm:$0x1]  ;;  %7186 = vmatprep.subr.msk.bf16.mxu0 %vm372_vm0, %v6361_v54 }
  0xa4   : > { %v5881_v30 = vcombine.low %v7893_v44, %v7908_v52  ;;  %v1515_v28 = vrot.slane %v1385_v33, 5  ;;  %v5867_v14 = vrot.slane %v1386_v35, 9  ;;  %v1519_v1 = vrot.slane %v1387_v23, 5  ;;  %v6219_v45 = vld [vmem:[%s7354_s28 + $0x24] sm:$0xf] }
  0xa5   : > { %v7921_v59 = vsel %vm7476_vm7, %v1507_v12, %v1508_v49  ;;  %v1522_v60 = vrot.slane %v1388_v40, 5  ;;  %v5868_v61 = vrot.slane %v1389_v41, 9  ;;  %v7928_v2 = vsel %vm7476_vm7, %v5866_v50, %v1512_v37  ;;  %v6220_v12 = vld [vmem:[%s7354_s28 + $0x28] sm:$0xf] }
  0xa6   : > { %v5882_v63 = vcombine.low %v7912_v53, %v7921_v59  ;;  %v1514_v15 = vrot.slane %v1512_v37, 4  ;;  %v1526_v8 = vrot.slane %v1390_v47, 5  ;;  %6620 = vmatmul.mubr.msk.bf16.vlgmr.msra.gmra.mrb[0].mxu1 %vm323_vm1, %v5877_v17  ;;  %v7936_v11 = vsel %vm7476_vm7, %v5867_v14, %v1519_v1 }
  0xa7   : > { %v1521_v13 = vrot.slane %v1519_v1, 4  ;;  %v1529_v18 = vrot.slane %v1391_v55, 5  ;;  %v5869_v29 = vrot.slane %v1392_v57, 9  ;;  %6652 = vmatpush3.bf16.msra.mxu1 %v7832_v56  ;;  %6623 = vmatprep.mubr.msk.bf16.mxu1 %vm323_vm1, %v5878_v31  ;;  %v1533_v21 = vrot.slane %v1393_v62, 5  ;;  %v6217_v31 = vld [vmem:[%s7354_s28 + $0x1c] sm:$0xf] }
  0xa8   : > { %v7943_v19 = vsel %vm7476_vm7, %v1514_v15, %v1515_v28  ;;  %v7947_v17 = vsel %vm7476_vm7, %v5868_v61, %v1526_v8  ;;  %v1528_v20 = vrot.slane %v1526_v8, 4  ;;  %v1536_v26 = vrot.slane %v1394_v3, 5  ;;  %7182 = vmatprep.subr.msk.bf16.mxu1 %vm372_vm0, %v7260_v6  ;;  %v7239_v55 = vld [vmem:[%s7354_s28 + $0x9c] sm:$0xff]   ;;  %v6221_v62 = vld [vmem:[%s7354_s28 + $0x2c] sm:$0x1] }
  0xa9   : > { %v5883_v25 = vcombine.low %v7928_v2, %v7943_v19  ;;  %v7955_v56 = vsel %vm7476_vm7, %v1521_v13, %v1522_v60  ;;  %v5870_v27 = vrot.slane %v1395_v5, 9  ;;  %v7974_v35 = vsel %vm7476_vm7, %v5869_v29, %v1533_v21  ;;  %v7240_v15 = vld [vmem:[%s7354_s28 + $0xa8] sm:$0xff]   ;;  %v1398_v13 = vld [vmem:[%s7354_s28 + $0x90] sm:$0xe]  ;;  %v1399_v29 = vld [vmem:[%s7354_s28 + $0x94] sm:$0xf] }
  0xaa   : > { %6772 = vmatmul.mubr.msk.bf16.gmra.mrb[16].mxu0 %vm323_vm1, %v7237_v58  ;;  %v5884_v7 = vcombine.low %v7936_v11, %v7955_v56  ;;  %v7970_v33 = vsel %vm7476_vm7, %v1528_v20, %v1529_v18  ;;  %v1535_v38 = vrot.slane %v1533_v21, 4  ;;  %v1540_v23 = vrot.slane %v1396_v34, 5  ;;  %v1400_v34 = vld [vmem:[%s7354_s28 + $0x98] sm:$0x1]  ;;  %v6228_v2 = vld [vmem:[%s7354_s28 + $0x48] sm:$0xf] }
  0xab   : > { %6775 = vmatprep.mubr.msk.bf16.mxu0 %vm323_vm1, %v7238_v10  ;;  %v5885_v9 = vcombine.low %v7947_v17, %v7970_v33  ;;  %v1543_v40 = vrot.slane %v1397_v22, 5  ;;  %v4188_v41 = vshrl.u32 %v6216_v24, 16  ;;  %v4191_v47 = vshll.u32 %v6216_v24, 16 }
  0xac   : > { %v7984_v46 = vsel %vm7476_vm7, %v1535_v38, %v1536_v26  ;;  %v4197_v49 = vshll.u32 %v6217_v31, 16  ;;  %v4201_v50 = vshrl.u32 %v6217_v31, 16  ;;  %v7992_v28 = vsel %vm7476_vm7, %v5870_v27, %v1540_v23  ;;  %v1401_v26 = vld [vmem:[%s7354_s28 + $0x9c] sm:$0xe]  ;;  %v1402_v31 = vld [vmem:[%s7354_s28 + $0xa0] sm:$0xf] }
  0xad   : > { %v5886_v37 = vcombine.low %v7974_v35, %v7984_v46  ;;  %v1542_v14 = vrot.slane %v1540_v23, 4  ;;  %v4190_v57 = vrot.slane %v4188_v41, 4  ;;  %v4193_v58 = vrot.slane %v4191_v47, 5  ;;  %v6236_v35 = vld [vmem:[%s7354_s28 + $0x68] sm:$0x1] }
  0xae   : > { %v4199_v1 = vrot.slane %v4197_v49, 5  ;;  %v4203_v60 = vrot.slane %v4201_v50, 4  ;;  %v4207_v61 = vshll.u32 %v6218_v39, 16  ;;  %6624 = vmatmul.mubr.msk.bf16.gmra.mrb[4].mxu1 %vm323_vm1, %v5879_v48  ;;  %v4212_v3 = vshrl.u32 %v6219_v45, 16  ;;  %v6222_v49 = vld [vmem:[%s7354_s28 + $0x30] sm:$0xf] }
  0xaf   : > { %v8002_v8 = vsel %vm7476_vm7, %v1542_v14, %v1543_v40  ;;  %v4215_v5 = vshll.u32 %v6219_v45, 16  ;;  %v4221_v10 = vshll.u32 %v6220_v12, 16  ;;  %6627 = vmatprep.mubr.msk.bf16.mxu1 %vm323_vm1, %v5880_v51  ;;  %v4194_v42 = vor.u32 %v4193_v58, %v4190_v57  ;;  %v1403_v40 = vld [vmem:[%s7354_s28 + $0xa4] sm:$0x1]  ;;  %v6223_v57 = vld [vmem:[%s7354_s28 + $0x34] sm:$0xf] }
  0xb0   : > { %v5887_v32 = vcombine.low %v7992_v28, %v8002_v8  ;;  %v4204_v48 = vor.u32 %v4203_v60, %v4199_v1  ;;  %v4209_v18 = vrot.slane %v4207_v61, 5  ;;  %v4214_v20 = vrot.slane %v4212_v3, 4  ;;  %v7241_v58 = vld [vmem:[%s7354_s28 + $0xb4] sm:$0xff]  }
  0xb1   : > { %v4217_v21 = vrot.slane %v4215_v5, 5  ;;  %v4223_v22 = vrot.slane %v4221_v10, 5  ;;  %v4225_v24 = vshrl.u32 %v6220_v12, 16  ;;  %v4195_v36 = vrot.slane %v4194_v42, 4 }
  0xb2   : > { %6776 = vmatmul.mubr.msk.bf16.gmra.mrb[20].mxu0 %vm323_vm1, %v7239_v55  ;;  %v4205_v16 = vrot.slane %v4204_v48, 4  ;;  %v4231_v51 = vshll.u32 %v6221_v62, 16  ;;  %v8016_v27 = vsel %vm372_vm0, %v6361_v54, 0  ;;  %v5871_v39 = vrot.slane %v1398_v13, 9 }
  0xb3   : > { %6779 = vmatprep.mubr.msk.bf16.mxu0 %vm323_vm1, %v7240_v15  ;;  %v4218_v6 = vor.u32 %v4217_v21, %v4214_v20  ;;  %v4227_v38 = vrot.slane %v4225_v24, 4  ;;  %v1547_v23 = vrot.slane %v1399_v29, 5  ;;  %v4200_v41 = vsel %vm7401_vm4, %v4195_v36, %v4199_v1  ;;  %v7242_v15 = vld [vmem:[%s7354_s28 + $0xc0] sm:$0xff]   ;;  %v1404_v36 = vld [vmem:[%s7354_s28 + $0xa8] sm:$0xe] }
  0xb4   : > { %v4210_v45 = vsel %vm7401_vm4, %v4205_v16, %v4209_v18  ;;  %v4233_v47 = vrot.slane %v4231_v51, 5  ;;  %v1550_v54 = vrot.slane %v1400_v34, 5  ;;  %v5872_v1 = vrot.slane %v1401_v26, 9  ;;  %v6225_v18 = vld [vmem:[%s7354_s28 + $0x3c] sm:$0xf] }
  0xb5   : > { %v8026_v50 = vcombine.low %v4200_v41, %v4210_v45  ;;  %v4219_v12 = vrot.slane %v4218_v6, 4  ;;  %v4228_v55 = vor.u32 %v4227_v38, %v4223_v22  ;;  %v8030_v14 = vsel %vm7476_vm7, %v5871_v39, %v1547_v23  ;;  %v6226_v34 = vld [vmem:[%s7354_s28 + $0x40] sm:$0xf]  ;;  %v6227_v26 = vld [vmem:[%s7354_s28 + $0x44] sm:$0x1] }
  0xb6   : > { %v1549_v60 = vrot.slane %v1547_v23, 4  ;;  %v1554_v61 = vrot.slane %v1402_v31, 5  ;;  %v1557_v62 = vrot.slane %v1403_v40, 5  ;;  %6628 = vmatmul.mubr.msk.bf16.gmra.mrb[8].mxu1 %vm323_vm1, %v5881_v30  ;;  %v4236_v10 = vshrl.u32 %v6222_v49, 16  ;;  %v6224_v30 = vld [vmem:[%s7354_s28 + $0x38] sm:$0x1] }
  0xb7   : > { %v4224_v3 = vsel %vm7401_vm4, %v4219_v12, %v4223_v22  ;;  %v4229_v5 = vrot.slane %v4228_v55, 4  ;;  %v4239_v13 = vshll.u32 %v6222_v49, 16  ;;  %6631 = vmatprep.mubr.msk.bf16.mxu1 %vm323_vm1, %v5882_v63  ;;  %v4245_v48 = vshll.u32 %v6223_v57, 16  ;;  %v1405_v38 = vld [vmem:[%s7354_s28 + $0xac] sm:$0xf] }
  0xb8   : > { %v8047_v42 = vsel %vm7476_vm7, %v1549_v60, %v1550_v54  ;;  %v8051_v44 = vsel %vm7476_vm7, %v5872_v1, %v1554_v61  ;;  %v1556_v52 = vrot.slane %v1554_v61, 4  ;;  %v4238_v59 = vrot.slane %v4236_v10, 4  ;;  %v1406_v39 = vld [vmem:[%s7354_s28 + $0xb0] sm:$0x1]  ;;  %v1408_v54 = vld [vmem:[%s7354_s28 + $0xb8] sm:$0xf] }
  0xb9   : > { %v4234_v29 = vsel %vm7401_vm4, %v4229_v5, %v4233_v47  ;;  %v5888_v53 = vcombine.low %v8030_v14, %v8047_v42  ;;  %v4241_v63 = vrot.slane %v4239_v13, 5  ;;  %v4247_v22 = vrot.slane %v4245_v48, 5  ;;  %v1407_v47 = vld [vmem:[%s7354_s28 + $0xb4] sm:$0xe]  ;;  %v7243_v60 = vld [vmem:[%s7354_s28 + $0xcc] sm:$0xff]  }
  0xba   : > { %6780 = vmatmul.mubr.msk.bf16.gmra.mrb[24].mxu0 %vm323_vm1, %v7241_v58  ;;  %v8061_v20 = vcombine.low %v4224_v3, %v4234_v29  ;;  %v8065_v21 = vsel %vm7476_vm7, %v1556_v52, %v1557_v62  ;;  %v4249_v24 = vshrl.u32 %v6223_v57, 16  ;;  %v4255_v31 = vshll.u32 %v6224_v30, 16  ;;  %v1409_v58 = vld [vmem:[%s7354_s28 + $0xbc] sm:$0x1] }
  0xbb   : > { %6783 = vmatprep.mubr.msk.bf16.mxu0 %vm323_vm1, %v7242_v15  ;;  %v5889_v16 = vcombine.low %v8051_v44, %v8065_v21  ;;  %v4242_v51 = vor.u32 %v4241_v63, %v4238_v59  ;;  %v4260_v6 = vshrl.u32 %v6225_v18, 16  ;;  %v4263_v40 = vshll.u32 %v6225_v18, 16  ;;  %v6229_v63 = vld [vmem:[%s7354_s28 + $0x4c] sm:$0xf] }
  0xbc   : > { %v4251_v23 = vrot.slane %v4249_v24, 4  ;;  %v4269_v41 = vshll.u32 %v6226_v34, 16  ;;  %v4273_v45 = vshrl.u32 %v6226_v34, 16  ;;  %v4257_v12 = vrot.slane %v4255_v31, 5  ;;  %v6231_v31 = vld [vmem:[%s7354_s28 + $0x54] sm:$0xf] }
  0xbd   : > { %v4243_v49 = vrot.slane %v4242_v51, 4  ;;  %v4262_v55 = vrot.slane %v4260_v6, 4  ;;  %v4279_v57 = vshll.u32 %v6227_v26, 16  ;;  %v4265_v61 = vrot.slane %v4263_v40, 5  ;;  %v6232_v6 = vld [vmem:[%s7354_s28 + $0x58] sm:$0xf] }
  0xbe   : > { %v4252_v1 = vor.u32 %v4251_v23, %v4247_v22  ;;  %v4271_v62 = vrot.slane %v4269_v41, 5  ;;  %v4275_v15 = vrot.slane %v4273_v45, 4  ;;  %6632 = vmatmul.mubr.msk.bf16.gmra.mrb[12].mxu1 %vm323_vm1, %v5883_v25  ;;  %v5873_v10 = vrot.slane %v1404_v36, 9  ;;  %v6245_v44 = vld [vmem:[%s7354_s28 + $0x8c] sm:$0x1] }
  0xbf   : > { %v4248_v3 = vsel %vm7401_vm4, %v4243_v49, %v4247_v22  ;;  %v4281_v5 = vrot.slane %v4279_v57, 5  ;;  %v1561_v13 = vrot.slane %v1405_v38, 5  ;;  %6635 = vmatprep.mubr.msk.bf16.mxu1 %vm323_vm1, %v5884_v7  ;;  %v4266_v30 = vor.u32 %v4265_v61, %v4262_v55  ;;  %v6230_v22 = vld [vmem:[%s7354_s28 + $0x50] sm:$0x1]  ;;  %v6233_v57 = vld [vmem:[%s7354_s28 + $0x5c] sm:$0x1] }
  0xc0   : > { %v4253_v52 = vrot.slane %v4252_v1, 4  ;;  %v4276_v48 = vor.u32 %v4275_v15, %v4271_v62  ;;  %v1564_v18 = vrot.slane %v1406_v39, 5  ;;  %v5874_v29 = vrot.slane %v1407_v47, 9 }
  0xc1   : > { %v8091_v19 = vsel %vm7476_vm7, %v5873_v10, %v1561_v13  ;;  %v1563_v25 = vrot.slane %v1561_v13, 4  ;;  %v1568_v59 = vrot.slane %v1408_v54, 5  ;;  %v4267_v56 = vrot.slane %v4266_v30, 4 }
  0xc2   : > { %6784 = vmatmul.mubr.msk.bf16.gmra.mrb[28].mxu0 %vm323_vm1, %v7243_v60  ;;  %v4258_v11 = vsel %vm7401_vm4, %v4253_v52, %v4257_v12  ;;  %v4277_v7 = vrot.slane %v4276_v48, 4  ;;  %v1571_v34 = vrot.slane %v1409_v58, 5  ;;  %v4284_v23 = vshrl.u32 %v6228_v2, 16  ;;  %v6235_v52 = vld [vmem:[%s7354_s28 + $0x64] sm:$0xf] }
  0xc3   : > { %6789 = vmatprep.mubr.msk.bf16.mxu0 %vm323_vm1, %v8026_v50  ;;  %v6267_v24 = vcombine.low %v4248_v3, %v4258_v11  ;;  %v8102_v26 = vsel %vm7476_vm7, %v1563_v25, %v1564_v18  ;;  %v8106_v36 = vsel %vm7476_vm7, %v5874_v29, %v1568_v59  ;;  %v1570_v51 = vrot.slane %v1568_v59, 4  ;;  %v6237_v59 = vld [vmem:[%s7354_s28 + $0x6c] sm:$0xf] }
  0xc4   : > { %v4272_v38 = vsel %vm7401_vm4, %v4267_v56, %v4271_v62  ;;  %v4282_v39 = vsel %vm7401_vm4, %v4277_v7, %v4281_v5  ;;  %v5890_v50 = vcombine.low %v8091_v19, %v8102_v26  ;;  %v4287_v45 = vshll.u32 %v6228_v2, 16  ;;  %v6234_v62 = vld [vmem:[%s7354_s28 + $0x60] sm:$0xf]  ;;  %v6238_v7 = vld [vmem:[%s7354_s28 + $0x70] sm:$0xf] }
  0xc5   : > { %v8116_v40 = vcombine.low %v4272_v38, %v4282_v39  ;;  %v8120_v41 = vsel %vm7476_vm7, %v1570_v51, %v1571_v34  ;;  %v4293_v47 = vshll.u32 %v6229_v63, 16  ;;  %v4286_v49 = vrot.slane %v4284_v23, 4 }
  0xc6   : > { %v5891_v54 = vcombine.low %v8106_v36, %v8120_v41  ;;  %v4297_v12 = vshrl.u32 %v6229_v63, 16  ;;  %v4303_v55 = vshll.u32 %v6230_v22, 16  ;;  %6636 = vmatmul.mubr.msk.bf16.gmra.mrb[16].mxu1 %vm323_vm1, %v5885_v9  ;;  %v4289_v58 = vrot.slane %v4287_v45, 5 }
  0xc7   : > { %v4295_v60 = vrot.slane %v4293_v47, 5  ;;  %v4308_v1 = vshrl.u32 %v6231_v31, 16  ;;  %v4311_v61 = vshll.u32 %v6231_v31, 16  ;;  %6639 = vmatprep.mubr.msk.bf16.mxu1 %vm323_vm1, %v5886_v37  ;;  %v4317_v5 = vshll.u32 %v6232_v6, 16 }
  0xc8   : > { %v4299_v15 = vrot.slane %v4297_v12, 4  ;;  %v4305_v3 = vrot.slane %v4303_v55, 5  ;;  %v4321_v10 = vshrl.u32 %v6232_v6, 16  ;;  %v4290_v13 = vor.u32 %v4289_v58, %v4286_v49  ;;  %v6239_v49 = vld [vmem:[%s7354_s28 + $0x74] sm:$0x1] }
  0xc9   : > { %v4310_v17 = vrot.slane %v4308_v1, 4  ;;  %v4313_v33 = vrot.slane %v4311_v61, 5  ;;  %v4327_v9 = vshll.u32 %v6233_v57, 16  ;;  %v4319_v48 = vrot.slane %v4317_v5, 5  ;;  %v6240_v55 = vld [vmem:[%s7354_s28 + $0x78] sm:$0xf] }
  0xca   : > { %6790 = vmatmul.mubr.msk.bf16.vlgmr.msra.gmra.mrb[0].mxu0 %vm323_vm1, %v8061_v20  ;;  %v4300_v30 = vor.u32 %v4299_v15, %v4295_v60  ;;  %v4323_v18 = vrot.slane %v4321_v10, 4  ;;  %v4332_v46 = vshrl.u32 %v6234_v62, 16  ;;  %v4291_v37 = vrot.slane %v4290_v13, 4  ;;  %v6241_v61 = vld [vmem:[%s7354_s28 + $0x7c] sm:$0xf] }
  0xcb   : > { %6822 = vmatpush3.bf16.msra.mxu0 %v8016_v27  ;;  %6793 = vmatprep.mubr.msk.bf16.mxu0 %vm323_vm1, %v6267_v24  ;;  %v4314_v2 = vor.u32 %v4313_v33, %v4310_v17  ;;  %v4329_v25 = vrot.slane %v4327_v9, 5  ;;  %v4335_v29 = vshll.u32 %v6234_v62, 16  ;;  %v4341_v20 = vshll.u32 %v6235_v52, 16  ;;  %v6242_v15 = vld [vmem:[%s7354_s28 + $0x80] sm:$0x1] }
  0xcc   : > { %v4301_v63 = vrot.slane %v4300_v30, 4  ;;  %v4324_v11 = vor.u32 %v4323_v18, %v4319_v48  ;;  %v4334_v56 = vrot.slane %v4332_v46, 4  ;;  %v4296_v34 = vsel %vm7401_vm4, %v4291_v37, %v4295_v60  ;;  %v6243_v17 = vld [vmem:[%s7354_s28 + $0x84] sm:$0xf] }
  0xcd   : > { %v4315_v22 = vrot.slane %v4314_v2, 4  ;;  %v4337_v51 = vrot.slane %v4335_v29, 5  ;;  %v4345_v31 = vshrl.u32 %v6235_v52, 16  ;;  %v4343_v6 = vrot.slane %v4341_v20, 5 }
  0xce   : > { %v4306_v27 = vsel %vm7401_vm4, %v4301_v63, %v4305_v3  ;;  %v4325_v24 = vrot.slane %v4324_v11, 4  ;;  %v4351_v38 = vshll.u32 %v6236_v35, 16  ;;  %6640 = vmatmul.mubr.msk.bf16.gmra.mrb[20].mxu1 %vm323_vm1, %v5887_v32  ;;  %v4356_v8 = vshrl.u32 %v6237_v59, 16 }
  0xcf   : > { %v6269_v39 = vcombine.low %v4296_v34, %v4306_v27  ;;  %v4320_v23 = vsel %vm7401_vm4, %v4315_v22, %v4319_v48  ;;  %v4338_v45 = vor.u32 %v4337_v51, %v4334_v56  ;;  %v4347_v47 = vrot.slane %v4345_v31, 4  ;;  %6643 = vmatprep.mubr.msk.bf16.mxu1 %vm323_vm1, %v5888_v53 }
  0xd0   : > { %v4330_v12 = vsel %vm7401_vm4, %v4325_v24, %v4329_v25  ;;  %v4353_v28 = vrot.slane %v4351_v38, 5  ;;  %v4359_v32 = vshll.u32 %v6237_v59, 16  ;;  %v4365_v1 = vshll.u32 %v6238_v7, 16  ;;  %v6247_v24 = vld [vmem:[%s7354_s28 + $0x94] sm:$0xf] }
  0xd1   : > { %v6270_v57 = vcombine.low %v4320_v23, %v4330_v12  ;;  %v4339_v58 = vrot.slane %v4338_v45, 4  ;;  %v4348_v60 = vor.u32 %v4347_v47, %v4343_v6  ;;  %v4358_v14 = vrot.slane %v4356_v8, 4  ;;  %v6248_v38 = vld [vmem:[%s7354_s28 + $0x98] sm:$0x1]  ;;  %v6249_v12 = vld [vmem:[%s7354_s28 + $0x9c] sm:$0xf] }
  0xd2   : > { %6794 = vmatmul.mubr.msk.bf16.gmra.mrb[4].mxu0 %vm323_vm1, %v8116_v40  ;;  %v4361_v42 = vrot.slane %v4359_v32, 5  ;;  %v4369_v53 = vshrl.u32 %v6238_v7, 16  ;;  %v4375_v62 = vshll.u32 %v6239_v49, 16  ;;  %v4367_v10 = vrot.slane %v4365_v1, 5  ;;  %v6244_v40 = vld [vmem:[%s7354_s28 + $0x88] sm:$0xf] }
  0xd3   : > { %6797 = vmatprep.mubr.msk.bf16.mxu0 %vm323_vm1, %v6269_v39  ;;  %v4344_v3 = vsel %vm7401_vm4, %v4339_v58, %v4343_v6  ;;  %v4349_v5 = vrot.slane %v4348_v60, 4  ;;  %v4380_v13 = vshrl.u32 %v6240_v55, 16  ;;  %v4383_v30 = vshll.u32 %v6240_v55, 16  ;;  %v7244_v39 = vld [vmem:[%s7354_s28 + $0xc] sm:$0xff]  }
  0xd4   : > { %v4362_v33 = vor.u32 %v4361_v42, %v4358_v14  ;;  %v4371_v9 = vrot.slane %v4369_v53, 4  ;;  %v4377_v52 = vrot.slane %v4375_v62, 5  ;;  %v4389_v35 = vshll.u32 %v6241_v61, 16  ;;  %v6250_v62 = vld [vmem:[%s7354_s28 + $0xa0] sm:$0xf] }
  0xd5   : > { %v4354_v48 = vsel %vm7401_vm4, %v4349_v5, %v4353_v28  ;;  %v4382_v18 = vrot.slane %v4380_v13, 4  ;;  %v4393_v46 = vshrl.u32 %v6241_v61, 16  ;;  %v4385_v29 = vrot.slane %v4383_v30, 5 }
  0xd6   : > { %v6271_v37 = vcombine.low %v4344_v3, %v4354_v48  ;;  %v4363_v2 = vrot.slane %v4362_v33, 4  ;;  %v4372_v25 = vor.u32 %v4371_v9, %v4367_v10  ;;  %6644 = vmatmul.mubr.msk.bf16.gmra.mrb[24].mxu1 %vm323_vm1, %v5889_v16  ;;  %v4391_v59 = vrot.slane %v4389_v35, 5  ;;  %v6246_v16 = vld [vmem:[%s7354_s28 + $0x90] sm:$0xf]  ;;  %v6251_v33 = vld [vmem:[%s7354_s28 + $0xa4] sm:$0x1] }
  0xd7   : > { %v4395_v63 = vrot.slane %v4393_v46, 4  ;;  %v4399_v11 = vshll.u32 %v6242_v15, 16  ;;  %v4404_v56 = vshrl.u32 %v6243_v17, 16  ;;  %6647 = vmatprep.mubr.msk.bf16.mxu1 %vm323_vm1, %v5890_v50  ;;  %v4386_v34 = vor.u32 %v4385_v29, %v4382_v18  ;;  %v7245_v48 = vld [vmem:[%s7354_s28 + $0x18] sm:$0xff]  }
  0xd8   : > { %v4368_v20 = vsel %vm7401_vm4, %v4363_v2, %v4367_v10  ;;  %v4373_v7 = vrot.slane %v4372_v25, 4  ;;  %v4407_v21 = vshll.u32 %v6243_v17, 16  ;;  %v4413_v27 = vshll.u32 %v6244_v40, 16  ;;  %v6253_v2 = vld [vmem:[%s7354_s28 + $0xac] sm:$0xf] }
  0xd9   : > { %v4396_v22 = vor.u32 %v4395_v63, %v4391_v59  ;;  %v4401_v51 = vrot.slane %v4399_v11, 5  ;;  %v4406_v31 = vrot.slane %v4404_v56, 4  ;;  %v4387_v26 = vrot.slane %v4386_v34, 4  ;;  %v6254_v11 = vld [vmem:[%s7354_s28 + $0xb0] sm:$0x1]  ;;  %v7246_v56 = vld [vmem:[%s7354_s28 + $0x24] sm:$0xff]  }
  0xda   : > { %6798 = vmatmul.mubr.msk.bf16.gmra.mrb[8].mxu0 %vm323_vm1, %v6270_v57  ;;  %v4378_v19 = vsel %vm7401_vm4, %v4373_v7, %v4377_v52  ;;  %v4409_v50 = vrot.slane %v4407_v21, 5  ;;  %v4417_v6 = vshrl.u32 %v6244_v40, 16  ;;  %v4415_v47 = vrot.slane %v4413_v27, 5  ;;  %v6252_v40 = vld [vmem:[%s7354_s28 + $0xa8] sm:$0xf] }
  0xdb   : > { %6801 = vmatprep.mubr.msk.bf16.mxu0 %vm323_vm1, %v6271_v37  ;;  %v6272_v23 = vcombine.low %v4368_v20, %v4378_v19  ;;  %v4397_v45 = vrot.slane %v4396_v22, 4  ;;  %v4423_v49 = vshll.u32 %v6245_v44, 16  ;;  %v4392_v28 = vsel %vm7401_vm4, %v4387_v26, %v4391_v59  ;;  %v6255_v21 = vld [vmem:[%s7354_s28 + $0xb4] sm:$0xf] }
  0xdc   : > { %v4410_v8 = vor.u32 %v4409_v50, %v4406_v31  ;;  %v4419_v32 = vrot.slane %v4417_v6, 4  ;;  %v4428_v55 = vshrl.u32 %v6246_v16, 16  ;;  %v4431_v60 = vshll.u32 %v6246_v16, 16 }
  0xdd   : > { %v4402_v57 = vsel %vm7401_vm4, %v4397_v45, %v4401_v51  ;;  %v4425_v58 = vrot.slane %v4423_v49, 5  ;;  %v4437_v1 = vshll.u32 %v6247_v24, 16  ;;  %v4441_v5 = vshrl.u32 %v6247_v24, 16 }
  0xde   : > { %v6273_v61 = vcombine.low %v4392_v28, %v4402_v57  ;;  %v4411_v14 = vrot.slane %v4410_v8, 4  ;;  %v4420_v42 = vor.u32 %v4419_v32, %v4415_v47  ;;  %v4430_v53 = vrot.slane %v4428_v55, 4  ;;  %6648 = vmatmul.mubr.msk.bf16.gmra.mrb[28].mxu1 %vm323_vm1, %v5891_v54  ;;  %v7247_v28 = vld [vmem:[%s7354_s28 + $0x30] sm:$0xff]   ;;  %v6257_v55 = vld [vmem:[%s7354_s28 + $0xbc] sm:$0x1] }
  0xdf   : > { %v4433_v15 = vrot.slane %v4431_v60, 5  ;;  %v4439_v3 = vrot.slane %v4437_v1, 5  ;;  %v4447_v10 = vshll.u32 %v6248_v38, 16  ;;  %6653 = vmatprep.mubr.msk.bf16.mxu1 %vm323_vm1, %v7244_v39  ;;  %v4452_v9 = vshrl.u32 %v6249_v12, 16  ;;  %v7248_v60 = vld [vmem:[%s7354_s28 + $0x3c] sm:$0xff]  }
  0xe0   : > { %v4416_v13 = vsel %vm7401_vm4, %v4411_v14, %v4415_v47  ;;  %v4421_v17 = vrot.slane %v4420_v42, 4  ;;  %v4455_v52 = vshll.u32 %v6249_v12, 16  ;;  %v4443_v36 = vrot.slane %v4441_v5, 4  ;;  %v6258_v42 = vld [vmem:[%s7354_s28 + $0xc0] sm:$0xf] }
  0xe1   : > { %v4434_v30 = vor.u32 %v4433_v15, %v4430_v53  ;;  %v4449_v41 = vrot.slane %v4447_v10, 5  ;;  %v4461_v54 = vshll.u32 %v6250_v62, 16  ;;  %v4454_v35 = vrot.slane %v4452_v9, 4  ;;  %v6259_v5 = vld [vmem:[%s7354_s28 + $0xc4] sm:$0xf] }
  0xe2   : > { %6802 = vmatmul.mubr.msk.bf16.gmra.mrb[12].mxu0 %vm323_vm1, %v6272_v23  ;;  %v4426_v18 = vsel %vm7401_vm4, %v4421_v17, %v4425_v58  ;;  %v4457_v46 = vrot.slane %v4455_v52, 5  ;;  %v4465_v37 = vshrl.u32 %v6250_v62, 16  ;;  %v4444_v59 = vor.u32 %v4443_v36, %v4439_v3  ;;  %v6256_v23 = vld [vmem:[%s7354_s28 + $0xb8] sm:$0xf]  ;;  %v6260_v9 = vld [vmem:[%s7354_s28 + $0xc8] sm:$0x1] }
  0xe3   : > { %6805 = vmatprep.mubr.msk.bf16.mxu0 %vm323_vm1, %v6273_v61  ;;  %v6274_v25 = vcombine.low %v4416_v13, %v4426_v18  ;;  %v4435_v29 = vrot.slane %v4434_v30, 4  ;;  %v4463_v63 = vrot.slane %v4461_v54, 5  ;;  %v4471_v34 = vshll.u32 %v6251_v33, 16 }
  0xe4   : > { %v4458_v20 = vor.u32 %v4457_v46, %v4454_v35  ;;  %v4467_v7 = vrot.slane %v4465_v37, 4  ;;  %v4476_v44 = vshrl.u32 %v6252_v40, 16  ;;  %v4445_v22 = vrot.slane %v4444_v59, 4  ;;  %v6261_v35 = vld [vmem:[%s7354_s28 + $0xcc] sm:$0xf] }
  0xe5   : > { %v4440_v16 = vsel %vm7401_vm4, %v4435_v29, %v4439_v3  ;;  %v4479_v51 = vshll.u32 %v6252_v40, 16  ;;  %v4485_v31 = vshll.u32 %v6253_v2, 16  ;;  %v4473_v19 = vrot.slane %v4471_v34, 5  ;;  %v6262_v29 = vld [vmem:[%s7354_s28 + $0xd0] sm:$0xf] }
  0xe6   : > { %v4459_v27 = vrot.slane %v4458_v20, 4  ;;  %v4468_v24 = vor.u32 %v4467_v7, %v4463_v63  ;;  %v4478_v26 = vrot.slane %v4476_v44, 4  ;;  %6654 = vmatmul.mubr.msk.bf16.vlgmr.msra.gmra.mrb[0].mxu1 %vm323_vm1, %v7245_v48  ;;  %v4450_v50 = vsel %vm7401_vm4, %v4445_v22, %v4449_v41  ;;  %v6263_v20 = vld [vmem:[%s7354_s28 + $0xd4] sm:$0x1]  ;;  %v7249_v7 = vld [vmem:[%s7354_s28 + $0x48] sm:$0xff]  }
  0xe7   : > { %v4481_v6 = vrot.slane %v4479_v51, 5  ;;  %v4487_v38 = vrot.slane %v4485_v31, 5  ;;  %v4489_v39 = vshrl.u32 %v6253_v2, 16  ;;  %6856 = vmatpush3.bf16.msra.mxu1 %v7342_v4  ;;  %6657 = vmatprep.mubr.msk.bf16.mxu1 %vm323_vm1, %v7246_v56  ;;  %v6275_v45 = vcombine.low %v4440_v16, %v4450_v50  ;;  %v6297_v22 = vld [vmem:[%s7354_s28 + $0x18] sm:$0xe] }
  0xe8   : > { %v4464_v47 = vsel %vm7401_vm4, %v4459_v27, %v4463_v63  ;;  %v4469_v49 = vrot.slane %v4468_v24, 4  ;;  %v4495_v12 = vshll.u32 %v6254_v11, 16  ;;  %v4500_v57 = vshrl.u32 %v6255_v21, 16  ;;  %v6298_v51 = vld [vmem:[%s7354_s28 + $0x1c] sm:$0xf]  ;;  %v7250_v31 = vld [vmem:[%s7354_s28 + $0x54] sm:$0xff]  }
  0xe9   : > { %v4482_v8 = vor.u32 %v4481_v6, %v4478_v26  ;;  %v4491_v32 = vrot.slane %v4489_v39, 4  ;;  %v4503_v58 = vshll.u32 %v6255_v21, 16  ;;  %v4509_v61 = vshll.u32 %v6256_v23, 16  ;;  %v6299_v50 = vld [vmem:[%s7354_s28 + $0x20] sm:$0x1] }
  0xea   : > { %6806 = vmatmul.mubr.msk.bf16.gmra.mrb[16].mxu0 %vm323_vm1, %v6274_v25  ;;  %v4474_v4 = vsel %vm7401_vm4, %v4469_v49, %v4473_v19  ;;  %v4497_v1 = vrot.slane %v4495_v12, 5  ;;  %v4513_v14 = vshrl.u32 %v6256_v23, 16  ;;  %v4502_v3 = vrot.slane %v4500_v57, 4  ;;  %v6301_v6 = vld [vmem:[%s7354_s28 + $0x28] sm:$0xf] }
  0xeb   : > { %6809 = vmatprep.mubr.msk.bf16.mxu0 %vm323_vm1, %v6275_v45  ;;  %v6276_v53 = vcombine.low %v4464_v47, %v4474_v4  ;;  %v4483_v62 = vrot.slane %v4482_v8, 4  ;;  %v4492_v15 = vor.u32 %v4491_v32, %v4487_v38  ;;  %v4505_v10 = vrot.slane %v4503_v58, 5  ;;  %v6300_v45 = vld [vmem:[%s7354_s28 + $0x24] sm:$0xe]  ;;  %v6302_v58 = vld [vmem:[%s7354_s28 + $0x2c] sm:$0x1] }
  0xec   : > { %v4511_v13 = vrot.slane %v4509_v61, 5  ;;  %v4515_v17 = vrot.slane %v4513_v14, 4  ;;  %v4519_v33 = vshll.u32 %v6257_v55, 16  ;;  %v4524_v36 = vshrl.u32 %v6258_v42, 16  ;;  %v6303_v14 = vld [vmem:[%s7354_s28 + $0x30] sm:$0xe] }
  0xed   : > { %v4488_v52 = vsel %vm7401_vm4, %v4483_v62, %v4487_v38  ;;  %v4493_v30 = vrot.slane %v4492_v15, 4  ;;  %v4527_v41 = vshll.u32 %v6258_v42, 16  ;;  %v4506_v54 = vor.u32 %v4505_v10, %v4502_v3  ;;  %v6304_v3 = vld [vmem:[%s7354_s28 + $0x34] sm:$0xf] }
  0xee   : > { %v4516_v40 = vor.u32 %v4515_v17, %v4511_v13  ;;  %v4521_v48 = vrot.slane %v4519_v33, 5  ;;  %v4533_v18 = vshll.u32 %v6259_v5, 16  ;;  %6658 = vmatmul.mubr.msk.bf16.gmra.mrb[4].mxu1 %vm323_vm1, %v7247_v28  ;;  %v4526_v37 = vrot.slane %v4524_v36, 4  ;;  %v6305_v33 = vld [vmem:[%s7354_s28 + $0x38] sm:$0x1] }
  0xef   : > { %v4498_v46 = vsel %vm7401_vm4, %v4493_v30, %v4497_v1  ;;  %v4529_v2 = vrot.slane %v4527_v41, 5  ;;  %v4537_v25 = vshrl.u32 %v6259_v5, 16  ;;  %6661 = vmatprep.mubr.msk.bf16.mxu1 %vm323_vm1, %v7248_v60  ;;  %v4507_v63 = vrot.slane %v4506_v54, 4  ;;  %v6306_v36 = vld [vmem:[%s7354_s28 + $0x3c] sm:$0xe]  ;;  %v7251_v41 = vld [vmem:[%s7354_s28 + $0x60] sm:$0xff]  }
  0xf0   : > { %v6277_v59 = vcombine.low %v4488_v52, %v4498_v46  ;;  %v4517_v11 = vrot.slane %v4516_v40, 4  ;;  %v4535_v56 = vrot.slane %v4533_v18, 5  ;;  %v4543_v21 = vshll.u32 %v6260_v9, 16  ;;  %v7252_v46 = vld [vmem:[%s7354_s28 + $0x6c] sm:$0xff]  }
  0xf1   : > { %v4530_v34 = vor.u32 %v4529_v2, %v4526_v37  ;;  %v4539_v44 = vrot.slane %v4537_v25, 4  ;;  %v4548_v16 = vshrl.u32 %v6261_v35, 16  ;;  %v4512_v27 = vsel %vm7401_vm4, %v4507_v63, %v4511_v13 }
  0xf2   : > { %6810 = vmatmul.mubr.msk.bf16.gmra.mrb[20].mxu0 %vm323_vm1, %v6276_v53  ;;  %v4522_v24 = vsel %vm7401_vm4, %v4517_v11, %v4521_v48  ;;  %v4551_v19 = vshll.u32 %v6261_v35, 16  ;;  %v4557_v26 = vshll.u32 %v6262_v29, 16  ;;  %v4545_v23 = vrot.slane %v4543_v21, 5  ;;  %v6307_v35 = vld [vmem:[%s7354_s28 + $0x40] sm:$0xf] }
  0xf3   : > { %6813 = vmatprep.mubr.msk.bf16.mxu0 %vm323_vm1, %v6277_v59  ;;  %v4531_v38 = vrot.slane %v4530_v34, 4  ;;  %v4540_v39 = vor.u32 %v4539_v44, %v4535_v56  ;;  %v4550_v47 = vrot.slane %v4548_v16, 4  ;;  %v4561_v28 = vshrl.u32 %v6262_v29, 16  ;;  %v6309_v29 = vld [vmem:[%s7354_s28 + $0x48] sm:$0xe] }
  0xf4   : > { %v4553_v49 = vrot.slane %v4551_v19, 5  ;;  %v4559_v12 = vrot.slane %v4557_v26, 5  ;;  %v6278_v8 = vcombine.low %v4512_v27, %v4522_v24  ;;  %v4567_v57 = vshll.u32 %v6263_v20, 16  ;;  %v6310_v59 = vld [vmem:[%s7354_s28 + $0x4c] sm:$0xf] }
  0xf5   : > { %v4536_v32 = vsel %vm7401_vm4, %v4531_v38, %v4535_v56  ;;  %v4541_v55 = vrot.slane %v4540_v39, 4  ;;  %v4563_v4 = vrot.slane %v4561_v28, 4  ;;  %v6345_v1 = vrot.slane %v6297_v22, 9  ;;  %v6308_v20 = vld [vmem:[%s7354_s28 + $0x44] sm:$0x1] }
  0xf6   : > { %v4554_v60 = vor.u32 %v4553_v49, %v4550_v47  ;;  %v5027_v61 = vrot.slane %v6298_v51, 5  ;;  %6662 = vmatmul.mubr.msk.bf16.gmra.mrb[8].mxu1 %vm323_vm1, %v7249_v7  ;;  %v4569_v53 = vrot.slane %v4567_v57, 5  ;;  %v5030_v62 = vrot.slane %v6299_v50, 5  ;;  %v6311_v7 = vld [vmem:[%s7354_s28 + $0x50] sm:$0x1] }
  0xf7   : > { %v4546_v42 = vsel %vm7401_vm4, %v4541_v55, %v4545_v23  ;;  %v5034_v15 = vrot.slane %v6301_v6, 5  ;;  %6665 = vmatprep.mubr.msk.bf16.mxu1 %vm323_vm1, %v7250_v31  ;;  %v4564_v13 = vor.u32 %v4563_v4, %v4559_v12  ;;  %v6346_v17 = vrot.slane %v6300_v45, 9  ;;  %v6312_v34 = vld [vmem:[%s7354_s28 + $0x54] sm:$0xe]  ;;  %v6313_v51 = vld [vmem:[%s7354_s28 + $0x58] sm:$0xf] }
  0xf8   : > { %v6279_v5 = vcombine.low %v4536_v32, %v4546_v42  ;;  %v4555_v10 = vrot.slane %v4554_v60, 4  ;;  %v5029_v9 = vrot.slane %v5027_v61, 4  ;;  %v5037_v30 = vrot.slane %v6302_v58, 5  ;;  %v6314_v26 = vld [vmem:[%s7354_s28 + $0x5c] sm:$0x1] }
  0xf9   : > { %v5036_v52 = vrot.slane %v5034_v15, 4  ;;  %v4565_v54 = vrot.slane %v4564_v13, 4  ;;  %v5028_v40 = vsel %vm7476_vm7, %v6345_v1, %v5027_v61  ;;  %v6347_v48 = vrot.slane %v6303_v14, 9  ;;  %v5997_v50 = vld [vmem:[%s7354_s28 + $0x6c] sm:$0xf]  ;;  %v7253_v42 = vld [vmem:[%s7354_s28 + $0x78] sm:$0xff]  }
  0xfa   : > { %6814 = vmatmul.mubr.msk.bf16.gmra.mrb[24].mxu0 %vm323_vm1, %v6278_v8  ;;  %v5041_v18 = vrot.slane %v6304_v3, 5  ;;  %v4560_v37 = vsel %vm7401_vm4, %v4555_v10, %v4559_v12  ;;  %v5031_v2 = vsel %vm7476_vm7, %v5029_v9, %v5030_v62  ;;  %v5044_v25 = vrot.slane %v6305_v33, 5  ;;  %v5998_v45 = vld [vmem:[%s7354_s28 + $0x70] sm:$0xf]  ;;  %v5999_v55 = vld [vmem:[%s7354_s28 + $0x74] sm:$0x1] }
  0xfb   : > { %6817 = vmatprep.mubr.msk.bf16.mxu0 %vm323_vm1, %v6279_v5  ;;  %v4570_v63 = vsel %vm7401_vm4, %v4565_v54, %v4569_v53  ;;  %v8284_v11 = vsel %vm7476_vm7, %v6346_v17, %v5034_v15  ;;  %v8288_v56 = vsel %vm7476_vm7, %v5036_v52, %v5037_v30  ;;  %v6362_v44 = vcombine.low %v5028_v40, %v5031_v2  ;;  %v6000_v58 = vld [vmem:[%s7354_s28 + $0x78] sm:$0xf]  ;;  %v6001_v14 = vld [vmem:[%s7354_s28 + $0x7c] sm:$0xf]  ;;  %v7254_v5 = vld [vmem:[%s7354_s28 + $0x84] sm:$0xff]  }
  0xfc   : > { %v5043_v21 = vrot.slane %v5041_v18, 4  ;;  %v6348_v16 = vrot.slane %v6306_v36, 9  ;;  %v5048_v22 = vrot.slane %v6307_v35, 5  ;;  %v6280_v31 = vcombine.low %v4560_v37, %v4570_v63  ;;  %v6002_v52 = vld [vmem:[%s7354_s28 + $0x80] sm:$0x1] }
  0xfd   : > { %v8296_v27 = vsel %vm7476_vm7, %v6347_v48, %v5041_v18  ;;  %v6349_v24 = vrot.slane %v6309_v29, 9  ;;  %v5055_v19 = vrot.slane %v6310_v59, 5  ;;  %v5051_v39 = vrot.slane %v6308_v20, 5  ;;  %v6315_v35 = vld [vmem:[%s7354_s28 + $0x60] sm:$0xe] }
  0xfe   : > { %6666 = vmatmul.mubr.msk.bf16.gmra.mrb[12].mxu1 %vm323_vm1, %v7251_v41  ;;  %v8303_v6 = vsel %vm7476_vm7, %v5043_v21, %v5044_v25  ;;  %v5050_v38 = vrot.slane %v5048_v22, 4  ;;  %v6350_v23 = vrot.slane %v6312_v34, 9  ;;  %v6363_v47 = vcombine.low %v8284_v11, %v8288_v56  ;;  %v6319_v59 = vld [vmem:[%s7354_s28 + $0x70] sm:$0xf]  ;;  %v6317_v21 = vld [vmem:[%s7354_s28 + $0x68] sm:$0x1] }
  0xff   : > { %6669 = vmatprep.mubr.msk.bf16.mxu1 %vm323_vm1, %v7252_v46  ;;  %v5058_v49 = vrot.slane %v6311_v7, 5  ;;  %v5062_v12 = vrot.slane %v6313_v51, 5  ;;  %v6364_v28 = vcombine.low %v8296_v27, %v8303_v6  ;;  %v8313_v8 = vsel %vm7476_vm7, %v6348_v16, %v5048_v22  ;;  %v6316_v46 = vld [vmem:[%s7354_s28 + $0x64] sm:$0xf]  ;;  %v6318_v7 = vld [vmem:[%s7354_s28 + $0x6c] sm:$0xe] }
 0x100   : > { %v8317_v32 = vsel %vm7476_vm7, %v6349_v24, %v5055_v19  ;;  %v2598_v57 = vshrl.u32 %v5997_v50, 16  ;;  %v5057_v60 = vrot.slane %v5055_v19, 4  ;;  %v5065_v4 = vrot.slane %v6314_v26, 5  ;;  %v7255_v51 = vld [vmem:[%s7354_s28 + $0x90] sm:$0xff]   ;;  %v6003_v26 = vld [vmem:[%s7354_s28 + $0x84] sm:$0xf] }
 0x101   : > { %v2601_v1 = vshll.u32 %v5997_v50, 16  ;;  %v2607_v61 = vshll.u32 %v5998_v45, 16  ;;  %v8327_v53 = vsel %vm7476_vm7, %v5050_v38, %v5051_v39  ;;  %v8331_v62 = vsel %vm7476_vm7, %v6350_v23, %v5062_v12  ;;  %v6320_v39 = vld [vmem:[%s7354_s28 + $0x74] sm:$0x1] }
 0x102   : > { %6818 = vmatmul.mubr.msk.bf16.gmra.mrb[28].mxu0 %vm323_vm1, %v6280_v31  ;;  %v2600_v15 = vrot.slane %v2598_v57, 4  ;;  %v2611_v3 = vshrl.u32 %v5998_v45, 16  ;;  %v5064_v10 = vrot.slane %v5062_v12, 4  ;;  %v2617_v33 = vshll.u32 %v5999_v55, 16  ;;  %v6004_v45 = vld [vmem:[%s7354_s28 + $0x88] sm:$0xf] }
 0x103   : > { %6823 = vmatprep.mubr.msk.bf16.mxu0 %vm323_vm1, %v6362_v44  ;;  %v2603_v13 = vrot.slane %v2601_v1, 5  ;;  %v2609_v17 = vrot.slane %v2607_v61, 5  ;;  %v2622_v30 = vshrl.u32 %v6000_v58, 16  ;;  %v2625_v36 = vshll.u32 %v6000_v58, 16  ;;  %v6005_v58 = vld [vmem:[%s7354_s28 + $0x8c] sm:$0x1] }
 0x104   : > { %v2613_v9 = vrot.slane %v2611_v3, 4  ;;  %v2631_v41 = vshll.u32 %v6001_v14, 16  ;;  %v8337_v54 = vsel %vm7476_vm7, %v5057_v60, %v5058_v49  ;;  %v2619_v48 = vrot.slane %v2617_v33, 5 }
 0x105   : > { %v2604_v40 = vor.u32 %v2603_v13, %v2600_v15  ;;  %v2635_v18 = vshrl.u32 %v6001_v14, 16  ;;  %v2624_v2 = vrot.slane %v2622_v30, 4  ;;  %v2627_v25 = vrot.slane %v2625_v36, 5  ;;  %v6008_v13 = vld [vmem:[%s7354_s28 + $0x98] sm:$0x1] }
 0x106   : > { %6670 = vmatmul.mubr.msk.bf16.gmra.mrb[16].mxu1 %vm323_vm1, %v7253_v42  ;;  %v2614_v37 = vor.u32 %v2613_v9, %v2609_v17  ;;  %v8342_v29 = vrot.slane %v2631_v41, 5  ;;  %v8348_v63 = vsel %vm7476_vm7, %v5064_v10, %v5065_v4  ;;  %v2641_v20 = vshll.u32 %v6002_v52, 16  ;;  %v6006_v4 = vld [vmem:[%s7354_s28 + $0x90] sm:$0xf]  ;;  %v6321_v30 = vld [vmem:[%s7354_s28 + $0x78] sm:$0xe] }
 0x107   : > { %6673 = vmatprep.mubr.msk.bf16.mxu1 %vm323_vm1, %v7254_v5  ;;  %v2605_v11 = vrot.slane %v2604_v40, 4  ;;  %v2637_v56 = vrot.slane %v2635_v18, 4  ;;  %v2628_v44 = vor.u32 %v2627_v25, %v2624_v2  ;;  %v6351_v16 = vrot.slane %v6315_v35, 9  ;;  %v6323_v2 = vld [vmem:[%s7354_s28 + $0x80] sm:$0x1] }
 0x108   : > { %v2615_v34 = vrot.slane %v2614_v37, 4  ;;  %v5069_v22 = vrot.slane %v6316_v46, 5  ;;  %v6365_v31 = vcombine.low %v8313_v8, %v8327_v53  ;;  %v5076_v19 = vrot.slane %v6319_v59, 5  ;;  %v6007_v53 = vld [vmem:[%s7354_s28 + $0x94] sm:$0xf]  ;;  %v7257_v59 = vld [vmem:[%s7354_s28 + $0xa8] sm:$0xff]  }
 0x109   : > { %v2610_v27 = vsel %vm7401_vm4, %v2605_v11, %v2609_v17  ;;  %v2638_v24 = vor.u32 %v2637_v56, %v8342_v29  ;;  %v6366_v50 = vcombine.low %v8317_v32, %v8337_v54  ;;  %v8365_v38 = vrot.slane %v2628_v44, 4  ;;  %v6324_v25 = vld [vmem:[%s7354_s28 + $0x84] sm:$0xe]  ;;  %v7258_v44 = vld [vmem:[%s7354_s28 + $0xb4] sm:$0xff]  }
 0x10a   : > { %6824 = vmatmul.mubr.msk.bf16.vlgmr.msra.gmra.mrb[0].mxu0 %vm323_vm1, %v6363_v47  ;;  %v2620_v6 = vsel %vm7401_vm4, %v2615_v34, %v2619_v48  ;;  %v6352_v23 = vrot.slane %v6318_v7, 9  ;;  %v7256_v47 = vld [vmem:[%s7354_s28 + $0x9c] sm:$0xff]   ;;  %v6367_v49 = vcombine.low %v8331_v62, %v8348_v63  ;;  %v8372_v12 = vrot.slane %v2641_v20, 5  ;;  %v6325_v34 = vld [vmem:[%s7354_s28 + $0x88] sm:$0xf] }
 0x10b   : > { %6827 = vmatprep.mubr.msk.bf16.mxu0 %vm323_vm1, %v6364_v28  ;;  %v5071_v28 = vrot.slane %v5069_v22, 4  ;;  %v5072_v8 = vrot.slane %v6317_v21, 5  ;;  %v8374_v55 = vcombine.low %v2610_v27, %v2620_v6  ;;  %v8376_v32 = vrot.slane %v2638_v24, 4  ;;  %v6322_v48 = vld [vmem:[%s7354_s28 + $0x7c] sm:$0xf] }
 0x10c   : > { %v8380_v57 = vsel %vm7476_vm7, %v6351_v16, %v5069_v22  ;;  %v2646_v60 = vshrl.u32 %v6003_v26, 16  ;;  %v5078_v1 = vrot.slane %v5076_v19, 4  ;;  %v5079_v61 = vrot.slane %v6320_v39, 5  ;;  %v6326_v6 = vld [vmem:[%s7354_s28 + $0x8c] sm:$0x1] }
 0x10d   : > { %v2649_v14 = vshll.u32 %v6003_v26, 16  ;;  %v2655_v42 = vshll.u32 %v6004_v45, 16  ;;  %v2634_v15 = vsel %vm7401_vm4, %v8365_v38, %v8342_v29  ;;  %v8392_v3 = vsel %vm7476_vm7, %v6352_v23, %v5076_v19 }
 0x10e   : > { %6674 = vmatmul.mubr.msk.bf16.gmra.mrb[20].mxu1 %vm323_vm1, %v7255_v51  ;;  %v2648_v5 = vrot.slane %v2646_v60, 4  ;;  %v2659_v10 = vshrl.u32 %v6004_v45, 16  ;;  %v8398_v17 = vsel %vm7476_vm7, %v5071_v28, %v5072_v8  ;;  %v2665_v52 = vshll.u32 %v6005_v58, 16  ;;  %v6009_v45 = vld [vmem:[%s7354_s28 + $0x9c] sm:$0xf] }
 0x10f   : > { %6677 = vmatprep.mubr.msk.bf16.mxu1 %vm323_vm1, %v7256_v47  ;;  %v2651_v33 = vrot.slane %v2649_v14, 5  ;;  %v8400_v9 = vrot.slane %v2655_v42, 5  ;;  %v2670_v41 = vshrl.u32 %v6006_v4, 16  ;;  %v2673_v54 = vshll.u32 %v6006_v4, 16  ;;  %v6010_v60 = vld [vmem:[%s7354_s28 + $0xa0] sm:$0xf] }
 0x110   : > { %v2661_v36 = vrot.slane %v2659_v10, 4  ;;  %v2679_v40 = vshll.u32 %v6007_v53, 16  ;;  %v8407_v18 = vsel %vm7476_vm7, %v5078_v1, %v5079_v61  ;;  %v2683_v46 = vshrl.u32 %v6007_v53, 16  ;;  %v6012_v10 = vld [vmem:[%s7354_s28 + $0xa8] sm:$0xf] }
 0x111   : > { %v2652_v35 = vor.u32 %v2651_v33, %v2648_v5  ;;  %v2689_v37 = vshll.u32 %v6008_v13, 16  ;;  %v2672_v56 = vrot.slane %v2670_v41, 4  ;;  %v2675_v20 = vrot.slane %v2673_v54, 5 }
 0x112   : > { %6828 = vmatmul.mubr.msk.bf16.gmra.mrb[4].mxu0 %vm323_vm1, %v6365_v31  ;;  %v2662_v11 = vor.u32 %v2661_v36, %v8400_v9  ;;  %v8414_v7 = vrot.slane %v2679_v40, 5  ;;  %v8420_v16 = vrot.slane %v2665_v52, 5  ;;  %v2685_v22 = vrot.slane %v2683_v46, 4  ;;  %v6013_v52 = vld [vmem:[%s7354_s28 + $0xac] sm:$0xf] }
 0x113   : > { %6831 = vmatprep.mubr.msk.bf16.mxu0 %vm323_vm1, %v6366_v50  ;;  %v8418_v21 = vrot.slane %v2652_v35, 4  ;;  %v6353_v51 = vrot.slane %v6321_v30, 9  ;;  %v2676_v27 = vor.u32 %v2675_v20, %v2672_v56  ;;  %v5083_v24 = vrot.slane %v6322_v48, 5  ;;  %v7259_v30 = vld [vmem:[%s7354_s28 + $0xc0] sm:$0xff]  }
 0x114   : > { %v8422_v31 = vrot.slane %v2662_v11, 4  ;;  %v5086_v19 = vrot.slane %v6323_v2, 5  ;;  %v2644_v26 = vsel %vm7401_vm4, %v8376_v32, %v8372_v12  ;;  %v2686_v50 = vor.u32 %v2685_v22, %v8414_v7  ;;  %v6016_v32 = vld [vmem:[%s7354_s28 + $0xb8] sm:$0xf] }
 0x115   : > { %v6354_v39 = vrot.slane %v6324_v25, 9  ;;  %v5090_v23 = vrot.slane %v6325_v34, 5  ;;  %v6368_v47 = vcombine.low %v8380_v57, %v8398_v17  ;;  %v8434_v28 = vrot.slane %v2676_v27, 4  ;;  %v6327_v25 = vld [vmem:[%s7354_s28 + $0x90] sm:$0xe] }
 0x116   : > { %6678 = vmatmul.mubr.msk.bf16.gmra.mrb[24].mxu1 %vm323_vm1, %v7257_v59  ;;  %v8436_v8 = vrot.slane %v2689_v37, 5  ;;  %v5085_v58 = vrot.slane %v5083_v24, 4  ;;  %v6369_v4 = vcombine.low %v8392_v3, %v8407_v18  ;;  %v2658_v1 = vsel %vm7401_vm4, %v8418_v21, %v8400_v9  ;;  %v6011_v3 = vld [vmem:[%s7354_s28 + $0xa4] sm:$0x1]  ;;  %v6014_v18 = vld [vmem:[%s7354_s28 + $0xb0] sm:$0x1] }
 0x117   : > { %6681 = vmatprep.mubr.msk.bf16.mxu1 %vm323_vm1, %v7258_v44  ;;  %v2668_v57 = vsel %vm7401_vm4, %v8422_v31, %v8420_v16  ;;  %v2687_v61 = vrot.slane %v2686_v50, 4  ;;  %v5084_v14 = vsel %vm7476_vm7, %v6353_v51, %v5083_v24  ;;  %v8456_v53 = vsel %vm7476_vm7, %v6354_v39, %v5090_v23  ;;  %v6329_v34 = vld [vmem:[%s7354_s28 + $0x98] sm:$0x1]  ;;  %v6331_v51 = vld [vmem:[%s7354_s28 + $0xa0] sm:$0xf] }
 0x118   : > { %v5087_v42 = vsel %vm7476_vm7, %v5085_v58, %v5086_v19  ;;  %v2694_v5 = vshrl.u32 %v6009_v45, 16  ;;  %v5092_v13 = vrot.slane %v5090_v23, 4  ;;  %v5093_v17 = vrot.slane %v6326_v6, 5  ;;  %v6015_v58 = vld [vmem:[%s7354_s28 + $0xb4] sm:$0xf] }
 0x119   : > { %v2697_v33 = vshll.u32 %v6009_v45, 16  ;;  %v2703_v9 = vshll.u32 %v6010_v60, 16  ;;  %v2682_v36 = vsel %vm7401_vm4, %v8434_v28, %v8414_v7  ;;  %v2692_v62 = vsel %vm7401_vm4, %v2687_v61, %v8436_v8  ;;  %v6328_v7 = vld [vmem:[%s7354_s28 + $0x94] sm:$0xf]  ;;  %v6330_v45 = vld [vmem:[%s7354_s28 + $0x9c] sm:$0xe] }
 0x11a   : > { %6832 = vmatmul.mubr.msk.bf16.gmra.mrb[8].mxu0 %vm323_vm1, %v6367_v49  ;;  %v2696_v63 = vrot.slane %v2694_v5, 4  ;;  %v2707_v49 = vshrl.u32 %v6010_v60, 16  ;;  %v6370_v41 = vcombine.low %v5084_v14, %v5087_v42  ;;  %v2713_v48 = vshll.u32 %v6011_v3, 16  ;;  %v6017_v3 = vld [vmem:[%s7354_s28 + $0xbc] sm:$0x1] }
 0x11b   : > { %6835 = vmatprep.mubr.msk.bf16.mxu0 %vm323_vm1, %v6368_v47  ;;  %v2699_v54 = vrot.slane %v2697_v33, 5  ;;  %v2705_v40 = vrot.slane %v2703_v9, 5  ;;  %v2718_v46 = vshrl.u32 %v6012_v10, 16  ;;  %v2721_v37 = vshll.u32 %v6012_v10, 16  ;;  %v6018_v10 = vld [vmem:[%s7354_s28 + $0xc0] sm:$0xf] }
 0x11c   : > { %v2709_v35 = vrot.slane %v2707_v49, 4  ;;  %v2727_v2 = vshll.u32 %v6013_v52, 16  ;;  %v8478_v59 = vsel %vm7476_vm7, %v5092_v13, %v5093_v17  ;;  %v2715_v56 = vrot.slane %v2713_v48, 5 }
 0x11d   : > { %v2700_v11 = vor.u32 %v2699_v54, %v2696_v63  ;;  %v2731_v20 = vshrl.u32 %v6013_v52, 16  ;;  %v2720_v21 = vrot.slane %v2718_v46, 4  ;;  %v2723_v16 = vrot.slane %v2721_v37, 5  ;;  %v6333_v46 = vld [vmem:[%s7354_s28 + $0xa8] sm:$0xe] }
 0x11e   : > { %6682 = vmatmul.mubr.msk.bf16.gmra.mrb[28].mxu1 %vm323_vm1, %v7259_v30  ;;  %v2710_v44 = vor.u32 %v2709_v35, %v2705_v40  ;;  %v8483_v22 = vrot.slane %v2727_v2, 5  ;;  %v2737_v24 = vshll.u32 %v6014_v18, 16  ;;  %v6355_v19 = vrot.slane %v6327_v25, 9 }
 0x11f   : > { %6703 = vmatprep.mubr.msk.bf16.mxu1 %vm323_vm1, %v8374_v55  ;;  %v2701_v31 = vrot.slane %v2700_v11, 4  ;;  %v2733_v27 = vrot.slane %v2731_v20, 4  ;;  %v2724_v6 = vor.u32 %v2723_v16, %v2720_v21  ;;  %v5097_v39 = vrot.slane %v6328_v7, 5  ;;  %v6334_v11 = vld [vmem:[%s7354_s28 + $0xac] sm:$0xf] }
 0x120   : > { %v2711_v50 = vrot.slane %v2710_v44, 4  ;;  %v5100_v23 = vrot.slane %v6329_v34, 5  ;;  %v6031_v55 = vcombine.low %v2634_v15, %v2644_v26  ;;  %v5104_v8 = vrot.slane %v6331_v51, 5  ;;  %v6020_v34 = vld [vmem:[%s7354_s28 + $0xc8] sm:$0x1] }
 0x121   : > { %v2706_v47 = vsel %vm7401_vm4, %v2701_v31, %v2705_v40  ;;  %v2734_v28 = vor.u32 %v2733_v27, %v8483_v22  ;;  %v6032_v60 = vcombine.low %v2658_v1, %v2668_v57  ;;  %v8504_v12 = vcombine.low %v2682_v36, %v2692_v62  ;;  %v6332_v1 = vld [vmem:[%s7354_s28 + $0xa4] sm:$0x1]  ;;  %v6337_v16 = vld [vmem:[%s7354_s28 + $0xb8] sm:$0xf] }
 0x122   : > { %6836 = vmatmul.mubr.msk.bf16.gmra.mrb[12].mxu0 %vm323_vm1, %v6369_v4  ;;  %v2716_v29 = vsel %vm7401_vm4, %v2711_v50, %v2715_v56  ;;  %v5099_v38 = vrot.slane %v5097_v39, 4  ;;  %v6371_v15 = vcombine.low %v8456_v53, %v8478_v59  ;;  %v8512_v26 = vrot.slane %v2737_v24, 5  ;;  %v6019_v53 = vld [vmem:[%s7354_s28 + $0xc4] sm:$0xf]  ;;  %v6335_v56 = vld [vmem:[%s7354_s28 + $0xb0] sm:$0x1] }
 0x123   : > { %6839 = vmatprep.mubr.msk.bf16.mxu0 %vm323_vm1, %v6370_v41  ;;  %v5098_v4 = vsel %vm7476_vm7, %v6355_v19, %v5097_v39  ;;  %v6356_v57 = vrot.slane %v6330_v45, 9  ;;  %v6034_v61 = vcombine.low %v2706_v47, %v2716_v29  ;;  %v2725_v14 = vrot.slane %v2724_v6, 4  ;;  %v6336_v24 = vld [vmem:[%s7354_s28 + $0xb4] sm:$0xe] }
 0x124   : > { %v5101_v42 = vsel %vm7476_vm7, %v5099_v38, %v5100_v23  ;;  %v2742_v5 = vshrl.u32 %v6015_v58, 16  ;;  %v2735_v13 = vrot.slane %v2734_v28, 4  ;;  %v5106_v17 = vrot.slane %v5104_v8, 4  ;;  %v6339_v28 = vld [vmem:[%s7354_s28 + $0xc0] sm:$0xe] }
 0x125   : > { %v2745_v33 = vshll.u32 %v6015_v58, 16  ;;  %v2751_v9 = vshll.u32 %v6016_v32, 16  ;;  %v6372_v52 = vcombine.low %v5098_v4, %v5101_v42  ;;  %v5107_v30 = vrot.slane %v6332_v1, 5  ;;  %v6340_v38 = vld [vmem:[%s7354_s28 + $0xc4] sm:$0xf] }
 0x126   : > { %6704 = vmatmul.mubr.msk.bf16.vlgmr.msra.gmra.mrb[16].mxu1 %vm323_vm1, %v6031_v55  ;;  %v2744_v36 = vrot.slane %v2742_v5, 4  ;;  %v2755_v62 = vshrl.u32 %v6016_v32, 16  ;;  %v5105_v63 = vsel %vm7476_vm7, %v6356_v57, %v5104_v8  ;;  %v2761_v54 = vshll.u32 %v6017_v3, 16  ;;  %v6338_v55 = vld [vmem:[%s7354_s28 + $0xbc] sm:$0x1] }
 0x127   : > { %6707 = vmatprep.mubr.msk.bf16.mxu1 %vm323_vm1, %v6032_v60  ;;  %v2747_v49 = vrot.slane %v2745_v33, 5  ;;  %v2753_v41 = vrot.slane %v2751_v9, 5  ;;  %v2766_v48 = vshrl.u32 %v6018_v10, 16  ;;  %v2769_v18 = vshll.u32 %v6018_v10, 16  ;;  %v6341_v32 = vld [vmem:[%s7354_s28 + $0xc8] sm:$0x1] }
 0x128   : > { %v2757_v40 = vrot.slane %v2755_v62, 4  ;;  %v2775_v35 = vshll.u32 %v6019_v53, 16  ;;  %v2730_v37 = vsel %vm7401_vm4, %v2725_v14, %v8483_v22  ;;  %v2740_v2 = vsel %vm7401_vm4, %v2735_v13, %v8512_v26  ;;  %v6343_v57 = vld [vmem:[%s7354_s28 + $0xd0] sm:$0xf] }
 0x129   : > { %v2748_v25 = vor.u32 %v2747_v49, %v2744_v36  ;;  %v2779_v59 = vshrl.u32 %v6019_v53, 16  ;;  %v5108_v20 = vsel %vm7476_vm7, %v5106_v17, %v5107_v30  ;;  %v2768_v44 = vrot.slane %v2766_v48, 4  ;;  %v6344_v49 = vld [vmem:[%s7354_s28 + $0xd4] sm:$0x1] }
 0x12a   : > { %6840 = vmatmul.mubr.msk.bf16.gmra.mrb[16].mxu0 %vm323_vm1, %v6371_v15  ;;  %v2758_v7 = vor.u32 %v2757_v40, %v2753_v41  ;;  %v2771_v21 = vrot.slane %v2769_v18, 5  ;;  %v2777_v51 = vrot.slane %v2775_v35, 5  ;;  %v6357_v27 = vrot.slane %v6333_v46, 9 }
 0x12b   : > { %6843 = vmatprep.mubr.msk.bf16.mxu0 %vm323_vm1, %v6372_v52  ;;  %v2749_v22 = vrot.slane %v2748_v25, 4  ;;  %v2781_v31 = vrot.slane %v2779_v59, 4  ;;  %v2763_v50 = vrot.slane %v2761_v54, 5  ;;  %v5111_v6 = vrot.slane %v6334_v11, 5 }
 0x12c   : > { %v2759_v19 = vrot.slane %v2758_v7, 4  ;;  %v5114_v39 = vrot.slane %v6335_v56, 5  ;;  %v6373_v23 = vcombine.low %v5105_v63, %v5108_v20  ;;  %v2785_v45 = vshll.u32 %v6020_v34, 16  ;;  %v6342_v63 = vld [vmem:[%s7354_s28 + $0xcc] sm:$0xe] }
 0x12d   : > { %v5118_v47 = vrot.slane %v6337_v16, 5  ;;  %v2772_v8 = vor.u32 %v2771_v21, %v2768_v44  ;;  %v5112_v58 = vsel %vm7476_vm7, %v6357_v27, %v5111_v6  ;;  %v5113_v60 = vrot.slane %v5111_v6, 4 }
 0x12e   : > { %6708 = vmatmul.mubr.msk.bf16.gmra.mrb[20].mxu1 %vm323_vm1, %v8504_v12  ;;  %v6358_v29 = vrot.slane %v6336_v24, 9  ;;  %v6035_v15 = vcombine.low %v2730_v37, %v2740_v2  ;;  %v2754_v26 = vsel %vm7401_vm4, %v2749_v22, %v2753_v41  ;;  %v2782_v4 = vor.u32 %v2781_v31, %v2777_v51 }
 0x12f   : > { %6711 = vmatprep.mubr.msk.bf16.mxu1 %vm323_vm1, %v6034_v61  ;;  %v5120_v1 = vrot.slane %v5118_v47, 4  ;;  %v2764_v12 = vsel %vm7401_vm4, %v2759_v19, %v2763_v50  ;;  %v5115_v14 = vsel %vm7476_vm7, %v5113_v60, %v5114_v39  ;;  %v5121_v42 = vrot.slane %v6338_v55, 5 }
 0x130   : > { %v6359_v3 = vrot.slane %v6339_v28, 9  ;;  %v2787_v61 = vrot.slane %v2785_v45, 5  ;;  %v6374_v5 = vcombine.low %v5112_v58, %v5115_v14  ;;  %v5125_v10 = vrot.slane %v6340_v38, 5 }
 0x131   : > { %v5128_v13 = vrot.slane %v6341_v32, 5  ;;  %v2773_v17 = vrot.slane %v2772_v8, 4  ;;  %v5119_v33 = vsel %vm7476_vm7, %v6358_v29, %v5118_v47  ;;  %v5122_v9 = vsel %vm7476_vm7, %v5120_v1, %v5121_v42 }
 0x132   : > { %6844 = vmatmul.mubr.msk.bf16.gmra.mrb[20].mxu0 %vm323_vm1, %v6373_v23  ;;  %v5132_v53 = vrot.slane %v6343_v57, 5  ;;  %v6036_v52 = vcombine.low %v2754_v26, %v2764_v12  ;;  %v2783_v30 = vrot.slane %v2782_v4, 4  ;;  %v5126_v36 = vsel %vm7476_vm7, %v6359_v3, %v5125_v10 }
 0x133   : > { %6847 = vmatprep.mubr.msk.bf16.mxu0 %vm323_vm1, %v6374_v5  ;;  %v5127_v62 = vrot.slane %v5125_v10, 4  ;;  %v6375_v41 = vcombine.low %v5119_v33, %v5122_v9  ;;  %v6360_v48 = vrot.slane %v6342_v63, 9  ;;  %v5135_v35 = vrot.slane %v6344_v49, 5 }
 0x134   : > { %v5134_v18 = vrot.slane %v5132_v53, 4  ;;  %v2778_v46 = vsel %vm7401_vm4, %v2773_v17, %v2777_v51  ;;  %v2788_v37 = vsel %vm7401_vm4, %v2783_v30, %v2787_v61 }
 0x135   : > { %v5129_v54 = vsel %vm7476_vm7, %v5127_v62, %v5128_v13  ;;  %v6037_v2 = vcombine.low %v2778_v46, %v2788_v37  ;;  %v5133_v25 = vsel %vm7476_vm7, %v6360_v48, %v5132_v53 }
 0x136   : > { %6712 = vmatmul.mubr.msk.bf16.gmra.mrb[24].mxu1 %vm323_vm1, %v6035_v15  ;;  %v6376_v40 = vcombine.low %v5126_v36, %v5129_v54  ;;  %v5136_v59 = vsel %vm7476_vm7, %v5134_v18, %v5135_v35 }
 0x137   : > { %6715 = vmatprep.mubr.msk.bf16.mxu1 %vm323_vm1, %v6036_v52  ;;  %v6377_v11 = vcombine.low %v5133_v25, %v5136_v59 }
 0x13a   : > { %6848 = vmatmul.mubr.msk.bf16.gmra.mrb[24].mxu0 %vm323_vm1, %v6375_v41 }
 0x13b   : > { %6851 = vmatprep.mubr.msk.bf16.mxu0 %vm323_vm1, %v6376_v40 }
 0x13e   : > { %6716 = vmatmul.mubr.msk.bf16.gmra.mrb[28].mxu1 %vm323_vm1, %v6037_v2 }
 0x142   : > { %6852 = vmatmul.mubr.msk.bf16.gmra.mrb[28].mxu0 %vm323_vm1, %v6377_v11 }
 0x1b9   : > { %v6655_v56 = vpop.f32.mrb[0].mxu1 }
 0x1ba   : > { %v2134_v43 = vpop.f32.mrb[1].mxu1 }
 0x1bb   : > { %v6656_v20 = vpop.f32.mrb[2].mxu1 }
 0x1bc   : > { %v2137_v7 = vpop.f32.mrb[3].mxu1 }
 0x1c1   : > { %v6659_v34 = vpop.f32.mrb[4].mxu1 }
 0x1c2   : > { %v2150_v44 = vpop.f32.mrb[5].mxu1 }
 0x1c3   : > { %v6660_v21 = vpop.f32.mrb[6].mxu1 }
 0x1c4   : > { %v2153_v16 = vpop.f32.mrb[7].mxu1 }
 0x1c9   : > { %v6663_v22 = vpop.f32.mrb[8].mxu1 }
 0x1ca   : > { %v2166_v51 = vpop.f32.mrb[9].mxu1 }
 0x1cb   : > { %v6664_v31 = vpop.f32.mrb[10].mxu1 }
 0x1cc   : > { %v2169_v27 = vpop.f32.mrb[11].mxu1 }
 0x1d1   : > { %v6667_v0 = vpop.f32.mrb[12].mxu1 }
 0x1d2   : > { %v2182_v24 = vpop.f32.mrb[13].mxu1 }
 0x1d3   : > { %v6668_v19 = vpop.f32.mrb[14].mxu1 }
 0x1d4   : > { %v2185_v50 = vpop.f32.mrb[15].mxu1 }
 0x1dd   : > { %v6825_v6 = vpop.f32.mrb[0].mxu0 }
 0x1de   : > { %v8590_v39 = vadd.f32 %v6825_v6, %v6655_v56  ;;  %v5272_v23 = vpop.f32.mrb[1].mxu0 }
 0x1df   : > { %v8592_v45 = vadd.f32 %v5272_v23, %v2134_v43  ;;  %v6826_v55 = vpop.f32.mrb[2].mxu0 }
 0x1e0   : > { %5465 = vst [vmem:[%s8588_s23 + $0x10] sm:$0xff] %v8590_v39  ;;  %v8596_v47 = vadd.f32 %v6826_v55, %v6656_v20  ;;  %v5275_v28 = vpop.f32.mrb[3].mxu0 }
 0x1e1   : > { %5463 = vst [vmem:[%s8588_s23] sm:$0xff] %v8592_v45  ;;  %v8600_v8 = vadd.f32 %v5275_v28, %v2137_v7 }
 0x1e2   : > { %5466 = vst [vmem:[%s8588_s23 + $0x18] sm:$0xff] %v8596_v47 }
 0x1e3   : > { %5464 = vst [vmem:[%s8588_s23 + $0x8] sm:$0xff] %v8600_v8  ;;  %v5527_v58 = vadd.f32 %v8600_v8, %v8592_v45 }
 0x1e5   : > { %v5528_v60 = vadd.f32 %v8590_v39, %v5527_v58  ;;  %v6829_v29 = vpop.f32.mrb[4].mxu0 }
 0x1e6   : > { %v8609_v38 = vadd.f32 %v6829_v29, %v6659_v34  ;;  %v5288_v32 = vpop.f32.mrb[5].mxu0 }
 0x1e7   : > { %v8611_v15 = vadd.f32 %v5288_v32, %v2150_v44  ;;  %v5529_v26 = vadd.f32 %v8596_v47, %v5528_v60  ;;  %v6830_v4 = vpop.f32.mrb[6].mxu0 }
 0x1e8   : > { %5469 = vst [vmem:[%s8588_s23 + $0x30] sm:$0xff] %v8609_v38  ;;  %v8616_v1 = vadd.f32 %v6830_v4, %v6660_v21  ;;  %v5291_v57 = vpop.f32.mrb[7].mxu0 }
 0x1e9   : > { %5467 = vst [vmem:[%s8588_s23 + $0x20] sm:$0xff] %v8611_v15  ;;  %v5530_v12 = vadd.f32 %v8611_v15, %v5529_v26  ;;  %v8621_v14 = vadd.f32 %v5291_v57, %v2153_v16 }
 0x1ea   : > { %5470 = vst [vmem:[%s8588_s23 + $0x38] sm:$0xff] %v8616_v1 }
 0x1eb   : > { %5468 = vst [vmem:[%s8588_s23 + $0x28] sm:$0xff] %v8621_v14  ;;  %v5531_v42 = vadd.f32 %v8621_v14, %v5530_v12 }
 0x1ed   : > { %v5532_v3 = vadd.f32 %v8609_v38, %v5531_v42  ;;  %v6833_v61 = vpop.f32.mrb[8].mxu0 }
 0x1ee   : > { %v8629_v5 = vadd.f32 %v6833_v61, %v6663_v22  ;;  %v5304_v10 = vpop.f32.mrb[9].mxu0 }
 0x1ef   : > { %v8631_v13 = vadd.f32 %v5304_v10, %v2166_v51  ;;  %v5533_v17 = vadd.f32 %v8616_v1, %v5532_v3  ;;  %v6834_v33 = vpop.f32.mrb[10].mxu0 }
 0x1f0   : > { %5473 = vst [vmem:[%s8588_s23 + $0x50] sm:$0xff] %v8629_v5  ;;  %v8636_v9 = vadd.f32 %v6834_v33, %v6664_v31  ;;  %v5307_v53 = vpop.f32.mrb[11].mxu0 }
 0x1f1   : > { %5471 = vst [vmem:[%s8588_s23 + $0x40] sm:$0xff] %v8631_v13  ;;  %v5534_v52 = vadd.f32 %v8631_v13, %v5533_v17  ;;  %v8641_v30 = vadd.f32 %v5307_v53, %v2169_v27 }
 0x1f2   : > { %5474 = vst [vmem:[%s8588_s23 + $0x58] sm:$0xff] %v8636_v9 }
 0x1f3   : > { %5472 = vst [vmem:[%s8588_s23 + $0x48] sm:$0xff] %v8641_v30  ;;  %v5535_v36 = vadd.f32 %v8641_v30, %v5534_v52 }
 0x1f5   : > { %v5536_v62 = vadd.f32 %v8629_v5, %v5535_v36  ;;  %v6837_v63 = vpop.f32.mrb[12].mxu0 }
 0x1f6   : > { %v8649_v49 = vadd.f32 %v6837_v63, %v6667_v0  ;;  %v5320_v41 = vpop.f32.mrb[13].mxu0 }
 0x1f7   : > { %v8651_v54 = vadd.f32 %v5320_v41, %v2182_v24  ;;  %v5537_v40 = vadd.f32 %v8636_v9, %v5536_v62  ;;  %v6838_v48 = vpop.f32.mrb[14].mxu0 }
 0x1f8   : > { %5477 = vst [vmem:[%s8588_s23 + $0x70] sm:$0xff] %v8649_v49  ;;  %v8656_v18 = vadd.f32 %v6838_v48, %v6668_v19  ;;  %v5323_v35 = vpop.f32.mrb[15].mxu0 }
 0x1f9   : > { %5475 = vst [vmem:[%s8588_s23 + $0x60] sm:$0xff] %v8651_v54  ;;  %v5538_v46 = vadd.f32 %v8651_v54, %v5537_v40  ;;  %v8661_v37 = vadd.f32 %v5323_v35, %v2185_v50  ;;  %v6705_v2 = vpop.f32.mrb[16].mxu1 }
 0x1fa   : > { %5478 = vst [vmem:[%s8588_s23 + $0x78] sm:$0xff] %v8656_v18  ;;  %v2988_v25 = vpop.f32.mrb[17].mxu1 }
 0x1fb   : > { %5476 = vst [vmem:[%s8588_s23 + $0x68] sm:$0xff] %v8661_v37  ;;  %v5539_v59 = vadd.f32 %v8661_v37, %v5538_v46  ;;  %v6706_v11 = vpop.f32.mrb[18].mxu1 }
 0x1fc   : > { %v2991_v56 = vpop.f32.mrb[19].mxu1 }
 0x1fd   : > { %v5540_v43 = vadd.f32 %v8649_v49, %v5539_v59  ;;  %v6841_v20 = vpop.f32.mrb[16].mxu0 }
 0x1fe   : > { %v8669_v7 = vadd.f32 %v6841_v20, %v6705_v2  ;;  %v5336_v34 = vpop.f32.mrb[17].mxu0 }
 0x1ff   : > { %v8671_v44 = vadd.f32 %v5336_v34, %v2988_v25  ;;  %v5541_v21 = vadd.f32 %v8656_v18, %v5540_v43  ;;  %v6842_v16 = vpop.f32.mrb[18].mxu0 }
 0x200   : > { %5481 = vst [vmem:[%s8588_s23 + $0x90] sm:$0xff] %v8669_v7  ;;  %v8676_v22 = vadd.f32 %v6842_v16, %v6706_v11  ;;  %v5339_v51 = vpop.f32.mrb[19].mxu0 }
 0x201   : > { %5479 = vst [vmem:[%s8588_s23 + $0x80] sm:$0xff] %v8671_v44  ;;  %v5542_v31 = vadd.f32 %v8671_v44, %v5541_v21  ;;  %v8681_v27 = vadd.f32 %v5339_v51, %v2991_v56  ;;  %v6709_v0 = vpop.f32.mrb[20].mxu1 }
 0x202   : > { %5482 = vst [vmem:[%s8588_s23 + $0x98] sm:$0xff] %v8676_v22  ;;  %v3004_v24 = vpop.f32.mrb[21].mxu1 }
 0x203   : > { %5480 = vst [vmem:[%s8588_s23 + $0x88] sm:$0xff] %v8681_v27  ;;  %v5543_v19 = vadd.f32 %v8681_v27, %v5542_v31  ;;  %v6710_v50 = vpop.f32.mrb[22].mxu1 }
 0x204   : > { %v3007_v6 = vpop.f32.mrb[23].mxu1 }
 0x205   : > { %v5544_v23 = vadd.f32 %v8669_v7, %v5543_v19  ;;  %v6845_v55 = vpop.f32.mrb[20].mxu0 }
 0x206   : > { %v8689_v28 = vadd.f32 %v6845_v55, %v6709_v0  ;;  %v5352_v58 = vpop.f32.mrb[21].mxu0 }
 0x207   : > { %v8691_v60 = vadd.f32 %v5352_v58, %v3004_v24  ;;  %v5545_v29 = vadd.f32 %v8676_v22, %v5544_v23  ;;  %v6846_v32 = vpop.f32.mrb[22].mxu0 }
 0x208   : > { %5485 = vst [vmem:[%s8588_s23 + $0xb0] sm:$0xff] %v8689_v28  ;;  %v8696_v26 = vadd.f32 %v6846_v32, %v6710_v50  ;;  %v5355_v4 = vpop.f32.mrb[23].mxu0 }
 0x209   : > { %5483 = vst [vmem:[%s8588_s23 + $0xa0] sm:$0xff] %v8691_v60  ;;  %v5546_v57 = vadd.f32 %v8691_v60, %v5545_v29  ;;  %v8701_v12 = vadd.f32 %v5355_v4, %v3007_v6  ;;  %v6713_v42 = vpop.f32.mrb[24].mxu1 }
 0x20a   : > { %5486 = vst [vmem:[%s8588_s23 + $0xb8] sm:$0xff] %v8696_v26  ;;  %v3020_v3 = vpop.f32.mrb[25].mxu1 }
 0x20b   : > { %5484 = vst [vmem:[%s8588_s23 + $0xa8] sm:$0xff] %v8701_v12  ;;  %v5547_v61 = vadd.f32 %v8701_v12, %v5546_v57  ;;  %v6714_v10 = vpop.f32.mrb[26].mxu1 }
 0x20c   : > { %v3023_v17 = vpop.f32.mrb[27].mxu1 }
 0x20d   : > { %v5548_v33 = vadd.f32 %v8689_v28, %v5547_v61  ;;  %v6849_v53 = vpop.f32.mrb[24].mxu0 }
 0x20e   : > { %v8709_v52 = vadd.f32 %v6849_v53, %v6713_v42  ;;  %v5368_v36 = vpop.f32.mrb[25].mxu0 }
 0x20f   : > { %v8711_v62 = vadd.f32 %v5368_v36, %v3020_v3  ;;  %v5549_v63 = vadd.f32 %v8696_v26, %v5548_v33  ;;  %v6850_v41 = vpop.f32.mrb[26].mxu0 }
 0x210   : > { %5489 = vst [vmem:[%s8588_s23 + $0xd0] sm:$0xff] %v8709_v52  ;;  %v8716_v40 = vadd.f32 %v6850_v41, %v6714_v10  ;;  %v5371_v48 = vpop.f32.mrb[27].mxu0 }
 0x211   : > { %5487 = vst [vmem:[%s8588_s23 + $0xc0] sm:$0xff] %v8711_v62  ;;  %v5550_v35 = vadd.f32 %v8711_v62, %v5549_v63  ;;  %v8721_v46 = vadd.f32 %v5371_v48, %v3023_v17  ;;  %v6717_v2 = vpop.f32.mrb[28].mxu1 }
 0x212   : > { %5490 = vst [vmem:[%s8588_s23 + $0xd8] sm:$0xff] %v8716_v40  ;;  %v3036_v25 = vpop.f32.mrb[29].mxu1 }
 0x213   : > { %5488 = vst [vmem:[%s8588_s23 + $0xc8] sm:$0xff] %v8721_v46  ;;  %v5551_v59 = vadd.f32 %v8721_v46, %v5550_v35  ;;  %v6718_v11 = vpop.f32.mrb[30].mxu1 }
 0x214   : > { %v3039_v56 = vpop.f32.mrb[31].mxu1 }
 0x215   : > { %v5552_v43 = vadd.f32 %v8709_v52, %v5551_v59  ;;  %v6853_v20 = vpop.f32.mrb[28].mxu0 }
 0x216   : > { %v8729_v34 = vadd.f32 %v6853_v20, %v6717_v2  ;;  %v5384_v21 = vpop.f32.mrb[29].mxu0 }
 0x217   : > { %v8731_v16 = vadd.f32 %v5384_v21, %v3036_v25  ;;  %v5553_v51 = vadd.f32 %v8716_v40, %v5552_v43  ;;  %v6854_v31 = vpop.f32.mrb[30].mxu0 }
 0x218   : > { %5493 = vst [vmem:[%s8588_s23 + $0xf0] sm:$0xff] %v8729_v34  ;;  %v8736_v0 = vadd.f32 %v6854_v31, %v6718_v11  ;;  %v5387_v24 = vpop.f32.mrb[31].mxu0 }
 0x219   : > { %5491 = vst [vmem:[%s8588_s23 + $0xe0] sm:$0xff] %v8731_v16  ;;  %v5554_v19 = vadd.f32 %v8731_v16, %v5553_v51  ;;  %v8741_v50 = vadd.f32 %v5387_v24, %v3039_v56 }
 0x21a   : > { %5494 = vst [vmem:[%s8588_s23 + $0xf8] sm:$0xff] %v8736_v0 }
 0x21b   : > { %5492 = vst [vmem:[%s8588_s23 + $0xe8] sm:$0xff] %v8741_v50  ;;  %v5555_v6 = vadd.f32 %v8741_v50, %v5554_v19 }
 0x21d   : > { %v5556_v23 = vadd.f32 %v8729_v34, %v5555_v6 }
 0x21f   : > { %v5557_v55 = vadd.f32 %v8736_v0, %v5556_v23 }
 0x221   : > { %v5558_v58 = vrot.slane %v5557_v55, 4 }
 0x223   : > { %v5559_v29 = vadd.f32 %v5558_v58, %v5557_v55 }
 0x225   : > { %v5560_v32 = vrot.slane %v5559_v29, 2 }
 0x227   : > { %v5561_v4 = vadd.f32 %v5560_v32, %v5559_v29 }
 0x229   : > { %v5562_v57 = vrot.slane %v5561_v4, 1 }
 0x22b   : > { %v8750_v42 = vadd.f32 %v5562_v57, %v5561_v4 }
 0x22d   : > { %v8753_v3 = vmul.f32 0.00390625, %v8750_v42 }
 0x22f   : > { %v5565_v61 = vsub.f32 %v8592_v45, %v8753_v3  ;;  %v5566_v10 = vsub.f32 %v8600_v8, %v8753_v3  ;;  %v5567_v17 = vsub.f32 %v8590_v39, %v8753_v3  ;;  %v5568_v36 = vsub.f32 %v8596_v47, %v8753_v3 }
 0x230   : > { %v5569_v63 = vsub.f32 %v8611_v15, %v8753_v3  ;;  %v5570_v35 = vsub.f32 %v8621_v14, %v8753_v3  ;;  %v5571_v8 = vsub.f32 %v8609_v38, %v8753_v3  ;;  %v5572_v59 = vsub.f32 %v8616_v1, %v8753_v3 }
 0x231   : > { %v5597_v33 = vmul.f32 %v5565_v61, %v5565_v61  ;;  %v5598_v53 = vmul.f32 %v5566_v10, %v5566_v10  ;;  %v5599_v41 = vmul.f32 %v5567_v17, %v5567_v17  ;;  %v5600_v45 = vmul.f32 %v5568_v36, %v5568_v36 }
 0x232   : > { %v5601_v25 = vmul.f32 %v5569_v63, %v5569_v63  ;;  %v5602_v11 = vmul.f32 %v5570_v35, %v5570_v35  ;;  %v5573_v15 = vsub.f32 %v8631_v13, %v8753_v3  ;;  %v5603_v56 = vmul.f32 %v5571_v8, %v5571_v8 }
 0x233   : > { %v5629_v48 = vadd.f32 %v5598_v53, %v5597_v33  ;;  %v5574_v14 = vsub.f32 %v8641_v30, %v8753_v3  ;;  %v5604_v20 = vmul.f32 %v5572_v59, %v5572_v59  ;;  %v5575_v38 = vsub.f32 %v8629_v5, %v8753_v3 }
 0x234   : > { %v5605_v51 = vmul.f32 %v5573_v15, %v5573_v15  ;;  %v5576_v1 = vsub.f32 %v8636_v9, %v8753_v3  ;;  %v5577_v13 = vsub.f32 %v8651_v54, %v8753_v3  ;;  %v5578_v30 = vsub.f32 %v8661_v37, %v8753_v3 }
 0x235   : > { %v5630_v2 = vadd.f32 %v5629_v48, %v5599_v41  ;;  %v5606_v24 = vmul.f32 %v5574_v14, %v5574_v14  ;;  %v5607_v6 = vmul.f32 %v5575_v38, %v5575_v38  ;;  %v5579_v5 = vsub.f32 %v8649_v49, %v8753_v3 }
 0x236   : > { %v5608_v55 = vmul.f32 %v5576_v1, %v5576_v1  ;;  %v5609_v29 = vmul.f32 %v5577_v13, %v5577_v13  ;;  %v5580_v9 = vsub.f32 %v8656_v18, %v8753_v3  ;;  %v5610_v4 = vmul.f32 %v5578_v30, %v5578_v30 }
 0x237   : > { %v5631_v39 = vadd.f32 %v5630_v2, %v5600_v45  ;;  %v5581_v54 = vsub.f32 %v8671_v44, %v8753_v3  ;;  %v5611_v61 = vmul.f32 %v5579_v5, %v5579_v5  ;;  %v5582_v37 = vsub.f32 %v8681_v27, %v8753_v3 }
 0x238   : > { %v5612_v17 = vmul.f32 %v5580_v9, %v5580_v9  ;;  %v5583_v49 = vsub.f32 %v8669_v7, %v8753_v3  ;;  %v5584_v18 = vsub.f32 %v8676_v22, %v8753_v3  ;;  %v5585_v44 = vsub.f32 %v8691_v60, %v8753_v3 }
 0x239   : > { %v5632_v47 = vadd.f32 %v5631_v39, %v5601_v25  ;;  %v5613_v53 = vmul.f32 %v5581_v54, %v5581_v54  ;;  %v5614_v63 = vmul.f32 %v5582_v37, %v5582_v37  ;;  %v5586_v27 = vsub.f32 %v8701_v12, %v8753_v3 }
 0x23a   : > { %v5615_v48 = vmul.f32 %v5583_v49, %v5583_v49  ;;  %v5616_v45 = vmul.f32 %v5584_v18, %v5584_v18  ;;  %v5587_v7 = vsub.f32 %v8689_v28, %v8753_v3  ;;  %v5617_v8 = vmul.f32 %v5585_v44, %v5585_v44 }
 0x23b   : > { %v5633_v43 = vadd.f32 %v5632_v47, %v5602_v11  ;;  %v5588_v22 = vsub.f32 %v8696_v26, %v8753_v3  ;;  %v5618_v39 = vmul.f32 %v5586_v27, %v5586_v27  ;;  %v5589_v60 = vsub.f32 %v8711_v62, %v8753_v3 }
 0x23c   : > { %v5619_v11 = vmul.f32 %v5587_v7, %v5587_v7  ;;  %v5590_v12 = vsub.f32 %v8721_v46, %v8753_v3  ;;  %v5591_v28 = vsub.f32 %v8709_v52, %v8753_v3  ;;  %v5592_v26 = vsub.f32 %v8716_v40, %v8753_v3 }
 0x23d   : > { %v5634_v21 = vadd.f32 %v5633_v43, %v5603_v56  ;;  %v5620_v15 = vmul.f32 %v5588_v22, %v5588_v22  ;;  %v5621_v43 = vmul.f32 %v5589_v60, %v5589_v60  ;;  %v5593_v62 = vsub.f32 %v8731_v16, %v8753_v3 }
 0x23e   : > { %v5623_v38 = vmul.f32 %v5591_v28, %v5591_v28  ;;  %v5594_v46 = vsub.f32 %v8741_v50, %v8753_v3  ;;  %v5595_v52 = vsub.f32 %v8729_v34, %v8753_v3  ;;  %v5596_v40 = vsub.f32 %v8736_v0, %v8753_v3 }
 0x23f   : > { %v5635_v31 = vadd.f32 %v5634_v21, %v5604_v20  ;;  %v5622_v20 = vmul.f32 %v5590_v12, %v5590_v12  ;;  %v5666_v50 = vlaneseq }
 0x240   : > { %v5626_v13 = vmul.f32 %v5594_v46, %v5594_v46  ;;  %v5628_v30 = vmul.f32 %v5596_v40, %v5596_v40 }
 0x241   : > { %v5636_v19 = vadd.f32 %v5635_v31, %v5605_v51  ;;  %v5624_v31 = vmul.f32 %v5592_v26, %v5592_v26  ;;  %v5667_v9 = vshrl.u32 %v5666_v50, 7 }
 0x243   : > { %v5637_v23 = vadd.f32 %v5636_v19, %v5606_v24  ;;  %v5625_v24 = vmul.f32 %v5593_v62, %v5593_v62  ;;  %vm5669_vm8 = vcmp.eq.s32.totalorder %v5667_v9, 1  ;;  %vm5668_vm9 = vcmp.eq.s32.totalorder %v5667_v9, 0 }
 0x245   : > { %v5638_v58 = vadd.f32 %v5637_v23, %v5607_v6  ;;  %v5627_v23 = vmul.f32 %v5595_v52, %v5595_v52 }
 0x247   : > { %v5639_v32 = vadd.f32 %v5638_v58, %v5608_v55 }
 0x249   : > { %v5640_v57 = vadd.f32 %v5639_v32, %v5609_v29 }
 0x24b   : > { %v5641_v10 = vadd.f32 %v5640_v57, %v5610_v4 }
 0x24d   : > { %v5642_v33 = vadd.f32 %v5641_v10, %v5611_v61 }
 0x24f   : > { %v5643_v36 = vadd.f32 %v5642_v33, %v5612_v17 }
 0x251   : > { %v5644_v41 = vadd.f32 %v5643_v36, %v5613_v53 }
 0x253   : > { %v5645_v35 = vadd.f32 %v5644_v41, %v5614_v63 }
 0x255   : > { %v5646_v2 = vadd.f32 %v5645_v35, %v5615_v48 }
 0x257   : > { %v5647_v25 = vadd.f32 %v5646_v2, %v5616_v45 }
 0x259   : > { %v5648_v59 = vadd.f32 %v5647_v25, %v5617_v8 }
 0x25b   : > { %v5649_v47 = vadd.f32 %v5648_v59, %v5618_v39 }
 0x25d   : > { %v5650_v56 = vadd.f32 %v5649_v47, %v5619_v11 }
 0x25f   : > { %v5651_v14 = vadd.f32 %v5650_v56, %v5620_v15 }
 0x261   : > { %v5652_v21 = vadd.f32 %v5651_v14, %v5621_v43 }
 0x263   : > { %v5653_v51 = vadd.f32 %v5652_v21, %v5622_v20 }
 0x265   : > { %v5654_v1 = vadd.f32 %v5653_v51, %v5623_v38 }
 0x267   : > { %v5655_v19 = vadd.f32 %v5654_v1, %v5624_v31 }
 0x269   : > { %v5656_v6 = vadd.f32 %v5655_v19, %v5625_v24 }
 0x26b   : > { %v5657_v16 = vadd.f32 %v5656_v6, %v5626_v13 }
 0x26d   : > { %v5658_v55 = vadd.f32 %v5657_v16, %v5627_v23 }
 0x26f   : > { %v5659_v58 = vadd.f32 %v5658_v55, %v5628_v30 }
 0x271   : > { %v5660_v5 = vrot.slane %v5659_v58, 4 }
 0x273   : > { %v5661_v29 = vadd.f32 %v5660_v5, %v5659_v58 }
 0x275   : > { %v5662_v32 = vrot.slane %v5661_v29, 2 }
 0x277   : > { %v5663_v4 = vadd.f32 %v5662_v32, %v5661_v29 }
 0x279   : > { %v5664_v34 = vrot.slane %v5663_v4, 1 }
 0x27b   : > { %v5665_v57 = vadd.f32 %v5664_v34, %v5663_v4 }
 0x27d   : > { %v5670_v0 = vsel %vm5669_vm8, %v5665_v57, 0.0 }
 0x27e   : > { %v5671_v3 = vsel %vm5668_vm9, %v8750_v42, %v5670_v0 }
 0x27f   : > { %5672 = vst [vmem:[%s203_s26] sm:$0xff] %v5671_v3 }
 0x280 PF: > { %s14_s14 = sadd.s32 1, %s7283_s14   ;;  %s8841_s12 = smov %s7279_s13 }
 0x281   : > { %p11_p6 = scmp.ge.s32.totalorder %s14_s14, 4   ;;  %s8842_s13 = smov %s8844_s15 }
 0x283   :  { %13 = sbr.rel (!%p11_p6) target bundleno = 2 (0x2), region = 81 }

</bundles_post_ra>
